<compile_context>
chip_gen: v5e
topology: v5e:2x2
jax: 0.10.0
libtpu: 0.0.40
codegen_flags: <defaults>
</compile_context>

<pallas_src>
import functools
import math

import jax
import jax.numpy as jnp
from jax.experimental import pallas as pl
from jax.experimental.pallas import tpu as pltpu

LANE = 128


def _round_up(x, m):
    return ((x + m - 1) // m) * m


def _pad_axis(a, size, axis):
    pad = size - a.shape[axis]
    if pad <= 0:
        return a
    widths = [(0, 0)] * a.ndim
    widths[axis] = (0, pad)
    return jnp.pad(a, widths)


# ---------------------------------------------------------------------------
# Pallas kernels
# ---------------------------------------------------------------------------
def _matmul_bias_act_kernel(x_ref, w_ref, b_ref, o_ref, *, relu):
    """o = x @ w + b (optionally ReLU).  x:(TM,K) bf16  w:(K,Np) bf16  b:(1,Np) f32."""
    acc = jnp.dot(x_ref[...], w_ref[...], preferred_element_type=jnp.float32)
    acc = acc + b_ref[...]
    if relu:
        acc = jnp.maximum(acc, 0.0)
    o_ref[...] = acc.astype(o_ref.dtype)


def matmul_bias_relu(x, w_bf16, b_row, *, relu, out_dtype=jnp.float32, row_blocks=None):
    """x:(M,K) @ w:(K,Np) + b, rows split across `row_blocks` parallel grid steps.
    Np is pre-padded to a multiple of 128 so output stores are lane-dense."""
    M, K = x.shape
    K2, Np = w_bf16.shape
    assert K == K2 and Np % LANE == 0
    if row_blocks is None:
        # >=2 blocks so both v7x TensorCores get work; cap per-block rows so each
        # block's VMEM footprint (in + out + double-buffering) stays small.
        row_blocks = max(2, pl.cdiv(M, 4096))
    TM = _round_up(pl.cdiv(M, row_blocks), 16)          # 16: bf16 sublane packing
    Mp = TM * row_blocks
    x = _pad_axis(x.astype(jnp.bfloat16), Mp, 0)
    kernel = functools.partial(_matmul_bias_act_kernel, relu=relu)
    out = pl.pallas_call(
        kernel,
        out_shape=jax.ShapeDtypeStruct((Mp, Np), out_dtype),
        grid=(row_blocks,),
        in_specs=[
            pl.BlockSpec((TM, K), lambda i: (i, 0)),
            pl.BlockSpec((K, Np), lambda i: (0, 0)),
            pl.BlockSpec((1, Np), lambda i: (0, 0)),
        ],
        out_specs=pl.BlockSpec((TM, Np), lambda i: (i, 0)),
        compiler_params=pltpu.CompilerParams(
            dimension_semantics=("parallel",),
        ),
    )(x, w_bf16, b_row)
    return out[:M]


def _fc_fused_kernel(x_ref, w1_ref, b1_ref, w2_ref, b2_ref, w3_ref, b3_ref, o_ref):
    """Fused fc1+ReLU -> fc2+ReLU -> fc3; bf16 operands, f32 accumulation."""
    h = jnp.dot(x_ref[...], w1_ref[...], preferred_element_type=jnp.float32) + b1_ref[...]
    h = jnp.maximum(h, 0.0)
    h = jnp.dot(h.astype(jnp.bfloat16), w2_ref[...], preferred_element_type=jnp.float32) + b2_ref[...]
    h = jnp.maximum(h, 0.0)
    h = jnp.dot(h.astype(jnp.bfloat16), w3_ref[...], preferred_element_type=jnp.float32) + b3_ref[...]
    o_ref[...] = h.astype(o_ref.dtype)


def fc_fused(x, p):
    """One kernel for the whole FC stack; all (padded, bf16) weights stay resident
    in VMEM, removing two launches and two HBM round trips of intermediates.
    Dropouts (p=0.1) are inference-mode identities."""
    N = x.shape[0]
    Np = p["fc3_w"].shape[1]
    return pl.pallas_call(
        _fc_fused_kernel,
        out_shape=jax.ShapeDtypeStruct((N, Np), jnp.float32),
    )(x.astype(jnp.bfloat16), p["fc1_w"], p["fc1_b"],
      p["fc2_w"], p["fc2_b"], p["fc3_w"], p["fc3_b"])


# ---------------------------------------------------------------------------
# Conv / pool stages (im2col & window-max are plain-JAX glue; matmul is Pallas)
# ---------------------------------------------------------------------------
def conv2d_relu(x_nhwc, w_mat, b_row, kh=5, kw=5):
    """Valid kh x kw stride-1 conv + bias + ReLU via im2col + Pallas matmul.
    Output channel axis padded to 128; output kept in bf16 (next consumer casts
    to bf16 for the MXU anyway) to halve HBM traffic between stages."""
    N, H, W, C = x_nhwc.shape
    OH, OW = H - kh + 1, W - kw + 1
    cols = [x_nhwc[:, i:i + OH, j:j + OW, :] for i in range(kh) for j in range(kw)]
    patches = jnp.stack(cols, axis=3).reshape(N * OH * OW, kh * kw * C)
    out = matmul_bias_relu(patches, w_mat, b_row, relu=True, out_dtype=jnp.bfloat16)
    return out.reshape(N, OH, OW, -1)


def maxpool_3x3s3(x_nhwc):
    """MaxPool2d(kernel_size=3, stride=3), floor mode — plain jnp.max over reshaped
    windows (no extra kernel launch, no 9x-expanded HBM intermediate)."""
    N, H, W, C = x_nhwc.shape
    PH, PW = H // 3, W // 3
    xc = x_nhwc[:, :PH * 3, :PW * 3, :].reshape(N, PH, 3, PW, 3, C)
    return jnp.max(xc, axis=(2, 4))


# ---------------------------------------------------------------------------
# Forward pass (matches SimpleNetDropout.forward, inference semantics)
# ---------------------------------------------------------------------------
def simple_net_dropout_forward(x_nchw, p):
    N = x_nchw.shape[0]
    x = jnp.transpose(x_nchw, (0, 2, 3, 1)).astype(jnp.bfloat16)     # NCHW -> NHWC (N,64,64,1), bf16
    x = conv2d_relu(x, p["conv1_w"], p["conv1_b"])                   # Conv2d(1,10,5)+ReLU, Cout padded to 128
    # Dropout(p=0.15): inference-mode identity.
    x = maxpool_3x3s3(x)                                             # MaxPool2d(3,3) -> (N,20,20,128)
    x = x[..., :10]                                                  # drop channel padding before conv2 im2col
    x = conv2d_relu(x, p["conv2_w"], p["conv2_b"])                   # Conv2d(10,20,5)+ReLU, Cout padded to 128
    # Dropout(p=0.15): inference-mode identity.
    x = maxpool_3x3s3(x)                                             # (N,5,5,128)
    x = jnp.transpose(x, (0, 3, 1, 2))[:, :20].reshape(N, -1)        # torch x.view(N,-1) NCHW order -> (N,500)
    x = fc_fused(x, p)                                               # Linear 500->500->100->15 (+ReLUs), padded
    return x[:, :15]                                                 # slice lane padding -> (N,15) raw scores


# ---------------------------------------------------------------------------
# Parameter init (shapes from the module) + one-time kernel-layout preparation
# ---------------------------------------------------------------------------
def init_params(key):
    def uni(k, shape, fan_in):
        bound = 1.0 / math.sqrt(fan_in)
        return jax.random.uniform(k, shape, jnp.float32, -bound, bound)

    ks = jax.random.split(key, 10)
    return {
        "conv1_w": uni(ks[0], (10, 1, 5, 5), 1 * 5 * 5),
        "conv1_b": uni(ks[1], (10,), 1 * 5 * 5),
        "conv2_w": uni(ks[2], (20, 10, 5, 5), 10 * 5 * 5),
        "conv2_b": uni(ks[3], (20,), 10 * 5 * 5),
        "fc1_w": uni(ks[4], (500, 500), 500),
        "fc1_b": uni(ks[5], (500,), 500),
        "fc2_w": uni(ks[6], (100, 500), 500),
        "fc2_b": uni(ks[7], (100,), 500),
        "fc3_w": uni(ks[8], (15, 100), 100),
        "fc3_b": uni(ks[9], (15,), 100),
    }


def prepare_params(params):
    """One-time (outside the jitted forward) weight prep: reshape convs to matmul form,
    transpose FC weights to (K,N), zero-pad output/contract dims to 128-lane multiples,
    cast matmul operands to bf16 (accumulation stays f32 in-kernel)."""
    def conv_mat(w, cout_pad):
        cout, cin, kh, kw = w.shape
        m = jnp.transpose(w, (2, 3, 1, 0)).reshape(kh * kw * cin, cout)
        return _pad_axis(m, cout_pad, 1).astype(jnp.bfloat16)

    def bias_row(b, n_pad):
        return _pad_axis(b.reshape(1, -1), n_pad, 1).astype(jnp.float32)

    def fc_mat(w, k_pad, n_pad):
        m = jnp.transpose(w, (1, 0))                         # (in, out)
        m = _pad_axis(m, k_pad, 0)
        m = _pad_axis(m, n_pad, 1)
        return m.astype(jnp.bfloat16)

    return {
        "conv1_w": conv_mat(params["conv1_w"], LANE),        # (25, 128)
        "conv1_b": bias_row(params["conv1_b"], LANE),
        "conv2_w": conv_mat(params["conv2_w"], LANE),        # (250, 128)
        "conv2_b": bias_row(params["conv2_b"], LANE),
        "fc1_w": fc_mat(params["fc1_w"], 500, 512),          # (500, 512)
        "fc1_b": bias_row(params["fc1_b"], 512),
        "fc2_w": fc_mat(params["fc2_w"], 512, LANE),         # (512, 128), zero rows 500:512
        "fc2_b": bias_row(params["fc2_b"], LANE),
        "fc3_w": fc_mat(params["fc3_w"], LANE, LANE),        # (128, 128)
        "fc3_b": bias_row(params["fc3_b"], LANE),
    }


if __name__ == "__main__":
    key = jax.random.PRNGKey(0)
    pkey, xkey = jax.random.split(key)
    params = init_params(pkey)
    prepped = prepare_params(params)      # weight layout prep happens once, outside jit
    # 64x64 single-channel input is required so the flatten matches Linear(20*5*5, 500).
    x = jax.random.normal(xkey, (2, 1, 64, 64), jnp.float32)
    out = jax.jit(simple_net_dropout_forward)(x, prepped)
    out = jax.block_until_ready(out)
    assert out.shape == (2, 15) and out.dtype == jnp.float32
    print("KERNEL_OK")
</pallas_src>

<mosaic_0001>
module attributes {stable_mosaic.version = 11 : i64} {
  func.func @_matmul_bias_act_kernel(%arg0: i32, %arg1: memref<3600x25xbf16, #tpu.memory_space<vmem>>, %arg2: memref<25x128xbf16, #tpu.memory_space<vmem>>, %arg3: memref<1x128xf32, #tpu.memory_space<vmem>>, %arg4: memref<3600x128xbf16, #tpu.memory_space<vmem>>) attributes {dimension_semantics = [#tpu.dimension_semantics<parallel>], iteration_bounds = array<i64: 2>, scalar_prefetch = 0 : i64, scratch_operands = 0 : i64, tpu.core_type = #tpu.core_type<tc>, window_params = [{transform_indices = @transform_0, window_bounds = array<i64: 3600, 25>}, {pipeline_mode = #tpu.pipeline_mode<synchronous>, transform_indices = @transform_1, window_bounds = array<i64: 25, 128>}, {pipeline_mode = #tpu.pipeline_mode<synchronous>, transform_indices = @transform_2, window_bounds = array<i64: 1, 128>}, {transform_indices = @transform_3, window_bounds = array<i64: 3600, 128>}]} {
    %c0 = arith.constant 0 : index
    %c0_0 = arith.constant 0 : index
    %0 = vector.load %arg1[%c0, %c0_0] : memref<3600x25xbf16, #tpu.memory_space<vmem>>, vector<3600x25xbf16>
    %c0_1 = arith.constant 0 : index
    %c0_2 = arith.constant 0 : index
    %1 = vector.load %arg2[%c0_1, %c0_2] : memref<25x128xbf16, #tpu.memory_space<vmem>>, vector<25x128xbf16>
    %cst = arith.constant dense<0.000000e+00> : vector<3600x128xf32>
    %2 = tpu.matmul %0, %1, %cst {dimension_numbers = #tpu.dot_dimension_numbers<[1], [0], [0], [1], [0, 0, 1, 1], [], []>} : vector<3600x25xbf16>, vector<25x128xbf16>, vector<3600x128xf32> -> vector<3600x128xf32>
    %c0_3 = arith.constant 0 : index
    %c0_4 = arith.constant 0 : index
    %3 = vector.load %arg3[%c0_3, %c0_4] : memref<1x128xf32, #tpu.memory_space<vmem>>, vector<1x128xf32>
    %4 = vector.broadcast %3 : vector<1x128xf32> to vector<3600x128xf32>
    %5 = arith.addf %2, %4 : vector<3600x128xf32>
    %cst_5 = arith.constant 0.000000e+00 : f32
    %6 = vector.broadcast %cst_5 : f32 to vector<3600x128xf32>
    %7 = arith.maximumf %5, %6 : vector<3600x128xf32>
    %8 = arith.truncf %7 : vector<3600x128xf32> to vector<3600x128xbf16>
    %c0_6 = arith.constant 0 : index
    %c0_7 = arith.constant 0 : index
    %9 = vector.load %arg4[%c0_6, %c0_7] : memref<3600x128xbf16, #tpu.memory_space<vmem>>, vector<3600x128xbf16>
    tpu.vector_store %arg4[%c0_6, %c0_7], %8 {strides = array<i32>} : memref<3600x128xbf16, #tpu.memory_space<vmem>>, vector<3600x128xbf16>,
    return
  }
  func.func @transform_0(%arg0: i32) -> (i32, i32) {
    %c0_i32 = arith.constant 0 : i32
    %c0_i32_0 = arith.constant 0 : i32
    return %arg0, %c0_i32 : i32, i32
  }
  func.func @transform_1(%arg0: i32) -> (i32, i32) {
    %c0_i32 = arith.constant 0 : i32
    %c0_i32_0 = arith.constant 0 : i32
    %c0_i32_1 = arith.constant 0 : i32
    return %c0_i32, %c0_i32_0 : i32, i32
  }
  func.func @transform_2(%arg0: i32) -> (i32, i32) {
    %c0_i32 = arith.constant 0 : i32
    %c0_i32_0 = arith.constant 0 : i32
    %c0_i32_1 = arith.constant 0 : i32
    return %c0_i32, %c0_i32_0 : i32, i32
  }
  func.func @transform_3(%arg0: i32) -> (i32, i32) {
    %c0_i32 = arith.constant 0 : i32
    %c0_i32_0 = arith.constant 0 : i32
    return %arg0, %c0_i32 : i32, i32
  }
}

module attributes {stable_mosaic.version = 11 : i64} {
  func.func @_matmul_bias_act_kernel(%arg0: i32, %arg1: memref<256x250xbf16, #tpu.memory_space<vmem>>, %arg2: memref<250x128xbf16, #tpu.memory_space<vmem>>, %arg3: memref<1x128xf32, #tpu.memory_space<vmem>>, %arg4: memref<256x128xbf16, #tpu.memory_space<vmem>>) attributes {dimension_semantics = [#tpu.dimension_semantics<parallel>], iteration_bounds = array<i64: 2>, scalar_prefetch = 0 : i64, scratch_operands = 0 : i64, tpu.core_type = #tpu.core_type<tc>, window_params = [{transform_indices = @transform_0, window_bounds = array<i64: 256, 250>}, {pipeline_mode = #tpu.pipeline_mode<synchronous>, transform_indices = @transform_1, window_bounds = array<i64: 250, 128>}, {pipeline_mode = #tpu.pipeline_mode<synchronous>, transform_indices = @transform_2, window_bounds = array<i64: 1, 128>}, {transform_indices = @transform_3, window_bounds = array<i64: 256, 128>}]} {
    %c0 = arith.constant 0 : index
    %c0_0 = arith.constant 0 : index
    %0 = vector.load %arg1[%c0, %c0_0] : memref<256x250xbf16, #tpu.memory_space<vmem>>, vector<256x250xbf16>
    %c0_1 = arith.constant 0 : index
    %c0_2 = arith.constant 0 : index
    %1 = vector.load %arg2[%c0_1, %c0_2] : memref<250x128xbf16, #tpu.memory_space<vmem>>, vector<250x128xbf16>
    %cst = arith.constant dense<0.000000e+00> : vector<256x128xf32>
    %2 = tpu.matmul %0, %1, %cst {dimension_numbers = #tpu.dot_dimension_numbers<[1], [0], [0], [1], [0, 0, 1, 1], [], []>} : vector<256x250xbf16>, vector<250x128xbf16>, vector<256x128xf32> -> vector<256x128xf32>
    %c0_3 = arith.constant 0 : index
    %c0_4 = arith.constant 0 : index
    %3 = vector.load %arg3[%c0_3, %c0_4] : memref<1x128xf32, #tpu.memory_space<vmem>>, vector<1x128xf32>
    %4 = vector.broadcast %3 : vector<1x128xf32> to vector<256x128xf32>
    %5 = arith.addf %2, %4 : vector<256x128xf32>
    %cst_5 = arith.constant 0.000000e+00 : f32
    %6 = vector.broadcast %cst_5 : f32 to vector<256x128xf32>
    %7 = arith.maximumf %5, %6 : vector<256x128xf32>
    %8 = arith.truncf %7 : vector<256x128xf32> to vector<256x128xbf16>
    %c0_6 = arith.constant 0 : index
    %c0_7 = arith.constant 0 : index
    %9 = vector.load %arg4[%c0_6, %c0_7] : memref<256x128xbf16, #tpu.memory_space<vmem>>, vector<256x128xbf16>
    tpu.vector_store %arg4[%c0_6, %c0_7], %8 {strides = array<i32>} : memref<256x128xbf16, #tpu.memory_space<vmem>>, vector<256x128xbf16>,
    return
  }
  func.func @transform_0(%arg0: i32) -> (i32, i32) {
    %c0_i32 = arith.constant 0 : i32
    %c0_i32_0 = arith.constant 0 : i32
    return %arg0, %c0_i32 : i32, i32
  }
  func.func @transform_1(%arg0: i32) -> (i32, i32) {
    %c0_i32 = arith.constant 0 : i32
    %c0_i32_0 = arith.constant 0 : i32
    %c0_i32_1 = arith.constant 0 : i32
    return %c0_i32, %c0_i32_0 : i32, i32
  }
  func.func @transform_2(%arg0: i32) -> (i32, i32) {
    %c0_i32 = arith.constant 0 : i32
    %c0_i32_0 = arith.constant 0 : i32
    %c0_i32_1 = arith.constant 0 : i32
    return %c0_i32, %c0_i32_0 : i32, i32
  }
  func.func @transform_3(%arg0: i32) -> (i32, i32) {
    %c0_i32 = arith.constant 0 : i32
    %c0_i32_0 = arith.constant 0 : i32
    return %arg0, %c0_i32 : i32, i32
  }
}

module attributes {stable_mosaic.version = 11 : i64} {
  func.func @_fc_fused_kernel(%arg0: memref<2x500xbf16, #tpu.memory_space<vmem>>, %arg1: memref<500x512xbf16, #tpu.memory_space<vmem>>, %arg2: memref<1x512xf32, #tpu.memory_space<vmem>>, %arg3: memref<512x128xbf16, #tpu.memory_space<vmem>>, %arg4: memref<1x128xf32, #tpu.memory_space<vmem>>, %arg5: memref<128x128xbf16, #tpu.memory_space<vmem>>, %arg6: memref<1x128xf32, #tpu.memory_space<vmem>>, %arg7: memref<2x128xf32, #tpu.memory_space<vmem>>) attributes {dimension_semantics = [], scalar_prefetch = 0 : i64, scratch_operands = 0 : i64, tpu.core_type = #tpu.core_type<tc>} {
    %c0 = arith.constant 0 : index
    %c0_0 = arith.constant 0 : index
    %0 = vector.load %arg0[%c0, %c0_0] : memref<2x500xbf16, #tpu.memory_space<vmem>>, vector<2x500xbf16>
    %c0_1 = arith.constant 0 : index
    %c0_2 = arith.constant 0 : index
    %1 = vector.load %arg1[%c0_1, %c0_2] : memref<500x512xbf16, #tpu.memory_space<vmem>>, vector<500x512xbf16>
    %cst = arith.constant dense<0.000000e+00> : vector<2x512xf32>
    %2 = tpu.matmul %0, %1, %cst {dimension_numbers = #tpu.dot_dimension_numbers<[1], [0], [0], [1], [0, 0, 1, 1], [], []>} : vector<2x500xbf16>, vector<500x512xbf16>, vector<2x512xf32> -> vector<2x512xf32>
    %c0_3 = arith.constant 0 : index
    %c0_4 = arith.constant 0 : index
    %3 = vector.load %arg2[%c0_3, %c0_4] : memref<1x512xf32, #tpu.memory_space<vmem>>, vector<1x512xf32>
    %4 = vector.broadcast %3 : vector<1x512xf32> to vector<2x512xf32>
    %5 = arith.addf %2, %4 : vector<2x512xf32>
    %cst_5 = arith.constant 0.000000e+00 : f32
    %6 = vector.broadcast %cst_5 : f32 to vector<2x512xf32>
    %7 = arith.maximumf %5, %6 : vector<2x512xf32>
    %8 = arith.truncf %7 : vector<2x512xf32> to vector<2x512xbf16>
    %c0_6 = arith.constant 0 : index
    %c0_7 = arith.constant 0 : index
    %9 = vector.load %arg3[%c0_6, %c0_7] : memref<512x128xbf16, #tpu.memory_space<vmem>>, vector<512x128xbf16>
    %cst_8 = arith.constant dense<0.000000e+00> : vector<2x128xf32>
    %10 = tpu.matmul %8, %9, %cst_8 {dimension_numbers = #tpu.dot_dimension_numbers<[1], [0], [0], [1], [0, 0, 1, 1], [], []>} : vector<2x512xbf16>, vector<512x128xbf16>, vector<2x128xf32> -> vector<2x128xf32>
    %c0_9 = arith.constant 0 : index
    %c0_10 = arith.constant 0 : index
    %11 = vector.load %arg4[%c0_9, %c0_10] : memref<1x128xf32, #tpu.memory_space<vmem>>, vector<1x128xf32>
    %12 = vector.broadcast %11 : vector<1x128xf32> to vector<2x128xf32>
    %13 = arith.addf %10, %12 : vector<2x128xf32>
    %cst_11 = arith.constant 0.000000e+00 : f32
    %14 = vector.broadcast %cst_11 : f32 to vector<2x128xf32>
    %15 = arith.maximumf %13, %14 : vector<2x128xf32>
    %16 = arith.truncf %15 : vector<2x128xf32> to vector<2x128xbf16>
    %c0_12 = arith.constant 0 : index
    %c0_13 = arith.constant 0 : index
    %17 = vector.load %arg5[%c0_12, %c0_13] : memref<128x128xbf16, #tpu.memory_space<vmem>>, vector<128x128xbf16>
    %cst_14 = arith.constant dense<0.000000e+00> : vector<2x128xf32>
    %18 = tpu.matmul %16, %17, %cst_14 {dimension_numbers = #tpu.dot_dimension_numbers<[1], [0], [0], [1], [0, 0, 1, 1], [], []>} : vector<2x128xbf16>, vector<128x128xbf16>, vector<2x128xf32> -> vector<2x128xf32>
    %c0_15 = arith.constant 0 : index
    %c0_16 = arith.constant 0 : index
    %19 = vector.load %arg6[%c0_15, %c0_16] : memref<1x128xf32, #tpu.memory_space<vmem>>, vector<1x128xf32>
    %20 = vector.broadcast %19 : vector<1x128xf32> to vector<2x128xf32>
    %21 = arith.addf %18, %20 : vector<2x128xf32>
    %c0_17 = arith.constant 0 : index
    %c0_18 = arith.constant 0 : index
    %22 = vector.load %arg7[%c0_17, %c0_18] : memref<2x128xf32, #tpu.memory_space<vmem>>, vector<2x128xf32>
    tpu.vector_store %arg7[%c0_17, %c0_18], %21 {strides = array<i32>} : memref<2x128xf32, #tpu.memory_space<vmem>>, vector<2x128xf32>,
    return
  }
}

</mosaic_0001>

<bundles_post_ra>
// kernel: simple_net_dropout_forward.3
= control target key start
LH: loop header
LB: loop body
LE: loop exit
PB: predicated region body
PF: predicated region fallthrough
CT: control target
= control target key end

     0   :  { %s7759_s12 = smov 0   ;;  %s8946_s0 = inlined_call_operand.vmem [shape: bf16[7200,25], index: 0, kind: input, shape index: {}]   ;;  %s8947_s1 = inlined_call_operand.vmem [shape: bf16[25,128], index: 1, kind: input, shape index: {}]   ;;  %s8948_s2 = inlined_call_operand.vmem [shape: f32[1,128], index: 2, kind: input, shape index: {}]   ;;  %s8949_s3 = inlined_call_operand.vmem [shape: bf16[7200,128], index: 3, kind: output, shape index: {}]  }
   0x1 LB: > { %s4992_s13 = sadd.s32 4294967295, %s7736_s12   ;;  %p4996_p0 = scmp.ge.s32.totalorder %s7736_s12, 1  ;;  %s7736_s12 = sphi %s7759_s12, %s13_s12  }
   0x2   : > { %p138_p1 = scmp.lt.s32.totalorder %s7736_s12, 3 }
   0x4   : > { %p139_p2 = pnand %p4996_p0, %p138_p1 }
   0x5   : > { %s162_s18 = smul.u32 (!%p139_p2), 450, %s4992_s13 }
   0x6   : > { %142 = sbr.rel (%p139_p2) target bundleno = 1067 (0x42b), region = 32 }
   0x7   : > { %p163_p3 = scmp.lt.s32.totalorder (!%p139_p2), %s162_s18, 899 }
   0xb   : > { %v5905_v0 = vld [vmem:[%s8947_s1 + $0x8] sm:$0xf]  ;;  %v6360_v1 = vld [vmem:[%s8947_s1 + $0x8] sm:$0x10]  ;;  %vm2445_vm0 = vcmask 1043456   ;;  %vm2446_vm1 = vcmask 1044480  }
   0xc   : > { %v5906_v2 = vor.u32 %v6360_v1, %v5905_v0  ;;  %v7738_v3 = vmov 65535   ;;  %s8951_s18 = smov (!%p163_p3, %s162_s18), 899  ;;  %v6359_v7 = vld [vmem:[%s8947_s1] sm:$0xff]  ;;  %vm1769_vm2 = vcmask 203776  }
   0xd   : > { %v2447_v4 = vsel %vm2445_vm0, 4294967295, %v7738_v3  ;;  %s4997_s21 = sshll.u32 %s8951_s18, 2  ;;  %v7857_v46 = vld [vmem:[%s8948_s2] ss:$0 sm:$0xff] }
   0xe   : > { %v2448_v5 = vsel %vm2446_vm1, %v2447_v4, 0  ;;  %s7784_s24 = scalar_lea.vmem %s8946_s0, %s4997_s21  ;;  %s7872_s29 = scalar_lea.vmem %s8949_s3, %s4997_s21 }
   0xf   : > { %v2450_v6 = vand.u32 %v5906_v2, %v2448_v5  ;;  %v6190_v8 = vld [vmem:[%s7784_s24 + $0x1c0] sm:$0xff]  ;;  %v6247_v9 = vld [vmem:[%s7784_s24 + $0x388] sm:$0xff]  ;;  %v6304_v11 = vld [vmem:[%s7784_s24 + $0x550] sm:$0xff] }
  0x10   : > { %v6134_v10 = vld [vmem:[%s7784_s24] sm:$0xff]  ;;  %v6191_v12 = vld [vmem:[%s7784_s24 + $0x1c8] sm:$0xff]  ;;  %v6248_v13 = vld [vmem:[%s7784_s24 + $0x390] sm:$0xff] }
  0x11   : > { %7710 = vmatpush.bf16.msra.mxu1 %v2450_v6  ;;  %7711 = vmatpush.bf16.msra.mxu2 %v2450_v6  ;;  %v6135_v14 = vld [vmem:[%s7784_s24 + $0x8] sm:$0xff]  ;;  %v6305_v15 = vld [vmem:[%s7784_s24 + $0x558] sm:$0xff]  ;;  %v6192_v16 = vld [vmem:[%s7784_s24 + $0x1d0] sm:$0xff] }
  0x12   : > { %2458 = vmatpush.bf16.msra.mxu0 %v2450_v6  ;;  %7712 = vmatpush.bf16.msra.mxu3 %v2450_v6  ;;  %v6249_v17 = vld [vmem:[%s7784_s24 + $0x398] sm:$0xff]  ;;  %v6136_v18 = vld [vmem:[%s7784_s24 + $0x10] sm:$0xff]  ;;  %v6306_v19 = vld [vmem:[%s7784_s24 + $0x560] sm:$0xff] }
  0x13   : > { %v6193_v20 = vld [vmem:[%s7784_s24 + $0x1d8] sm:$0xff]  ;;  %v6250_v21 = vld [vmem:[%s7784_s24 + $0x3a0] sm:$0xff]  ;;  %v6307_v23 = vld [vmem:[%s7784_s24 + $0x568] sm:$0xff] }
  0x14   : > { %v6137_v22 = vld [vmem:[%s7784_s24 + $0x18] sm:$0xff]  ;;  %v6194_v24 = vld [vmem:[%s7784_s24 + $0x1e0] sm:$0xff]  ;;  %v6251_v25 = vld [vmem:[%s7784_s24 + $0x3a8] sm:$0xff] }
  0x15   : > { %7713 = vmatpush.bf16.msra.mxu1 %v6359_v7  ;;  %7714 = vmatpush.bf16.msra.mxu2 %v6359_v7  ;;  %v6138_v26 = vld [vmem:[%s7784_s24 + $0x20] sm:$0xff]  ;;  %v6308_v27 = vld [vmem:[%s7784_s24 + $0x570] sm:$0xff]  ;;  %v6195_v28 = vld [vmem:[%s7784_s24 + $0x1e8] sm:$0xff] }
  0x16   : > { %2459 = vmatpush.bf16.msra.mxu0 %v6359_v7  ;;  %7715 = vmatpush.bf16.msra.mxu3 %v6359_v7  ;;  %v6252_v29 = vld [vmem:[%s7784_s24 + $0x3b0] sm:$0xff]  ;;  %v6139_v30 = vld [vmem:[%s7784_s24 + $0x28] sm:$0xff]  ;;  %v6309_v31 = vld [vmem:[%s7784_s24 + $0x578] sm:$0xff] }
  0x17   : > { %v6196_v32 = vld [vmem:[%s7784_s24 + $0x1f0] sm:$0xff]  ;;  %v6253_v33 = vld [vmem:[%s7784_s24 + $0x3b8] sm:$0xff]  ;;  %v6310_v35 = vld [vmem:[%s7784_s24 + $0x580] sm:$0xff] }
  0x18   : > { %5963 = vmatmul.msk.bf16.vlgmr.msra.gmra.mxu1 %vm1769_vm2, %v6190_v8  ;;  %6020 = vmatmul.msk.bf16.vlgmr.msra.gmra.mxu2 %vm1769_vm2, %v6247_v9  ;;  %v6140_v34 = vld [vmem:[%s7784_s24 + $0x30] sm:$0xff]  ;;  %v6197_v36 = vld [vmem:[%s7784_s24 + $0x1f8] sm:$0xff]  ;;  %v6254_v37 = vld [vmem:[%s7784_s24 + $0x3c0] sm:$0xff] }
  0x19   : > { %5907 = vmatmul.msk.bf16.vlgmr.msra.gmra.mxu0 %vm1769_vm2, %v6134_v10  ;;  %6077 = vmatmul.msk.bf16.vlgmr.msra.gmra.mxu3 %vm1769_vm2, %v6304_v11  ;;  %v6141_v38 = vld [vmem:[%s7784_s24 + $0x38] sm:$0xff]  ;;  %v6311_v39 = vld [vmem:[%s7784_s24 + $0x588] sm:$0xff]  ;;  %v6198_v40 = vld [vmem:[%s7784_s24 + $0x200] sm:$0xff] }
  0x1a   : > { %v6255_v41 = vld [vmem:[%s7784_s24 + $0x3c8] sm:$0xff]  ;;  %v6142_v43 = vld [vmem:[%s7784_s24 + $0x40] sm:$0xff]  ;;  %v6312_v44 = vld [vmem:[%s7784_s24 + $0x590] sm:$0xff] }
  0x1b   : > { %v6199_v1 = vld [vmem:[%s7784_s24 + $0x208] sm:$0xff]  ;;  %v6256_v2 = vld [vmem:[%s7784_s24 + $0x3d0] sm:$0xff]  ;;  %v6313_v8 = vld [vmem:[%s7784_s24 + $0x598] sm:$0xff] }
  0x1c   : > { %v6143_v6 = vld [vmem:[%s7784_s24 + $0x48] sm:$0xff] }
  0x28   : > { %5964 = vmatmul.msk.bf16.gmra.mxu1 %vm1769_vm2, %v6191_v12  ;;  %6021 = vmatmul.msk.bf16.gmra.mxu2 %vm1769_vm2, %v6248_v13 }
  0x29   : > { %5908 = vmatmul.msk.bf16.gmra.mxu0 %vm1769_vm2, %v6135_v14  ;;  %6078 = vmatmul.msk.bf16.gmra.mxu3 %vm1769_vm2, %v6305_v15 }
  0x38   : > { %5965 = vmatmul.msk.bf16.gmra.mxu1 %vm1769_vm2, %v6192_v16  ;;  %6022 = vmatmul.msk.bf16.gmra.mxu2 %vm1769_vm2, %v6249_v17 }
  0x39   : > { %5909 = vmatmul.msk.bf16.gmra.mxu0 %vm1769_vm2, %v6136_v18  ;;  %6079 = vmatmul.msk.bf16.gmra.mxu3 %vm1769_vm2, %v6306_v19 }
  0x48   : > { %5966 = vmatmul.msk.bf16.gmra.mxu1 %vm1769_vm2, %v6193_v20  ;;  %6023 = vmatmul.msk.bf16.gmra.mxu2 %vm1769_vm2, %v6250_v21 }
  0x49   : > { %5910 = vmatmul.msk.bf16.gmra.mxu0 %vm1769_vm2, %v6137_v22  ;;  %6080 = vmatmul.msk.bf16.gmra.mxu3 %vm1769_vm2, %v6307_v23 }
  0x58   : > { %5967 = vmatmul.msk.bf16.gmra.mxu1 %vm1769_vm2, %v6194_v24  ;;  %6024 = vmatmul.msk.bf16.gmra.mxu2 %vm1769_vm2, %v6251_v25 }
  0x59   : > { %5911 = vmatmul.msk.bf16.gmra.mxu0 %vm1769_vm2, %v6138_v26  ;;  %6081 = vmatmul.msk.bf16.gmra.mxu3 %vm1769_vm2, %v6308_v27 }
  0x68   : > { %5968 = vmatmul.msk.bf16.gmra.mxu1 %vm1769_vm2, %v6195_v28  ;;  %6025 = vmatmul.msk.bf16.gmra.mxu2 %vm1769_vm2, %v6252_v29 }
  0x69   : > { %5912 = vmatmul.msk.bf16.gmra.mxu0 %vm1769_vm2, %v6139_v30  ;;  %6082 = vmatmul.msk.bf16.gmra.mxu3 %vm1769_vm2, %v6309_v31 }
  0x78   : > { %5969 = vmatmul.msk.bf16.gmra.mxu1 %vm1769_vm2, %v6196_v32  ;;  %6026 = vmatmul.msk.bf16.gmra.mxu2 %vm1769_vm2, %v6253_v33  ;;  %v6200_v33 = vld [vmem:[%s7784_s24 + $0x210] sm:$0xff] }
  0x79   : > { %5913 = vmatmul.msk.bf16.gmra.mxu0 %vm1769_vm2, %v6140_v34  ;;  %6083 = vmatmul.msk.bf16.gmra.mxu3 %vm1769_vm2, %v6310_v35  ;;  %v6257_v34 = vld [vmem:[%s7784_s24 + $0x3d8] sm:$0xff] }
  0x88   : > { %5970 = vmatmul.msk.bf16.gmra.mxu1 %vm1769_vm2, %v6197_v36  ;;  %6027 = vmatmul.msk.bf16.gmra.mxu2 %vm1769_vm2, %v6254_v37 }
  0x89   : > { %5914 = vmatmul.msk.bf16.gmra.mxu0 %vm1769_vm2, %v6141_v38  ;;  %6084 = vmatmul.msk.bf16.gmra.mxu3 %vm1769_vm2, %v6311_v39  ;;  %v6144_v38 = vld [vmem:[%s7784_s24 + $0x50] sm:$0xff] }
  0x95   : > { %v2741_v42 = vpop.f32.mrf.mxu1 }
  0x96   : > { %v2461_v45 = vpop.f32.mrf.mxu0  ;;  %v2742_v49 = vadd.f32 %v7857_v46, %v2741_v42 }
  0x97   : > { %v2462_v48 = vadd.f32 %v7857_v46, %v2461_v45 }
  0x98   : > { %5971 = vmatmul.msk.bf16.gmra.mxu1 %vm1769_vm2, %v6198_v40  ;;  %6028 = vmatmul.msk.bf16.gmra.mxu2 %vm1769_vm2, %v6255_v41  ;;  %v3698_v56 = vmax.f32 %v2742_v49, 0.0  ;;  %v6314_v40 = vld [vmem:[%s7784_s24 + $0x5a0] sm:$0xff] }
  0x99   : > { %5915 = vmatmul.msk.bf16.gmra.mxu0 %vm1769_vm2, %v6142_v43  ;;  %6085 = vmatmul.msk.bf16.gmra.mxu3 %vm1769_vm2, %v6312_v44  ;;  %v3586_v54 = vmax.f32 %v2462_v48, 0.0 }
  0x9b   : > { %v3026_v47 = vpop.f32.mrf.mxu2 }
  0x9c   : > { %v3311_v50 = vpop.f32.mrf.mxu3  ;;  %v3027_v60 = vadd.f32 %v7857_v46, %v3026_v47 }
  0x9d   : > { %v2743_v51 = vpop.f32.mrf.mxu1  ;;  %v3312_v59 = vadd.f32 %v7857_v46, %v3311_v50 }
  0x9e   : > { %v2744_v52 = vadd.f32 %v7857_v46, %v2743_v51  ;;  %v2463_v53 = vpop.f32.mrf.mxu0  ;;  %v3812_v9 = vmax.f32 %v3027_v60, 0.0 }
  0x9f   : > { %v2464_v55 = vadd.f32 %v7857_v46, %v2463_v53  ;;  %v3926_v5 = vmax.f32 %v3312_v59, 0.0 }
  0xa0   : > { %v3699_v57 = vmax.f32 %v2744_v52, 0.0 }
  0xa1   : > { %v3587_v58 = vmax.f32 %v2464_v55, 0.0 }
  0xa2   : > { %v6644_v61 = vpack.c.bf16 %v3699_v57, %v3698_v56 }
  0xa3   : > { %v3028_v62 = vpop.f32.mrf.mxu2  ;;  %v6364_v63 = vpack.c.bf16 %v3587_v58, %v3586_v54 }
  0xa4   : > { %7541 = vst [vmem:[%s7872_s29 + $0x1c0] sm:$0xff] %v6644_v61   ;;  %v3029_v0 = vadd.f32 %v7857_v46, %v3028_v62  ;;  %v3313_v3 = vpop.f32.mrf.mxu3 }
  0xa5   : > { %v2746_v4 = vpop.f32.mrf.mxu1  ;;  %6365 = vst [vmem:[%s7872_s29] sm:$0xff] %v6364_v63   ;;  %v3314_v7 = vadd.f32 %v7857_v46, %v3313_v3  ;;  %v6258_v3 = vld [vmem:[%s7784_s24 + $0x3e0] sm:$0xff] }
  0xa6   : > { %v3813_v10 = vmax.f32 %v3029_v0, 0.0  ;;  %v2466_v11 = vpop.f32.mrf.mxu0  ;;  %v2747_v17 = vadd.f32 %v7857_v46, %v2746_v4 }
  0xa7   : > { %v3927_v12 = vmax.f32 %v3314_v7, 0.0  ;;  %v2467_v16 = vadd.f32 %v7857_v46, %v2466_v11  ;;  %v6145_v7 = vld [vmem:[%s7784_s24 + $0x58] sm:$0xff] }
  0xa8   : > { %v6929_v13 = vpack.c.bf16 %v3813_v10, %v3812_v9  ;;  %5972 = vmatmul.msk.bf16.gmra.mxu1 %vm1769_vm2, %v6199_v1  ;;  %6029 = vmatmul.msk.bf16.gmra.mxu2 %vm1769_vm2, %v6256_v2  ;;  %v3700_v24 = vmax.f32 %v2747_v17, 0.0  ;;  %v6201_v2 = vld [vmem:[%s7784_s24 + $0x218] sm:$0xff]  ;;  %v6315_v9 = vld [vmem:[%s7784_s24 + $0x5a8] sm:$0xff] }
  0xa9   : > { %5916 = vmatmul.msk.bf16.gmra.mxu0 %vm1769_vm2, %v6143_v6  ;;  %v7214_v14 = vpack.c.bf16 %v3927_v12, %v3926_v5  ;;  %6086 = vmatmul.msk.bf16.gmra.mxu3 %vm1769_vm2, %v6313_v8  ;;  %v3588_v22 = vmax.f32 %v2467_v16, 0.0 }
  0xaa   : > { %7598 = vst [vmem:[%s7872_s29 + $0x388] sm:$0xff] %v6929_v13  }
  0xab   : > { %v3031_v15 = vpop.f32.mrf.mxu2  ;;  %7655 = vst [vmem:[%s7872_s29 + $0x550] sm:$0xff] %v7214_v14  }
  0xac   : > { %v3316_v18 = vpop.f32.mrf.mxu3  ;;  %v3032_v28 = vadd.f32 %v7857_v46, %v3031_v15 }
  0xad   : > { %v2748_v19 = vpop.f32.mrf.mxu1  ;;  %v3317_v27 = vadd.f32 %v7857_v46, %v3316_v18 }
  0xae   : > { %v2749_v20 = vadd.f32 %v7857_v46, %v2748_v19  ;;  %v2468_v21 = vpop.f32.mrf.mxu0  ;;  %v3814_v41 = vmax.f32 %v3032_v28, 0.0 }
  0xaf   : > { %v2469_v23 = vadd.f32 %v7857_v46, %v2468_v21  ;;  %v3928_v37 = vmax.f32 %v3317_v27, 0.0 }
  0xb0   : > { %v3701_v25 = vmax.f32 %v2749_v20, 0.0 }
  0xb1   : > { %v3589_v26 = vmax.f32 %v2469_v23, 0.0 }
  0xb2   : > { %v6649_v29 = vpack.c.bf16 %v3701_v25, %v3700_v24 }
  0xb3   : > { %v3033_v30 = vpop.f32.mrf.mxu2  ;;  %v6369_v31 = vpack.c.bf16 %v3589_v26, %v3588_v22 }
  0xb4   : > { %7542 = vst [vmem:[%s7872_s29 + $0x1c8] sm:$0xff] %v6649_v29   ;;  %v3034_v32 = vadd.f32 %v7857_v46, %v3033_v30  ;;  %v3318_v35 = vpop.f32.mrf.mxu3 }
  0xb5   : > { %v2751_v36 = vpop.f32.mrf.mxu1  ;;  %7486 = vst [vmem:[%s7872_s29 + $0x8] sm:$0xff] %v6369_v31   ;;  %v3319_v39 = vadd.f32 %v7857_v46, %v3318_v35  ;;  %v6259_v35 = vld [vmem:[%s7784_s24 + $0x3e8] sm:$0xff] }
  0xb6   : > { %v3815_v42 = vmax.f32 %v3034_v32, 0.0  ;;  %v2471_v43 = vpop.f32.mrf.mxu0  ;;  %v2752_v50 = vadd.f32 %v7857_v46, %v2751_v36 }
  0xb7   : > { %v3929_v44 = vmax.f32 %v3319_v39, 0.0  ;;  %v2472_v49 = vadd.f32 %v7857_v46, %v2471_v43  ;;  %v6146_v39 = vld [vmem:[%s7784_s24 + $0x60] sm:$0xff] }
  0xb8   : > { %v6934_v45 = vpack.c.bf16 %v3815_v42, %v3814_v41  ;;  %5973 = vmatmul.msk.bf16.gmra.mxu1 %vm1769_vm2, %v6200_v33  ;;  %6030 = vmatmul.msk.bf16.gmra.mxu2 %vm1769_vm2, %v6257_v34  ;;  %v3702_v57 = vmax.f32 %v2752_v50, 0.0  ;;  %v6202_v34 = vld [vmem:[%s7784_s24 + $0x220] sm:$0xff]  ;;  %v6316_v41 = vld [vmem:[%s7784_s24 + $0x5b0] sm:$0xff] }
  0xb9   : > { %5917 = vmatmul.msk.bf16.gmra.mxu0 %vm1769_vm2, %v6144_v38  ;;  %v7219_v47 = vpack.c.bf16 %v3929_v44, %v3928_v37  ;;  %6087 = vmatmul.msk.bf16.gmra.mxu3 %vm1769_vm2, %v6314_v40  ;;  %v3590_v55 = vmax.f32 %v2472_v49, 0.0 }
  0xba   : > { %7599 = vst [vmem:[%s7872_s29 + $0x390] sm:$0xff] %v6934_v45  }
  0xbb   : > { %v3036_v48 = vpop.f32.mrf.mxu2  ;;  %7656 = vst [vmem:[%s7872_s29 + $0x558] sm:$0xff] %v7219_v47  }
  0xbc   : > { %v3321_v51 = vpop.f32.mrf.mxu3  ;;  %v3037_v61 = vadd.f32 %v7857_v46, %v3036_v48 }
  0xbd   : > { %v2753_v52 = vpop.f32.mrf.mxu1  ;;  %v3322_v60 = vadd.f32 %v7857_v46, %v3321_v51 }
  0xbe   : > { %v2754_v53 = vadd.f32 %v7857_v46, %v2753_v52  ;;  %v2473_v54 = vpop.f32.mrf.mxu0  ;;  %v3816_v10 = vmax.f32 %v3037_v61, 0.0 }
  0xbf   : > { %v2474_v56 = vadd.f32 %v7857_v46, %v2473_v54  ;;  %v3930_v6 = vmax.f32 %v3322_v60, 0.0 }
  0xc0   : > { %v3703_v58 = vmax.f32 %v2754_v53, 0.0 }
  0xc1   : > { %v3591_v59 = vmax.f32 %v2474_v56, 0.0 }
  0xc2   : > { %v6654_v62 = vpack.c.bf16 %v3703_v58, %v3702_v57 }
  0xc3   : > { %v3038_v63 = vpop.f32.mrf.mxu2  ;;  %v6374_v0 = vpack.c.bf16 %v3591_v59, %v3590_v55 }
  0xc4   : > { %7543 = vst [vmem:[%s7872_s29 + $0x1d0] sm:$0xff] %v6654_v62   ;;  %v3039_v1 = vadd.f32 %v7857_v46, %v3038_v63  ;;  %v3323_v4 = vpop.f32.mrf.mxu3 }
  0xc5   : > { %v2756_v5 = vpop.f32.mrf.mxu1  ;;  %7487 = vst [vmem:[%s7872_s29 + $0x10] sm:$0xff] %v6374_v0   ;;  %v3324_v8 = vadd.f32 %v7857_v46, %v3323_v4  ;;  %v6260_v4 = vld [vmem:[%s7784_s24 + $0x3f0] sm:$0xff] }
  0xc6   : > { %v3817_v11 = vmax.f32 %v3039_v1, 0.0  ;;  %v2476_v12 = vpop.f32.mrf.mxu0  ;;  %v2757_v18 = vadd.f32 %v7857_v46, %v2756_v5 }
  0xc7   : > { %v3931_v13 = vmax.f32 %v3324_v8, 0.0  ;;  %v2477_v17 = vadd.f32 %v7857_v46, %v2476_v12  ;;  %v6147_v8 = vld [vmem:[%s7784_s24 + $0x68] sm:$0xff] }
  0xc8   : > { %v6939_v14 = vpack.c.bf16 %v3817_v11, %v3816_v10  ;;  %5974 = vmatmul.msk.bf16.gmra.mxu1 %vm1769_vm2, %v6201_v2  ;;  %6031 = vmatmul.msk.bf16.gmra.mxu2 %vm1769_vm2, %v6258_v3  ;;  %v3704_v25 = vmax.f32 %v2757_v18, 0.0  ;;  %v6203_v3 = vld [vmem:[%s7784_s24 + $0x228] sm:$0xff]  ;;  %v6317_v10 = vld [vmem:[%s7784_s24 + $0x5b8] sm:$0xff] }
  0xc9   : > { %5918 = vmatmul.msk.bf16.gmra.mxu0 %vm1769_vm2, %v6145_v7  ;;  %v7224_v15 = vpack.c.bf16 %v3931_v13, %v3930_v6  ;;  %6088 = vmatmul.msk.bf16.gmra.mxu3 %vm1769_vm2, %v6315_v9  ;;  %v3592_v23 = vmax.f32 %v2477_v17, 0.0 }
  0xca   : > { %7600 = vst [vmem:[%s7872_s29 + $0x398] sm:$0xff] %v6939_v14  }
  0xcb   : > { %v3041_v16 = vpop.f32.mrf.mxu2  ;;  %7657 = vst [vmem:[%s7872_s29 + $0x560] sm:$0xff] %v7224_v15  }
  0xcc   : > { %v3326_v19 = vpop.f32.mrf.mxu3  ;;  %v3042_v29 = vadd.f32 %v7857_v46, %v3041_v16 }
  0xcd   : > { %v2758_v20 = vpop.f32.mrf.mxu1  ;;  %v3327_v28 = vadd.f32 %v7857_v46, %v3326_v19 }
  0xce   : > { %v2759_v21 = vadd.f32 %v7857_v46, %v2758_v20  ;;  %v2478_v22 = vpop.f32.mrf.mxu0  ;;  %v3818_v42 = vmax.f32 %v3042_v29, 0.0 }
  0xcf   : > { %v2479_v24 = vadd.f32 %v7857_v46, %v2478_v22  ;;  %v3932_v38 = vmax.f32 %v3327_v28, 0.0 }
  0xd0   : > { %v3705_v26 = vmax.f32 %v2759_v21, 0.0 }
  0xd1   : > { %v3593_v27 = vmax.f32 %v2479_v24, 0.0 }
  0xd2   : > { %v6659_v30 = vpack.c.bf16 %v3705_v26, %v3704_v25 }
  0xd3   : > { %v3043_v31 = vpop.f32.mrf.mxu2  ;;  %v6379_v32 = vpack.c.bf16 %v3593_v27, %v3592_v23 }
  0xd4   : > { %7544 = vst [vmem:[%s7872_s29 + $0x1d8] sm:$0xff] %v6659_v30   ;;  %v3044_v33 = vadd.f32 %v7857_v46, %v3043_v31  ;;  %v3328_v36 = vpop.f32.mrf.mxu3 }
  0xd5   : > { %v2761_v37 = vpop.f32.mrf.mxu1  ;;  %7488 = vst [vmem:[%s7872_s29 + $0x18] sm:$0xff] %v6379_v32   ;;  %v3329_v40 = vadd.f32 %v7857_v46, %v3328_v36  ;;  %v6261_v36 = vld [vmem:[%s7784_s24 + $0x3f8] sm:$0xff] }
  0xd6   : > { %v3819_v43 = vmax.f32 %v3044_v33, 0.0  ;;  %v2481_v44 = vpop.f32.mrf.mxu0  ;;  %v2762_v51 = vadd.f32 %v7857_v46, %v2761_v37 }
  0xd7   : > { %v3933_v45 = vmax.f32 %v3329_v40, 0.0  ;;  %v2482_v50 = vadd.f32 %v7857_v46, %v2481_v44  ;;  %v6148_v40 = vld [vmem:[%s7784_s24 + $0x70] sm:$0xff] }
  0xd8   : > { %v6944_v47 = vpack.c.bf16 %v3819_v43, %v3818_v42  ;;  %5975 = vmatmul.msk.bf16.gmra.mxu1 %vm1769_vm2, %v6202_v34  ;;  %6032 = vmatmul.msk.bf16.gmra.mxu2 %vm1769_vm2, %v6259_v35  ;;  %v3706_v58 = vmax.f32 %v2762_v51, 0.0  ;;  %v6204_v35 = vld [vmem:[%s7784_s24 + $0x230] sm:$0xff]  ;;  %v6318_v42 = vld [vmem:[%s7784_s24 + $0x5c0] sm:$0xff] }
  0xd9   : > { %5919 = vmatmul.msk.bf16.gmra.mxu0 %vm1769_vm2, %v6146_v39  ;;  %v7229_v48 = vpack.c.bf16 %v3933_v45, %v3932_v38  ;;  %6089 = vmatmul.msk.bf16.gmra.mxu3 %vm1769_vm2, %v6316_v41  ;;  %v3594_v56 = vmax.f32 %v2482_v50, 0.0 }
  0xda   : > { %7601 = vst [vmem:[%s7872_s29 + $0x3a0] sm:$0xff] %v6944_v47  }
  0xdb   : > { %v3046_v49 = vpop.f32.mrf.mxu2  ;;  %7658 = vst [vmem:[%s7872_s29 + $0x568] sm:$0xff] %v7229_v48  }
  0xdc   : > { %v3331_v52 = vpop.f32.mrf.mxu3  ;;  %v3047_v62 = vadd.f32 %v7857_v46, %v3046_v49 }
  0xdd   : > { %v2763_v53 = vpop.f32.mrf.mxu1  ;;  %v3332_v61 = vadd.f32 %v7857_v46, %v3331_v52 }
  0xde   : > { %v2764_v54 = vadd.f32 %v7857_v46, %v2763_v53  ;;  %v2483_v55 = vpop.f32.mrf.mxu0  ;;  %v3820_v11 = vmax.f32 %v3047_v62, 0.0 }
  0xdf   : > { %v2484_v57 = vadd.f32 %v7857_v46, %v2483_v55  ;;  %v3934_v7 = vmax.f32 %v3332_v61, 0.0 }
  0xe0   : > { %v3707_v59 = vmax.f32 %v2764_v54, 0.0 }
  0xe1   : > { %v3595_v60 = vmax.f32 %v2484_v57, 0.0 }
  0xe2   : > { %v6664_v63 = vpack.c.bf16 %v3707_v59, %v3706_v58 }
  0xe3   : > { %v3048_v0 = vpop.f32.mrf.mxu2  ;;  %v6384_v1 = vpack.c.bf16 %v3595_v60, %v3594_v56 }
  0xe4   : > { %7545 = vst [vmem:[%s7872_s29 + $0x1e0] sm:$0xff] %v6664_v63   ;;  %v3049_v2 = vadd.f32 %v7857_v46, %v3048_v0  ;;  %v3333_v5 = vpop.f32.mrf.mxu3 }
  0xe5   : > { %v2766_v6 = vpop.f32.mrf.mxu1  ;;  %7489 = vst [vmem:[%s7872_s29 + $0x20] sm:$0xff] %v6384_v1   ;;  %v3334_v9 = vadd.f32 %v7857_v46, %v3333_v5  ;;  %v6262_v5 = vld [vmem:[%s7784_s24 + $0x400] sm:$0xff] }
  0xe6   : > { %v3821_v12 = vmax.f32 %v3049_v2, 0.0  ;;  %v2486_v13 = vpop.f32.mrf.mxu0  ;;  %v2767_v19 = vadd.f32 %v7857_v46, %v2766_v6 }
  0xe7   : > { %v3935_v14 = vmax.f32 %v3334_v9, 0.0  ;;  %v2487_v18 = vadd.f32 %v7857_v46, %v2486_v13  ;;  %v6149_v9 = vld [vmem:[%s7784_s24 + $0x78] sm:$0xff] }
  0xe8   : > { %v6949_v15 = vpack.c.bf16 %v3821_v12, %v3820_v11  ;;  %5976 = vmatmul.msk.bf16.gmra.mxu1 %vm1769_vm2, %v6203_v3  ;;  %6033 = vmatmul.msk.bf16.gmra.mxu2 %vm1769_vm2, %v6260_v4  ;;  %v3708_v26 = vmax.f32 %v2767_v19, 0.0  ;;  %v6205_v4 = vld [vmem:[%s7784_s24 + $0x238] sm:$0xff]  ;;  %v6319_v11 = vld [vmem:[%s7784_s24 + $0x5c8] sm:$0xff] }
  0xe9   : > { %5920 = vmatmul.msk.bf16.gmra.mxu0 %vm1769_vm2, %v6147_v8  ;;  %v7234_v16 = vpack.c.bf16 %v3935_v14, %v3934_v7  ;;  %6090 = vmatmul.msk.bf16.gmra.mxu3 %vm1769_vm2, %v6317_v10  ;;  %v3596_v24 = vmax.f32 %v2487_v18, 0.0 }
  0xea   : > { %7602 = vst [vmem:[%s7872_s29 + $0x3a8] sm:$0xff] %v6949_v15  }
  0xeb   : > { %v3051_v17 = vpop.f32.mrf.mxu2  ;;  %7659 = vst [vmem:[%s7872_s29 + $0x570] sm:$0xff] %v7234_v16  }
  0xec   : > { %v3336_v20 = vpop.f32.mrf.mxu3  ;;  %v3052_v30 = vadd.f32 %v7857_v46, %v3051_v17 }
  0xed   : > { %v2768_v21 = vpop.f32.mrf.mxu1  ;;  %v3337_v29 = vadd.f32 %v7857_v46, %v3336_v20 }
  0xee   : > { %v2769_v22 = vadd.f32 %v7857_v46, %v2768_v21  ;;  %v2488_v23 = vpop.f32.mrf.mxu0  ;;  %v3822_v43 = vmax.f32 %v3052_v30, 0.0 }
  0xef   : > { %v2489_v25 = vadd.f32 %v7857_v46, %v2488_v23  ;;  %v3936_v39 = vmax.f32 %v3337_v29, 0.0 }
  0xf0   : > { %v3709_v27 = vmax.f32 %v2769_v22, 0.0 }
  0xf1   : > { %v3597_v28 = vmax.f32 %v2489_v25, 0.0 }
  0xf2   : > { %v6669_v31 = vpack.c.bf16 %v3709_v27, %v3708_v26 }
  0xf3   : > { %v3053_v32 = vpop.f32.mrf.mxu2  ;;  %v6389_v33 = vpack.c.bf16 %v3597_v28, %v3596_v24 }
  0xf4   : > { %7546 = vst [vmem:[%s7872_s29 + $0x1e8] sm:$0xff] %v6669_v31   ;;  %v3054_v34 = vadd.f32 %v7857_v46, %v3053_v32  ;;  %v3338_v37 = vpop.f32.mrf.mxu3 }
  0xf5   : > { %v2771_v38 = vpop.f32.mrf.mxu1  ;;  %7490 = vst [vmem:[%s7872_s29 + $0x28] sm:$0xff] %v6389_v33   ;;  %v3339_v41 = vadd.f32 %v7857_v46, %v3338_v37  ;;  %v6263_v37 = vld [vmem:[%s7784_s24 + $0x408] sm:$0xff] }
  0xf6   : > { %v3823_v44 = vmax.f32 %v3054_v34, 0.0  ;;  %v2491_v45 = vpop.f32.mrf.mxu0  ;;  %v2772_v52 = vadd.f32 %v7857_v46, %v2771_v38 }
  0xf7   : > { %v3937_v47 = vmax.f32 %v3339_v41, 0.0  ;;  %v2492_v51 = vadd.f32 %v7857_v46, %v2491_v45  ;;  %v6150_v41 = vld [vmem:[%s7784_s24 + $0x80] sm:$0xff] }
  0xf8   : > { %v6954_v48 = vpack.c.bf16 %v3823_v44, %v3822_v43  ;;  %5977 = vmatmul.msk.bf16.gmra.mxu1 %vm1769_vm2, %v6204_v35  ;;  %6034 = vmatmul.msk.bf16.gmra.mxu2 %vm1769_vm2, %v6261_v36  ;;  %v3710_v59 = vmax.f32 %v2772_v52, 0.0  ;;  %v6206_v36 = vld [vmem:[%s7784_s24 + $0x240] sm:$0xff]  ;;  %v6320_v43 = vld [vmem:[%s7784_s24 + $0x5d0] sm:$0xff] }
  0xf9   : > { %5921 = vmatmul.msk.bf16.gmra.mxu0 %vm1769_vm2, %v6148_v40  ;;  %v7239_v49 = vpack.c.bf16 %v3937_v47, %v3936_v39  ;;  %6091 = vmatmul.msk.bf16.gmra.mxu3 %vm1769_vm2, %v6318_v42  ;;  %v3598_v57 = vmax.f32 %v2492_v51, 0.0 }
  0xfa   : > { %7603 = vst [vmem:[%s7872_s29 + $0x3b0] sm:$0xff] %v6954_v48  }
  0xfb   : > { %v3056_v50 = vpop.f32.mrf.mxu2  ;;  %7660 = vst [vmem:[%s7872_s29 + $0x578] sm:$0xff] %v7239_v49  }
  0xfc   : > { %v3341_v53 = vpop.f32.mrf.mxu3  ;;  %v3057_v63 = vadd.f32 %v7857_v46, %v3056_v50 }
  0xfd   : > { %v2773_v54 = vpop.f32.mrf.mxu1  ;;  %v3342_v62 = vadd.f32 %v7857_v46, %v3341_v53 }
  0xfe   : > { %v2774_v55 = vadd.f32 %v7857_v46, %v2773_v54  ;;  %v2493_v56 = vpop.f32.mrf.mxu0  ;;  %v3824_v12 = vmax.f32 %v3057_v63, 0.0 }
  0xff   : > { %v2494_v58 = vadd.f32 %v7857_v46, %v2493_v56  ;;  %v3938_v8 = vmax.f32 %v3342_v62, 0.0 }
 0x100   : > { %v3711_v60 = vmax.f32 %v2774_v55, 0.0 }
 0x101   : > { %v3599_v61 = vmax.f32 %v2494_v58, 0.0 }
 0x102   : > { %v6674_v0 = vpack.c.bf16 %v3711_v60, %v3710_v59 }
 0x103   : > { %v3058_v1 = vpop.f32.mrf.mxu2  ;;  %v6394_v2 = vpack.c.bf16 %v3599_v61, %v3598_v57 }
 0x104   : > { %7547 = vst [vmem:[%s7872_s29 + $0x1f0] sm:$0xff] %v6674_v0   ;;  %v3059_v3 = vadd.f32 %v7857_v46, %v3058_v1  ;;  %v3343_v6 = vpop.f32.mrf.mxu3 }
 0x105   : > { %v2776_v7 = vpop.f32.mrf.mxu1  ;;  %7491 = vst [vmem:[%s7872_s29 + $0x30] sm:$0xff] %v6394_v2   ;;  %v3344_v10 = vadd.f32 %v7857_v46, %v3343_v6  ;;  %v6264_v6 = vld [vmem:[%s7784_s24 + $0x410] sm:$0xff] }
 0x106   : > { %v3825_v13 = vmax.f32 %v3059_v3, 0.0  ;;  %v2496_v14 = vpop.f32.mrf.mxu0  ;;  %v2777_v20 = vadd.f32 %v7857_v46, %v2776_v7 }
 0x107   : > { %v3939_v15 = vmax.f32 %v3344_v10, 0.0  ;;  %v2497_v19 = vadd.f32 %v7857_v46, %v2496_v14  ;;  %v6151_v10 = vld [vmem:[%s7784_s24 + $0x88] sm:$0xff] }
 0x108   : > { %v6959_v16 = vpack.c.bf16 %v3825_v13, %v3824_v12  ;;  %5978 = vmatmul.msk.bf16.gmra.mxu1 %vm1769_vm2, %v6205_v4  ;;  %6035 = vmatmul.msk.bf16.gmra.mxu2 %vm1769_vm2, %v6262_v5  ;;  %v3712_v27 = vmax.f32 %v2777_v20, 0.0  ;;  %v6207_v5 = vld [vmem:[%s7784_s24 + $0x248] sm:$0xff]  ;;  %v6321_v12 = vld [vmem:[%s7784_s24 + $0x5d8] sm:$0xff] }
 0x109   : > { %5922 = vmatmul.msk.bf16.gmra.mxu0 %vm1769_vm2, %v6149_v9  ;;  %v7244_v17 = vpack.c.bf16 %v3939_v15, %v3938_v8  ;;  %6092 = vmatmul.msk.bf16.gmra.mxu3 %vm1769_vm2, %v6319_v11  ;;  %v3600_v25 = vmax.f32 %v2497_v19, 0.0 }
 0x10a   : > { %7604 = vst [vmem:[%s7872_s29 + $0x3b8] sm:$0xff] %v6959_v16  }
 0x10b   : > { %v3061_v18 = vpop.f32.mrf.mxu2  ;;  %7661 = vst [vmem:[%s7872_s29 + $0x580] sm:$0xff] %v7244_v17  }
 0x10c   : > { %v3346_v21 = vpop.f32.mrf.mxu3  ;;  %v3062_v31 = vadd.f32 %v7857_v46, %v3061_v18 }
 0x10d   : > { %v2778_v22 = vpop.f32.mrf.mxu1  ;;  %v3347_v30 = vadd.f32 %v7857_v46, %v3346_v21 }
 0x10e   : > { %v2779_v23 = vadd.f32 %v7857_v46, %v2778_v22  ;;  %v2498_v24 = vpop.f32.mrf.mxu0  ;;  %v3826_v44 = vmax.f32 %v3062_v31, 0.0 }
 0x10f   : > { %v2499_v26 = vadd.f32 %v7857_v46, %v2498_v24  ;;  %v3940_v40 = vmax.f32 %v3347_v30, 0.0 }
 0x110   : > { %v3713_v28 = vmax.f32 %v2779_v23, 0.0 }
 0x111   : > { %v3601_v29 = vmax.f32 %v2499_v26, 0.0 }
 0x112   : > { %v6679_v32 = vpack.c.bf16 %v3713_v28, %v3712_v27 }
 0x113   : > { %v3063_v33 = vpop.f32.mrf.mxu2  ;;  %v6399_v34 = vpack.c.bf16 %v3601_v29, %v3600_v25 }
 0x114   : > { %7548 = vst [vmem:[%s7872_s29 + $0x1f8] sm:$0xff] %v6679_v32   ;;  %v3064_v35 = vadd.f32 %v7857_v46, %v3063_v33  ;;  %v3348_v38 = vpop.f32.mrf.mxu3 }
 0x115   : > { %v2781_v39 = vpop.f32.mrf.mxu1  ;;  %7492 = vst [vmem:[%s7872_s29 + $0x38] sm:$0xff] %v6399_v34   ;;  %v3349_v42 = vadd.f32 %v7857_v46, %v3348_v38  ;;  %v6265_v38 = vld [vmem:[%s7784_s24 + $0x418] sm:$0xff] }
 0x116   : > { %v3827_v45 = vmax.f32 %v3064_v35, 0.0  ;;  %v2501_v47 = vpop.f32.mrf.mxu0  ;;  %v2782_v53 = vadd.f32 %v7857_v46, %v2781_v39 }
 0x117   : > { %v3941_v48 = vmax.f32 %v3349_v42, 0.0  ;;  %v2502_v52 = vadd.f32 %v7857_v46, %v2501_v47  ;;  %v6152_v42 = vld [vmem:[%s7784_s24 + $0x90] sm:$0xff] }
 0x118   : > { %v6964_v49 = vpack.c.bf16 %v3827_v45, %v3826_v44  ;;  %5979 = vmatmul.msk.bf16.gmra.mxu1 %vm1769_vm2, %v6206_v36  ;;  %6036 = vmatmul.msk.bf16.gmra.mxu2 %vm1769_vm2, %v6263_v37  ;;  %v3714_v60 = vmax.f32 %v2782_v53, 0.0  ;;  %v6208_v37 = vld [vmem:[%s7784_s24 + $0x250] sm:$0xff]  ;;  %v6322_v44 = vld [vmem:[%s7784_s24 + $0x5e0] sm:$0xff] }
 0x119   : > { %5923 = vmatmul.msk.bf16.gmra.mxu0 %vm1769_vm2, %v6150_v41  ;;  %v7249_v50 = vpack.c.bf16 %v3941_v48, %v3940_v40  ;;  %6093 = vmatmul.msk.bf16.gmra.mxu3 %vm1769_vm2, %v6320_v43  ;;  %v3602_v58 = vmax.f32 %v2502_v52, 0.0 }
 0x11a   : > { %7605 = vst [vmem:[%s7872_s29 + $0x3c0] sm:$0xff] %v6964_v49  }
 0x11b   : > { %v3066_v51 = vpop.f32.mrf.mxu2  ;;  %7662 = vst [vmem:[%s7872_s29 + $0x588] sm:$0xff] %v7249_v50  }
 0x11c   : > { %v3351_v54 = vpop.f32.mrf.mxu3  ;;  %v3067_v0 = vadd.f32 %v7857_v46, %v3066_v51 }
 0x11d   : > { %v2783_v55 = vpop.f32.mrf.mxu1  ;;  %v3352_v63 = vadd.f32 %v7857_v46, %v3351_v54 }
 0x11e   : > { %v2784_v56 = vadd.f32 %v7857_v46, %v2783_v55  ;;  %v2503_v57 = vpop.f32.mrf.mxu0  ;;  %v3828_v13 = vmax.f32 %v3067_v0, 0.0 }
 0x11f   : > { %v2504_v59 = vadd.f32 %v7857_v46, %v2503_v57  ;;  %v3942_v9 = vmax.f32 %v3352_v63, 0.0 }
 0x120   : > { %v3715_v61 = vmax.f32 %v2784_v56, 0.0 }
 0x121   : > { %v3603_v62 = vmax.f32 %v2504_v59, 0.0 }
 0x122   : > { %v6684_v1 = vpack.c.bf16 %v3715_v61, %v3714_v60 }
 0x123   : > { %v3068_v2 = vpop.f32.mrf.mxu2  ;;  %v6404_v3 = vpack.c.bf16 %v3603_v62, %v3602_v58 }
 0x124   : > { %7549 = vst [vmem:[%s7872_s29 + $0x200] sm:$0xff] %v6684_v1   ;;  %v3069_v4 = vadd.f32 %v7857_v46, %v3068_v2  ;;  %v3353_v7 = vpop.f32.mrf.mxu3 }
 0x125   : > { %v2786_v8 = vpop.f32.mrf.mxu1  ;;  %7493 = vst [vmem:[%s7872_s29 + $0x40] sm:$0xff] %v6404_v3   ;;  %v3354_v11 = vadd.f32 %v7857_v46, %v3353_v7  ;;  %v6266_v7 = vld [vmem:[%s7784_s24 + $0x420] sm:$0xff] }
 0x126   : > { %v3829_v14 = vmax.f32 %v3069_v4, 0.0  ;;  %v2506_v15 = vpop.f32.mrf.mxu0  ;;  %v2787_v21 = vadd.f32 %v7857_v46, %v2786_v8 }
 0x127   : > { %v3943_v16 = vmax.f32 %v3354_v11, 0.0  ;;  %v2507_v20 = vadd.f32 %v7857_v46, %v2506_v15  ;;  %v6153_v11 = vld [vmem:[%s7784_s24 + $0x98] sm:$0xff] }
 0x128   : > { %v6969_v17 = vpack.c.bf16 %v3829_v14, %v3828_v13  ;;  %5980 = vmatmul.msk.bf16.gmra.mxu1 %vm1769_vm2, %v6207_v5  ;;  %6037 = vmatmul.msk.bf16.gmra.mxu2 %vm1769_vm2, %v6264_v6  ;;  %v3716_v28 = vmax.f32 %v2787_v21, 0.0  ;;  %v6209_v6 = vld [vmem:[%s7784_s24 + $0x258] sm:$0xff]  ;;  %v6323_v13 = vld [vmem:[%s7784_s24 + $0x5e8] sm:$0xff] }
 0x129   : > { %5924 = vmatmul.msk.bf16.gmra.mxu0 %vm1769_vm2, %v6151_v10  ;;  %v7254_v18 = vpack.c.bf16 %v3943_v16, %v3942_v9  ;;  %6094 = vmatmul.msk.bf16.gmra.mxu3 %vm1769_vm2, %v6321_v12  ;;  %v3604_v26 = vmax.f32 %v2507_v20, 0.0 }
 0x12a   : > { %7606 = vst [vmem:[%s7872_s29 + $0x3c8] sm:$0xff] %v6969_v17  }
 0x12b   : > { %v3071_v19 = vpop.f32.mrf.mxu2  ;;  %7663 = vst [vmem:[%s7872_s29 + $0x590] sm:$0xff] %v7254_v18  }
 0x12c   : > { %v3356_v22 = vpop.f32.mrf.mxu3  ;;  %v3072_v32 = vadd.f32 %v7857_v46, %v3071_v19 }
 0x12d   : > { %v2788_v23 = vpop.f32.mrf.mxu1  ;;  %v3357_v31 = vadd.f32 %v7857_v46, %v3356_v22 }
 0x12e   : > { %v2789_v24 = vadd.f32 %v7857_v46, %v2788_v23  ;;  %v2508_v25 = vpop.f32.mrf.mxu0  ;;  %v3830_v45 = vmax.f32 %v3072_v32, 0.0 }
 0x12f   : > { %v2509_v27 = vadd.f32 %v7857_v46, %v2508_v25  ;;  %v3944_v41 = vmax.f32 %v3357_v31, 0.0 }
 0x130   : > { %v3717_v29 = vmax.f32 %v2789_v24, 0.0 }
 0x131   : > { %v3605_v30 = vmax.f32 %v2509_v27, 0.0 }
 0x132   : > { %v6689_v33 = vpack.c.bf16 %v3717_v29, %v3716_v28 }
 0x133   : > { %v3073_v34 = vpop.f32.mrf.mxu2  ;;  %v6409_v35 = vpack.c.bf16 %v3605_v30, %v3604_v26 }
 0x134   : > { %7550 = vst [vmem:[%s7872_s29 + $0x208] sm:$0xff] %v6689_v33   ;;  %v3074_v36 = vadd.f32 %v7857_v46, %v3073_v34  ;;  %v3358_v39 = vpop.f32.mrf.mxu3 }
 0x135   : > { %v2791_v40 = vpop.f32.mrf.mxu1  ;;  %7494 = vst [vmem:[%s7872_s29 + $0x48] sm:$0xff] %v6409_v35   ;;  %v3359_v43 = vadd.f32 %v7857_v46, %v3358_v39  ;;  %v6267_v39 = vld [vmem:[%s7784_s24 + $0x428] sm:$0xff] }
 0x136   : > { %v3831_v47 = vmax.f32 %v3074_v36, 0.0  ;;  %v2511_v48 = vpop.f32.mrf.mxu0  ;;  %v2792_v54 = vadd.f32 %v7857_v46, %v2791_v40 }
 0x137   : > { %v3945_v49 = vmax.f32 %v3359_v43, 0.0  ;;  %v2512_v53 = vadd.f32 %v7857_v46, %v2511_v48  ;;  %v6154_v43 = vld [vmem:[%s7784_s24 + $0xa0] sm:$0xff] }
 0x138   : > { %v6974_v50 = vpack.c.bf16 %v3831_v47, %v3830_v45  ;;  %5981 = vmatmul.msk.bf16.gmra.mxu1 %vm1769_vm2, %v6208_v37  ;;  %6038 = vmatmul.msk.bf16.gmra.mxu2 %vm1769_vm2, %v6265_v38  ;;  %v3718_v61 = vmax.f32 %v2792_v54, 0.0  ;;  %v6210_v38 = vld [vmem:[%s7784_s24 + $0x260] sm:$0xff]  ;;  %v6324_v45 = vld [vmem:[%s7784_s24 + $0x5f0] sm:$0xff] }
 0x139   : > { %5925 = vmatmul.msk.bf16.gmra.mxu0 %vm1769_vm2, %v6152_v42  ;;  %v7259_v51 = vpack.c.bf16 %v3945_v49, %v3944_v41  ;;  %6095 = vmatmul.msk.bf16.gmra.mxu3 %vm1769_vm2, %v6322_v44  ;;  %v3606_v59 = vmax.f32 %v2512_v53, 0.0 }
 0x13a   : > { %7607 = vst [vmem:[%s7872_s29 + $0x3d0] sm:$0xff] %v6974_v50  }
 0x13b   : > { %v3076_v52 = vpop.f32.mrf.mxu2  ;;  %7664 = vst [vmem:[%s7872_s29 + $0x598] sm:$0xff] %v7259_v51  }
 0x13c   : > { %v3361_v55 = vpop.f32.mrf.mxu3  ;;  %v3077_v1 = vadd.f32 %v7857_v46, %v3076_v52 }
 0x13d   : > { %v2793_v56 = vpop.f32.mrf.mxu1  ;;  %v3362_v0 = vadd.f32 %v7857_v46, %v3361_v55 }
 0x13e   : > { %v2794_v57 = vadd.f32 %v7857_v46, %v2793_v56  ;;  %v2513_v58 = vpop.f32.mrf.mxu0  ;;  %v3832_v14 = vmax.f32 %v3077_v1, 0.0 }
 0x13f   : > { %v2514_v60 = vadd.f32 %v7857_v46, %v2513_v58  ;;  %v3946_v10 = vmax.f32 %v3362_v0, 0.0 }
 0x140   : > { %v3719_v62 = vmax.f32 %v2794_v57, 0.0 }
 0x141   : > { %v3607_v63 = vmax.f32 %v2514_v60, 0.0 }
 0x142   : > { %v6694_v2 = vpack.c.bf16 %v3719_v62, %v3718_v61 }
 0x143   : > { %v3078_v3 = vpop.f32.mrf.mxu2  ;;  %v6414_v4 = vpack.c.bf16 %v3607_v63, %v3606_v59 }
 0x144   : > { %7551 = vst [vmem:[%s7872_s29 + $0x210] sm:$0xff] %v6694_v2   ;;  %v3079_v5 = vadd.f32 %v7857_v46, %v3078_v3  ;;  %v3363_v8 = vpop.f32.mrf.mxu3 }
 0x145   : > { %v2796_v9 = vpop.f32.mrf.mxu1  ;;  %7495 = vst [vmem:[%s7872_s29 + $0x50] sm:$0xff] %v6414_v4   ;;  %v3364_v12 = vadd.f32 %v7857_v46, %v3363_v8  ;;  %v6268_v8 = vld [vmem:[%s7784_s24 + $0x430] sm:$0xff] }
 0x146   : > { %v3833_v15 = vmax.f32 %v3079_v5, 0.0  ;;  %v2516_v16 = vpop.f32.mrf.mxu0  ;;  %v2797_v22 = vadd.f32 %v7857_v46, %v2796_v9 }
 0x147   : > { %v3947_v17 = vmax.f32 %v3364_v12, 0.0  ;;  %v2517_v21 = vadd.f32 %v7857_v46, %v2516_v16  ;;  %v6155_v12 = vld [vmem:[%s7784_s24 + $0xa8] sm:$0xff] }
 0x148   : > { %v6979_v18 = vpack.c.bf16 %v3833_v15, %v3832_v14  ;;  %5982 = vmatmul.msk.bf16.gmra.mxu1 %vm1769_vm2, %v6209_v6  ;;  %6039 = vmatmul.msk.bf16.gmra.mxu2 %vm1769_vm2, %v6266_v7  ;;  %v3720_v29 = vmax.f32 %v2797_v22, 0.0  ;;  %v6211_v7 = vld [vmem:[%s7784_s24 + $0x268] sm:$0xff]  ;;  %v6325_v15 = vld [vmem:[%s7784_s24 + $0x5f8] sm:$0xff] }
 0x149   : > { %5926 = vmatmul.msk.bf16.gmra.mxu0 %vm1769_vm2, %v6153_v11  ;;  %v7264_v19 = vpack.c.bf16 %v3947_v17, %v3946_v10  ;;  %6096 = vmatmul.msk.bf16.gmra.mxu3 %vm1769_vm2, %v6323_v13  ;;  %v3608_v27 = vmax.f32 %v2517_v21, 0.0  ;;  %v8125_v13 = vld [vmem:[%s8948_s2] ss:$0 sm:$0xff] }
 0x14a   : > { %7608 = vst [vmem:[%s7872_s29 + $0x3d8] sm:$0xff] %v6979_v18  }
 0x14b   : > { %v3081_v20 = vpop.f32.mrf.mxu2  ;;  %7665 = vst [vmem:[%s7872_s29 + $0x5a0] sm:$0xff] %v7264_v19  }
 0x14c   : > { %v3366_v23 = vpop.f32.mrf.mxu3  ;;  %v3082_v33 = vadd.f32 %v7857_v46, %v3081_v20 }
 0x14d   : > { %v2798_v24 = vpop.f32.mrf.mxu1  ;;  %v3367_v32 = vadd.f32 %v7857_v46, %v3366_v23 }
 0x14e   : > { %v2799_v25 = vadd.f32 %v7857_v46, %v2798_v24  ;;  %v2518_v26 = vpop.f32.mrf.mxu0  ;;  %v3834_v47 = vmax.f32 %v3082_v33, 0.0 }
 0x14f   : > { %v2519_v28 = vadd.f32 %v7857_v46, %v2518_v26  ;;  %v3948_v42 = vmax.f32 %v3367_v32, 0.0 }
 0x150   : > { %v3721_v30 = vmax.f32 %v2799_v25, 0.0 }
 0x151   : > { %v3609_v31 = vmax.f32 %v2519_v28, 0.0 }
 0x152   : > { %v6699_v34 = vpack.c.bf16 %v3721_v30, %v3720_v29 }
 0x153   : > { %v3083_v35 = vpop.f32.mrf.mxu2  ;;  %v6419_v36 = vpack.c.bf16 %v3609_v31, %v3608_v27 }
 0x154   : > { %7552 = vst [vmem:[%s7872_s29 + $0x218] sm:$0xff] %v6699_v34   ;;  %v3084_v37 = vadd.f32 %v7857_v46, %v3083_v35  ;;  %v3368_v40 = vpop.f32.mrf.mxu3 }
 0x155   : > { %v2801_v41 = vpop.f32.mrf.mxu1  ;;  %7496 = vst [vmem:[%s7872_s29 + $0x58] sm:$0xff] %v6419_v36   ;;  %v3369_v44 = vadd.f32 %v7857_v46, %v3368_v40  ;;  %v6269_v40 = vld [vmem:[%s7784_s24 + $0x438] sm:$0xff] }
 0x156   : > { %v3835_v48 = vmax.f32 %v3084_v37, 0.0  ;;  %v2521_v49 = vpop.f32.mrf.mxu0  ;;  %v2802_v55 = vadd.f32 %v7857_v46, %v2801_v41 }
 0x157   : > { %v3949_v50 = vmax.f32 %v3369_v44, 0.0  ;;  %v2522_v54 = vadd.f32 %v7857_v46, %v2521_v49  ;;  %v6156_v44 = vld [vmem:[%s7784_s24 + $0xb0] sm:$0xff] }
 0x158   : > { %v6984_v51 = vpack.c.bf16 %v3835_v48, %v3834_v47  ;;  %5983 = vmatmul.msk.bf16.gmra.mxu1 %vm1769_vm2, %v6210_v38  ;;  %6040 = vmatmul.msk.bf16.gmra.mxu2 %vm1769_vm2, %v6267_v39  ;;  %v3722_v62 = vmax.f32 %v2802_v55, 0.0  ;;  %v6212_v39 = vld [vmem:[%s7784_s24 + $0x270] sm:$0xff]  ;;  %v6326_v47 = vld [vmem:[%s7784_s24 + $0x600] sm:$0xff] }
 0x159   : > { %5927 = vmatmul.msk.bf16.gmra.mxu0 %vm1769_vm2, %v6154_v43  ;;  %v7269_v52 = vpack.c.bf16 %v3949_v50, %v3948_v42  ;;  %6097 = vmatmul.msk.bf16.gmra.mxu3 %vm1769_vm2, %v6324_v45  ;;  %v3610_v60 = vmax.f32 %v2522_v54, 0.0 }
 0x15a   : > { %7609 = vst [vmem:[%s7872_s29 + $0x3e0] sm:$0xff] %v6984_v51  }
 0x15b   : > { %v3086_v53 = vpop.f32.mrf.mxu2  ;;  %7666 = vst [vmem:[%s7872_s29 + $0x5a8] sm:$0xff] %v7269_v52  }
 0x15c   : > { %v3371_v56 = vpop.f32.mrf.mxu3  ;;  %v3087_v2 = vadd.f32 %v7857_v46, %v3086_v53 }
 0x15d   : > { %v2803_v57 = vpop.f32.mrf.mxu1  ;;  %v3372_v1 = vadd.f32 %v7857_v46, %v3371_v56 }
 0x15e   : > { %v2804_v58 = vadd.f32 %v7857_v46, %v2803_v57  ;;  %v2523_v59 = vpop.f32.mrf.mxu0  ;;  %v3836_v16 = vmax.f32 %v3087_v2, 0.0 }
 0x15f   : > { %v2524_v61 = vadd.f32 %v7857_v46, %v2523_v59  ;;  %v3950_v11 = vmax.f32 %v3372_v1, 0.0 }
 0x160   : > { %v3723_v63 = vmax.f32 %v2804_v58, 0.0 }
 0x161   : > { %v3611_v0 = vmax.f32 %v2524_v61, 0.0 }
 0x162   : > { %v6704_v3 = vpack.c.bf16 %v3723_v63, %v3722_v62 }
 0x163   : > { %v3088_v4 = vpop.f32.mrf.mxu2  ;;  %v6424_v5 = vpack.c.bf16 %v3611_v0, %v3610_v60 }
 0x164   : > { %7553 = vst [vmem:[%s7872_s29 + $0x220] sm:$0xff] %v6704_v3   ;;  %v3089_v6 = vadd.f32 %v7857_v46, %v3088_v4  ;;  %v3373_v9 = vpop.f32.mrf.mxu3 }
 0x165   : > { %v2806_v10 = vpop.f32.mrf.mxu1  ;;  %7497 = vst [vmem:[%s7872_s29 + $0x60] sm:$0xff] %v6424_v5   ;;  %v3374_v14 = vadd.f32 %v8125_v13, %v3373_v9  ;;  %v6270_v9 = vld [vmem:[%s7784_s24 + $0x440] sm:$0xff] }
 0x166   : > { %v3837_v17 = vmax.f32 %v3089_v6, 0.0  ;;  %v2526_v46 = vpop.f32.mrf.mxu0  ;;  %v2807_v23 = vadd.f32 %v8125_v13, %v2806_v10 }
 0x167   : > { %v3951_v18 = vmax.f32 %v3374_v14, 0.0  ;;  %v2527_v22 = vadd.f32 %v8125_v13, %v2526_v46  ;;  %v6157_v14 = vld [vmem:[%s7784_s24 + $0xb8] sm:$0xff] }
 0x168   : > { %v6989_v19 = vpack.c.bf16 %v3837_v17, %v3836_v16  ;;  %5984 = vmatmul.msk.bf16.gmra.mxu1 %vm1769_vm2, %v6211_v7  ;;  %6041 = vmatmul.msk.bf16.gmra.mxu2 %vm1769_vm2, %v6268_v8  ;;  %v3724_v30 = vmax.f32 %v2807_v23, 0.0  ;;  %v6213_v8 = vld [vmem:[%s7784_s24 + $0x278] sm:$0xff]  ;;  %v6327_v16 = vld [vmem:[%s7784_s24 + $0x608] sm:$0xff] }
 0x169   : > { %5928 = vmatmul.msk.bf16.gmra.mxu0 %vm1769_vm2, %v6155_v12  ;;  %v7274_v20 = vpack.c.bf16 %v3951_v18, %v3950_v11  ;;  %6098 = vmatmul.msk.bf16.gmra.mxu3 %vm1769_vm2, %v6325_v15  ;;  %v3612_v28 = vmax.f32 %v2527_v22, 0.0 }
 0x16a   : > { %7610 = vst [vmem:[%s7872_s29 + $0x3e8] sm:$0xff] %v6989_v19  }
 0x16b   : > { %v3091_v21 = vpop.f32.mrf.mxu2  ;;  %7667 = vst [vmem:[%s7872_s29 + $0x5b0] sm:$0xff] %v7274_v20  }
 0x16c   : > { %v3376_v24 = vpop.f32.mrf.mxu3  ;;  %v3092_v34 = vadd.f32 %v8125_v13, %v3091_v21 }
 0x16d   : > { %v2808_v25 = vpop.f32.mrf.mxu1  ;;  %v3377_v33 = vadd.f32 %v8125_v13, %v3376_v24 }
 0x16e   : > { %v2809_v26 = vadd.f32 %v8125_v13, %v2808_v25  ;;  %v2528_v27 = vpop.f32.mrf.mxu0  ;;  %v3838_v48 = vmax.f32 %v3092_v34, 0.0 }
 0x16f   : > { %v2529_v29 = vadd.f32 %v8125_v13, %v2528_v27  ;;  %v3952_v43 = vmax.f32 %v3377_v33, 0.0 }
 0x170   : > { %v3725_v31 = vmax.f32 %v2809_v26, 0.0 }
 0x171   : > { %v3613_v32 = vmax.f32 %v2529_v29, 0.0 }
 0x172   : > { %v6709_v35 = vpack.c.bf16 %v3725_v31, %v3724_v30 }
 0x173   : > { %v3093_v36 = vpop.f32.mrf.mxu2  ;;  %v6429_v37 = vpack.c.bf16 %v3613_v32, %v3612_v28 }
 0x174   : > { %7554 = vst [vmem:[%s7872_s29 + $0x228] sm:$0xff] %v6709_v35   ;;  %v3094_v38 = vadd.f32 %v8125_v13, %v3093_v36  ;;  %v3378_v41 = vpop.f32.mrf.mxu3 }
 0x175   : > { %v2811_v42 = vpop.f32.mrf.mxu1  ;;  %7498 = vst [vmem:[%s7872_s29 + $0x68] sm:$0xff] %v6429_v37   ;;  %v3379_v45 = vadd.f32 %v8125_v13, %v3378_v41  ;;  %v6271_v41 = vld [vmem:[%s7784_s24 + $0x448] sm:$0xff] }
 0x176   : > { %v3839_v49 = vmax.f32 %v3094_v38, 0.0  ;;  %v2531_v50 = vpop.f32.mrf.mxu0  ;;  %v2812_v56 = vadd.f32 %v8125_v13, %v2811_v42 }
 0x177   : > { %v3953_v51 = vmax.f32 %v3379_v45, 0.0  ;;  %v2532_v55 = vadd.f32 %v8125_v13, %v2531_v50  ;;  %v6158_v45 = vld [vmem:[%s7784_s24 + $0xc0] sm:$0xff] }
 0x178   : > { %v6994_v52 = vpack.c.bf16 %v3839_v49, %v3838_v48  ;;  %5985 = vmatmul.msk.bf16.gmra.mxu1 %vm1769_vm2, %v6212_v39  ;;  %6042 = vmatmul.msk.bf16.gmra.mxu2 %vm1769_vm2, %v6269_v40  ;;  %v3726_v63 = vmax.f32 %v2812_v56, 0.0  ;;  %v6214_v40 = vld [vmem:[%s7784_s24 + $0x280] sm:$0xff]  ;;  %v6328_v48 = vld [vmem:[%s7784_s24 + $0x610] sm:$0xff] }
 0x179   : > { %5929 = vmatmul.msk.bf16.gmra.mxu0 %vm1769_vm2, %v6156_v44  ;;  %v7279_v53 = vpack.c.bf16 %v3953_v51, %v3952_v43  ;;  %6099 = vmatmul.msk.bf16.gmra.mxu3 %vm1769_vm2, %v6326_v47  ;;  %v3614_v61 = vmax.f32 %v2532_v55, 0.0 }
 0x17a   : > { %7611 = vst [vmem:[%s7872_s29 + $0x3f0] sm:$0xff] %v6994_v52  }
 0x17b   : > { %v3096_v54 = vpop.f32.mrf.mxu2  ;;  %7668 = vst [vmem:[%s7872_s29 + $0x5b8] sm:$0xff] %v7279_v53  }
 0x17c   : > { %v3381_v57 = vpop.f32.mrf.mxu3  ;;  %v3097_v3 = vadd.f32 %v8125_v13, %v3096_v54 }
 0x17d   : > { %v2813_v58 = vpop.f32.mrf.mxu1  ;;  %v3382_v2 = vadd.f32 %v8125_v13, %v3381_v57 }
 0x17e   : > { %v2814_v59 = vadd.f32 %v8125_v13, %v2813_v58  ;;  %v2533_v60 = vpop.f32.mrf.mxu0  ;;  %v3840_v17 = vmax.f32 %v3097_v3, 0.0 }
 0x17f   : > { %v2534_v62 = vadd.f32 %v8125_v13, %v2533_v60  ;;  %v3954_v12 = vmax.f32 %v3382_v2, 0.0 }
 0x180   : > { %v3727_v0 = vmax.f32 %v2814_v59, 0.0 }
 0x181   : > { %v3615_v1 = vmax.f32 %v2534_v62, 0.0 }
 0x182   : > { %v6714_v4 = vpack.c.bf16 %v3727_v0, %v3726_v63 }
 0x183   : > { %v3098_v5 = vpop.f32.mrf.mxu2  ;;  %v6434_v6 = vpack.c.bf16 %v3615_v1, %v3614_v61 }
 0x184   : > { %7555 = vst [vmem:[%s7872_s29 + $0x230] sm:$0xff] %v6714_v4   ;;  %v3099_v7 = vadd.f32 %v8125_v13, %v3098_v5  ;;  %v3383_v10 = vpop.f32.mrf.mxu3 }
 0x185   : > { %v2816_v11 = vpop.f32.mrf.mxu1  ;;  %7499 = vst [vmem:[%s7872_s29 + $0x70] sm:$0xff] %v6434_v6   ;;  %v3384_v15 = vadd.f32 %v8125_v13, %v3383_v10  ;;  %v6272_v10 = vld [vmem:[%s7784_s24 + $0x450] sm:$0xff] }
 0x186   : > { %v3841_v46 = vmax.f32 %v3099_v7, 0.0  ;;  %v2536_v18 = vpop.f32.mrf.mxu0  ;;  %v2817_v24 = vadd.f32 %v8125_v13, %v2816_v11 }
 0x187   : > { %v3955_v19 = vmax.f32 %v3384_v15, 0.0  ;;  %v2537_v23 = vadd.f32 %v8125_v13, %v2536_v18  ;;  %v6159_v15 = vld [vmem:[%s7784_s24 + $0xc8] sm:$0xff] }
 0x188   : > { %v6999_v20 = vpack.c.bf16 %v3841_v46, %v3840_v17  ;;  %5986 = vmatmul.msk.bf16.gmra.mxu1 %vm1769_vm2, %v6213_v8  ;;  %6043 = vmatmul.msk.bf16.gmra.mxu2 %vm1769_vm2, %v6270_v9  ;;  %v3728_v31 = vmax.f32 %v2817_v24, 0.0  ;;  %v6215_v9 = vld [vmem:[%s7784_s24 + $0x288] sm:$0xff]  ;;  %v6329_v17 = vld [vmem:[%s7784_s24 + $0x618] sm:$0xff] }
 0x189   : > { %5930 = vmatmul.msk.bf16.gmra.mxu0 %vm1769_vm2, %v6157_v14  ;;  %v7284_v21 = vpack.c.bf16 %v3955_v19, %v3954_v12  ;;  %6100 = vmatmul.msk.bf16.gmra.mxu3 %vm1769_vm2, %v6327_v16  ;;  %v3616_v29 = vmax.f32 %v2537_v23, 0.0 }
 0x18a   : > { %7612 = vst [vmem:[%s7872_s29 + $0x3f8] sm:$0xff] %v6999_v20  }
 0x18b   : > { %v3101_v22 = vpop.f32.mrf.mxu2  ;;  %7669 = vst [vmem:[%s7872_s29 + $0x5c0] sm:$0xff] %v7284_v21  }
 0x18c   : > { %v3386_v25 = vpop.f32.mrf.mxu3  ;;  %v3102_v35 = vadd.f32 %v8125_v13, %v3101_v22 }
 0x18d   : > { %v2818_v26 = vpop.f32.mrf.mxu1  ;;  %v3387_v34 = vadd.f32 %v8125_v13, %v3386_v25 }
 0x18e   : > { %v2819_v27 = vadd.f32 %v8125_v13, %v2818_v26  ;;  %v2538_v28 = vpop.f32.mrf.mxu0  ;;  %v3842_v49 = vmax.f32 %v3102_v35, 0.0 }
 0x18f   : > { %v2539_v30 = vadd.f32 %v8125_v13, %v2538_v28  ;;  %v3956_v44 = vmax.f32 %v3387_v34, 0.0 }
 0x190   : > { %v3729_v32 = vmax.f32 %v2819_v27, 0.0 }
 0x191   : > { %v3617_v33 = vmax.f32 %v2539_v30, 0.0 }
 0x192   : > { %v6719_v36 = vpack.c.bf16 %v3729_v32, %v3728_v31 }
 0x193   : > { %v3103_v37 = vpop.f32.mrf.mxu2  ;;  %v6439_v38 = vpack.c.bf16 %v3617_v33, %v3616_v29 }
 0x194   : > { %7556 = vst [vmem:[%s7872_s29 + $0x238] sm:$0xff] %v6719_v36   ;;  %v3104_v39 = vadd.f32 %v8125_v13, %v3103_v37  ;;  %v3388_v42 = vpop.f32.mrf.mxu3 }
 0x195   : > { %v2821_v43 = vpop.f32.mrf.mxu1  ;;  %7500 = vst [vmem:[%s7872_s29 + $0x78] sm:$0xff] %v6439_v38   ;;  %v3389_v47 = vadd.f32 %v8125_v13, %v3388_v42  ;;  %v6273_v42 = vld [vmem:[%s7784_s24 + $0x458] sm:$0xff] }
 0x196   : > { %v3843_v50 = vmax.f32 %v3104_v39, 0.0  ;;  %v2541_v51 = vpop.f32.mrf.mxu0  ;;  %v2822_v57 = vadd.f32 %v8125_v13, %v2821_v43 }
 0x197   : > { %v3957_v52 = vmax.f32 %v3389_v47, 0.0  ;;  %v2542_v56 = vadd.f32 %v8125_v13, %v2541_v51  ;;  %v6160_v47 = vld [vmem:[%s7784_s24 + $0xd0] sm:$0xff] }
 0x198   : > { %v7004_v53 = vpack.c.bf16 %v3843_v50, %v3842_v49  ;;  %5987 = vmatmul.msk.bf16.gmra.mxu1 %vm1769_vm2, %v6214_v40  ;;  %6044 = vmatmul.msk.bf16.gmra.mxu2 %vm1769_vm2, %v6271_v41  ;;  %v3730_v0 = vmax.f32 %v2822_v57, 0.0  ;;  %v6216_v41 = vld [vmem:[%s7784_s24 + $0x290] sm:$0xff]  ;;  %v6330_v49 = vld [vmem:[%s7784_s24 + $0x620] sm:$0xff] }
 0x199   : > { %5931 = vmatmul.msk.bf16.gmra.mxu0 %vm1769_vm2, %v6158_v45  ;;  %v7289_v54 = vpack.c.bf16 %v3957_v52, %v3956_v44  ;;  %6101 = vmatmul.msk.bf16.gmra.mxu3 %vm1769_vm2, %v6328_v48  ;;  %v3618_v62 = vmax.f32 %v2542_v56, 0.0 }
 0x19a   : > { %7613 = vst [vmem:[%s7872_s29 + $0x400] sm:$0xff] %v7004_v53  }
 0x19b   : > { %v3106_v55 = vpop.f32.mrf.mxu2  ;;  %7670 = vst [vmem:[%s7872_s29 + $0x5c8] sm:$0xff] %v7289_v54  }
 0x19c   : > { %v3391_v58 = vpop.f32.mrf.mxu3  ;;  %v3107_v4 = vadd.f32 %v8125_v13, %v3106_v55 }
 0x19d   : > { %v2823_v59 = vpop.f32.mrf.mxu1  ;;  %v3392_v3 = vadd.f32 %v8125_v13, %v3391_v58 }
 0x19e   : > { %v2824_v60 = vadd.f32 %v8125_v13, %v2823_v59  ;;  %v2543_v61 = vpop.f32.mrf.mxu0  ;;  %v3844_v46 = vmax.f32 %v3107_v4, 0.0 }
 0x19f   : > { %v2544_v63 = vadd.f32 %v8125_v13, %v2543_v61  ;;  %v3958_v14 = vmax.f32 %v3392_v3, 0.0 }
 0x1a0   : > { %v3731_v1 = vmax.f32 %v2824_v60, 0.0 }
 0x1a1   : > { %v3619_v2 = vmax.f32 %v2544_v63, 0.0 }
 0x1a2   : > { %v6724_v5 = vpack.c.bf16 %v3731_v1, %v3730_v0 }
 0x1a3   : > { %v3108_v6 = vpop.f32.mrf.mxu2  ;;  %v6444_v7 = vpack.c.bf16 %v3619_v2, %v3618_v62 }
 0x1a4   : > { %7557 = vst [vmem:[%s7872_s29 + $0x240] sm:$0xff] %v6724_v5   ;;  %v3109_v8 = vadd.f32 %v8125_v13, %v3108_v6  ;;  %v3393_v11 = vpop.f32.mrf.mxu3 }
 0x1a5   : > { %v2826_v12 = vpop.f32.mrf.mxu1  ;;  %7501 = vst [vmem:[%s7872_s29 + $0x80] sm:$0xff] %v6444_v7   ;;  %v3394_v16 = vadd.f32 %v8125_v13, %v3393_v11  ;;  %v6274_v11 = vld [vmem:[%s7784_s24 + $0x460] sm:$0xff] }
 0x1a6   : > { %v3845_v18 = vmax.f32 %v3109_v8, 0.0  ;;  %v2546_v19 = vpop.f32.mrf.mxu0  ;;  %v2827_v25 = vadd.f32 %v8125_v13, %v2826_v12 }
 0x1a7   : > { %v3959_v20 = vmax.f32 %v3394_v16, 0.0  ;;  %v2547_v24 = vadd.f32 %v8125_v13, %v2546_v19  ;;  %v6161_v16 = vld [vmem:[%s7784_s24 + $0xd8] sm:$0xff] }
 0x1a8   : > { %v7009_v21 = vpack.c.bf16 %v3845_v18, %v3844_v46  ;;  %5988 = vmatmul.msk.bf16.gmra.mxu1 %vm1769_vm2, %v6215_v9  ;;  %6045 = vmatmul.msk.bf16.gmra.mxu2 %vm1769_vm2, %v6272_v10  ;;  %v3732_v32 = vmax.f32 %v2827_v25, 0.0  ;;  %v6217_v10 = vld [vmem:[%s7784_s24 + $0x298] sm:$0xff]  ;;  %v6331_v46 = vld [vmem:[%s7784_s24 + $0x628] sm:$0xff] }
 0x1a9   : > { %5932 = vmatmul.msk.bf16.gmra.mxu0 %vm1769_vm2, %v6159_v15  ;;  %v7294_v22 = vpack.c.bf16 %v3959_v20, %v3958_v14  ;;  %6102 = vmatmul.msk.bf16.gmra.mxu3 %vm1769_vm2, %v6329_v17  ;;  %v3620_v30 = vmax.f32 %v2547_v24, 0.0 }
 0x1aa   : > { %7614 = vst [vmem:[%s7872_s29 + $0x408] sm:$0xff] %v7009_v21  }
 0x1ab   : > { %v3111_v23 = vpop.f32.mrf.mxu2  ;;  %7671 = vst [vmem:[%s7872_s29 + $0x5d0] sm:$0xff] %v7294_v22  }
 0x1ac   : > { %v3396_v26 = vpop.f32.mrf.mxu3  ;;  %v3112_v36 = vadd.f32 %v8125_v13, %v3111_v23 }
 0x1ad   : > { %v2828_v27 = vpop.f32.mrf.mxu1  ;;  %v3397_v35 = vadd.f32 %v8125_v13, %v3396_v26 }
 0x1ae   : > { %v2829_v28 = vadd.f32 %v8125_v13, %v2828_v27  ;;  %v2548_v29 = vpop.f32.mrf.mxu0  ;;  %v3846_v50 = vmax.f32 %v3112_v36, 0.0 }
 0x1af   : > { %v2549_v31 = vadd.f32 %v8125_v13, %v2548_v29  ;;  %v3960_v45 = vmax.f32 %v3397_v35, 0.0 }
 0x1b0   : > { %v3733_v33 = vmax.f32 %v2829_v28, 0.0 }
 0x1b1   : > { %v3621_v34 = vmax.f32 %v2549_v31, 0.0 }
 0x1b2   : > { %v6729_v37 = vpack.c.bf16 %v3733_v33, %v3732_v32 }
 0x1b3   : > { %v3113_v38 = vpop.f32.mrf.mxu2  ;;  %v6449_v39 = vpack.c.bf16 %v3621_v34, %v3620_v30 }
 0x1b4   : > { %7558 = vst [vmem:[%s7872_s29 + $0x248] sm:$0xff] %v6729_v37   ;;  %v3114_v40 = vadd.f32 %v8125_v13, %v3113_v38  ;;  %v3398_v43 = vpop.f32.mrf.mxu3 }
 0x1b5   : > { %v2831_v44 = vpop.f32.mrf.mxu1  ;;  %7502 = vst [vmem:[%s7872_s29 + $0x88] sm:$0xff] %v6449_v39   ;;  %v3399_v48 = vadd.f32 %v8125_v13, %v3398_v43  ;;  %v6275_v43 = vld [vmem:[%s7784_s24 + $0x468] sm:$0xff] }
 0x1b6   : > { %v3847_v51 = vmax.f32 %v3114_v40, 0.0  ;;  %v2551_v52 = vpop.f32.mrf.mxu0  ;;  %v2832_v58 = vadd.f32 %v8125_v13, %v2831_v44 }
 0x1b7   : > { %v3961_v53 = vmax.f32 %v3399_v48, 0.0  ;;  %v2552_v57 = vadd.f32 %v8125_v13, %v2551_v52  ;;  %v6162_v48 = vld [vmem:[%s7784_s24 + $0xe0] sm:$0xff] }
 0x1b8   : > { %v7014_v54 = vpack.c.bf16 %v3847_v51, %v3846_v50  ;;  %5989 = vmatmul.msk.bf16.gmra.mxu1 %vm1769_vm2, %v6216_v41  ;;  %6046 = vmatmul.msk.bf16.gmra.mxu2 %vm1769_vm2, %v6273_v42  ;;  %v3734_v1 = vmax.f32 %v2832_v58, 0.0  ;;  %v6218_v42 = vld [vmem:[%s7784_s24 + $0x2a0] sm:$0xff]  ;;  %v6332_v50 = vld [vmem:[%s7784_s24 + $0x630] sm:$0xff] }
 0x1b9   : > { %5933 = vmatmul.msk.bf16.gmra.mxu0 %vm1769_vm2, %v6160_v47  ;;  %v7299_v55 = vpack.c.bf16 %v3961_v53, %v3960_v45  ;;  %6103 = vmatmul.msk.bf16.gmra.mxu3 %vm1769_vm2, %v6330_v49  ;;  %v3622_v63 = vmax.f32 %v2552_v57, 0.0 }
 0x1ba   : > { %7615 = vst [vmem:[%s7872_s29 + $0x410] sm:$0xff] %v7014_v54  }
 0x1bb   : > { %v3116_v56 = vpop.f32.mrf.mxu2  ;;  %7672 = vst [vmem:[%s7872_s29 + $0x5d8] sm:$0xff] %v7299_v55  }
 0x1bc   : > { %v3401_v59 = vpop.f32.mrf.mxu3  ;;  %v3117_v5 = vadd.f32 %v8125_v13, %v3116_v56 }
 0x1bd   : > { %v2833_v60 = vpop.f32.mrf.mxu1  ;;  %v3402_v4 = vadd.f32 %v8125_v13, %v3401_v59 }
 0x1be   : > { %v2834_v61 = vadd.f32 %v8125_v13, %v2833_v60  ;;  %v2553_v62 = vpop.f32.mrf.mxu0  ;;  %v3848_v18 = vmax.f32 %v3117_v5, 0.0 }
 0x1bf   : > { %v2554_v0 = vadd.f32 %v8125_v13, %v2553_v62  ;;  %v3962_v15 = vmax.f32 %v3402_v4, 0.0 }
 0x1c0   : > { %v3735_v2 = vmax.f32 %v2834_v61, 0.0 }
 0x1c1   : > { %v3623_v3 = vmax.f32 %v2554_v0, 0.0 }
 0x1c2   : > { %v6734_v6 = vpack.c.bf16 %v3735_v2, %v3734_v1 }
 0x1c3   : > { %v3118_v7 = vpop.f32.mrf.mxu2  ;;  %v6454_v8 = vpack.c.bf16 %v3623_v3, %v3622_v63 }
 0x1c4   : > { %7559 = vst [vmem:[%s7872_s29 + $0x250] sm:$0xff] %v6734_v6   ;;  %v3119_v9 = vadd.f32 %v8125_v13, %v3118_v7  ;;  %v3403_v12 = vpop.f32.mrf.mxu3 }
 0x1c5   : > { %v2836_v14 = vpop.f32.mrf.mxu1  ;;  %7503 = vst [vmem:[%s7872_s29 + $0x90] sm:$0xff] %v6454_v8   ;;  %v3404_v17 = vadd.f32 %v8125_v13, %v3403_v12  ;;  %v6276_v12 = vld [vmem:[%s7784_s24 + $0x470] sm:$0xff] }
 0x1c6   : > { %v3849_v19 = vmax.f32 %v3119_v9, 0.0  ;;  %v2556_v20 = vpop.f32.mrf.mxu0  ;;  %v2837_v26 = vadd.f32 %v8125_v13, %v2836_v14 }
 0x1c7   : > { %v3963_v21 = vmax.f32 %v3404_v17, 0.0  ;;  %v2557_v25 = vadd.f32 %v8125_v13, %v2556_v20  ;;  %v6163_v17 = vld [vmem:[%s7784_s24 + $0xe8] sm:$0xff] }
 0x1c8   : > { %v7019_v22 = vpack.c.bf16 %v3849_v19, %v3848_v18  ;;  %5990 = vmatmul.msk.bf16.gmra.mxu1 %vm1769_vm2, %v6217_v10  ;;  %6047 = vmatmul.msk.bf16.gmra.mxu2 %vm1769_vm2, %v6274_v11  ;;  %v3736_v33 = vmax.f32 %v2837_v26, 0.0  ;;  %v6219_v11 = vld [vmem:[%s7784_s24 + $0x2a8] sm:$0xff]  ;;  %v6333_v18 = vld [vmem:[%s7784_s24 + $0x638] sm:$0xff] }
 0x1c9   : > { %5934 = vmatmul.msk.bf16.gmra.mxu0 %vm1769_vm2, %v6161_v16  ;;  %v7304_v23 = vpack.c.bf16 %v3963_v21, %v3962_v15  ;;  %6104 = vmatmul.msk.bf16.gmra.mxu3 %vm1769_vm2, %v6331_v46  ;;  %v3624_v31 = vmax.f32 %v2557_v25, 0.0 }
 0x1ca   : > { %7616 = vst [vmem:[%s7872_s29 + $0x418] sm:$0xff] %v7019_v22  }
 0x1cb   : > { %v3121_v24 = vpop.f32.mrf.mxu2  ;;  %7673 = vst [vmem:[%s7872_s29 + $0x5e0] sm:$0xff] %v7304_v23  }
 0x1cc   : > { %v3406_v27 = vpop.f32.mrf.mxu3  ;;  %v3122_v37 = vadd.f32 %v8125_v13, %v3121_v24 }
 0x1cd   : > { %v2838_v28 = vpop.f32.mrf.mxu1  ;;  %v3407_v36 = vadd.f32 %v8125_v13, %v3406_v27 }
 0x1ce   : > { %v2839_v29 = vadd.f32 %v8125_v13, %v2838_v28  ;;  %v2558_v30 = vpop.f32.mrf.mxu0  ;;  %v3850_v51 = vmax.f32 %v3122_v37, 0.0 }
 0x1cf   : > { %v2559_v32 = vadd.f32 %v8125_v13, %v2558_v30  ;;  %v3964_v47 = vmax.f32 %v3407_v36, 0.0 }
 0x1d0   : > { %v3737_v34 = vmax.f32 %v2839_v29, 0.0 }
 0x1d1   : > { %v3625_v35 = vmax.f32 %v2559_v32, 0.0 }
 0x1d2   : > { %v6739_v38 = vpack.c.bf16 %v3737_v34, %v3736_v33 }
 0x1d3   : > { %v3123_v39 = vpop.f32.mrf.mxu2  ;;  %v6459_v40 = vpack.c.bf16 %v3625_v35, %v3624_v31 }
 0x1d4   : > { %7560 = vst [vmem:[%s7872_s29 + $0x258] sm:$0xff] %v6739_v38   ;;  %v3124_v41 = vadd.f32 %v8125_v13, %v3123_v39  ;;  %v3408_v44 = vpop.f32.mrf.mxu3 }
 0x1d5   : > { %v2841_v45 = vpop.f32.mrf.mxu1  ;;  %7504 = vst [vmem:[%s7872_s29 + $0x98] sm:$0xff] %v6459_v40   ;;  %v3409_v49 = vadd.f32 %v8125_v13, %v3408_v44  ;;  %v6277_v44 = vld [vmem:[%s7784_s24 + $0x478] sm:$0xff] }
 0x1d6   : > { %v3851_v52 = vmax.f32 %v3124_v41, 0.0  ;;  %v2561_v53 = vpop.f32.mrf.mxu0  ;;  %v2842_v59 = vadd.f32 %v8125_v13, %v2841_v45 }
 0x1d7   : > { %v3965_v54 = vmax.f32 %v3409_v49, 0.0  ;;  %v2562_v58 = vadd.f32 %v8125_v13, %v2561_v53  ;;  %v6164_v49 = vld [vmem:[%s7784_s24 + $0xf0] sm:$0xff] }
 0x1d8   : > { %v7024_v55 = vpack.c.bf16 %v3851_v52, %v3850_v51  ;;  %5991 = vmatmul.msk.bf16.gmra.mxu1 %vm1769_vm2, %v6218_v42  ;;  %6048 = vmatmul.msk.bf16.gmra.mxu2 %vm1769_vm2, %v6275_v43  ;;  %v3738_v2 = vmax.f32 %v2842_v59, 0.0  ;;  %v6220_v43 = vld [vmem:[%s7784_s24 + $0x2b0] sm:$0xff]  ;;  %v6334_v51 = vld [vmem:[%s7784_s24 + $0x640] sm:$0xff] }
 0x1d9   : > { %5935 = vmatmul.msk.bf16.gmra.mxu0 %vm1769_vm2, %v6162_v48  ;;  %v7309_v56 = vpack.c.bf16 %v3965_v54, %v3964_v47  ;;  %6105 = vmatmul.msk.bf16.gmra.mxu3 %vm1769_vm2, %v6332_v50  ;;  %v3626_v0 = vmax.f32 %v2562_v58, 0.0 }
 0x1da   : > { %7617 = vst [vmem:[%s7872_s29 + $0x420] sm:$0xff] %v7024_v55  }
 0x1db   : > { %v3126_v57 = vpop.f32.mrf.mxu2  ;;  %7674 = vst [vmem:[%s7872_s29 + $0x5e8] sm:$0xff] %v7309_v56  }
 0x1dc   : > { %v3411_v60 = vpop.f32.mrf.mxu3  ;;  %v3127_v6 = vadd.f32 %v8125_v13, %v3126_v57 }
 0x1dd   : > { %v2843_v61 = vpop.f32.mrf.mxu1  ;;  %v3412_v5 = vadd.f32 %v8125_v13, %v3411_v60 }
 0x1de   : > { %v2844_v62 = vadd.f32 %v8125_v13, %v2843_v61  ;;  %v2563_v63 = vpop.f32.mrf.mxu0  ;;  %v3852_v19 = vmax.f32 %v3127_v6, 0.0 }
 0x1df   : > { %v2564_v1 = vadd.f32 %v8125_v13, %v2563_v63  ;;  %v3966_v16 = vmax.f32 %v3412_v5, 0.0 }
 0x1e0   : > { %v3739_v3 = vmax.f32 %v2844_v62, 0.0 }
 0x1e1   : > { %v3627_v4 = vmax.f32 %v2564_v1, 0.0 }
 0x1e2   : > { %v6744_v7 = vpack.c.bf16 %v3739_v3, %v3738_v2 }
 0x1e3   : > { %v3128_v8 = vpop.f32.mrf.mxu2  ;;  %v6464_v9 = vpack.c.bf16 %v3627_v4, %v3626_v0 }
 0x1e4   : > { %7561 = vst [vmem:[%s7872_s29 + $0x260] sm:$0xff] %v6744_v7   ;;  %v3129_v10 = vadd.f32 %v8125_v13, %v3128_v8  ;;  %v3413_v14 = vpop.f32.mrf.mxu3 }
 0x1e5   : > { %v2846_v15 = vpop.f32.mrf.mxu1  ;;  %7505 = vst [vmem:[%s7872_s29 + $0xa0] sm:$0xff] %v6464_v9   ;;  %v3414_v46 = vadd.f32 %v8125_v13, %v3413_v14  ;;  %v6278_v14 = vld [vmem:[%s7784_s24 + $0x480] sm:$0xff] }
 0x1e6   : > { %v3853_v20 = vmax.f32 %v3129_v10, 0.0  ;;  %v2566_v21 = vpop.f32.mrf.mxu0  ;;  %v2847_v27 = vadd.f32 %v8125_v13, %v2846_v15 }
 0x1e7   : > { %v3967_v22 = vmax.f32 %v3414_v46, 0.0  ;;  %v2567_v26 = vadd.f32 %v8125_v13, %v2566_v21  ;;  %v6165_v46 = vld [vmem:[%s7784_s24 + $0xf8] sm:$0xff] }
 0x1e8   : > { %v7029_v23 = vpack.c.bf16 %v3853_v20, %v3852_v19  ;;  %5992 = vmatmul.msk.bf16.gmra.mxu1 %vm1769_vm2, %v6219_v11  ;;  %6049 = vmatmul.msk.bf16.gmra.mxu2 %vm1769_vm2, %v6276_v12  ;;  %v3740_v34 = vmax.f32 %v2847_v27, 0.0  ;;  %v6221_v12 = vld [vmem:[%s7784_s24 + $0x2b8] sm:$0xff]  ;;  %v6335_v19 = vld [vmem:[%s7784_s24 + $0x648] sm:$0xff] }
 0x1e9   : > { %5936 = vmatmul.msk.bf16.gmra.mxu0 %vm1769_vm2, %v6163_v17  ;;  %v7314_v24 = vpack.c.bf16 %v3967_v22, %v3966_v16  ;;  %6106 = vmatmul.msk.bf16.gmra.mxu3 %vm1769_vm2, %v6333_v18  ;;  %v3628_v32 = vmax.f32 %v2567_v26, 0.0 }
 0x1ea   : > { %7618 = vst [vmem:[%s7872_s29 + $0x428] sm:$0xff] %v7029_v23  }
 0x1eb   : > { %v3131_v25 = vpop.f32.mrf.mxu2  ;;  %7675 = vst [vmem:[%s7872_s29 + $0x5f0] sm:$0xff] %v7314_v24  }
 0x1ec   : > { %v3416_v28 = vpop.f32.mrf.mxu3  ;;  %v3132_v38 = vadd.f32 %v8125_v13, %v3131_v25 }
 0x1ed   : > { %v2848_v29 = vpop.f32.mrf.mxu1  ;;  %v3417_v37 = vadd.f32 %v8125_v13, %v3416_v28 }
 0x1ee   : > { %v2849_v30 = vadd.f32 %v8125_v13, %v2848_v29  ;;  %v2568_v31 = vpop.f32.mrf.mxu0  ;;  %v3854_v52 = vmax.f32 %v3132_v38, 0.0 }
 0x1ef   : > { %v2569_v33 = vadd.f32 %v8125_v13, %v2568_v31  ;;  %v3968_v48 = vmax.f32 %v3417_v37, 0.0 }
 0x1f0   : > { %v3741_v35 = vmax.f32 %v2849_v30, 0.0 }
 0x1f1   : > { %v3629_v36 = vmax.f32 %v2569_v33, 0.0 }
 0x1f2   : > { %v6749_v39 = vpack.c.bf16 %v3741_v35, %v3740_v34 }
 0x1f3   : > { %v3133_v40 = vpop.f32.mrf.mxu2  ;;  %v6469_v41 = vpack.c.bf16 %v3629_v36, %v3628_v32 }
 0x1f4   : > { %7562 = vst [vmem:[%s7872_s29 + $0x268] sm:$0xff] %v6749_v39   ;;  %v3134_v42 = vadd.f32 %v8125_v13, %v3133_v40  ;;  %v3418_v45 = vpop.f32.mrf.mxu3 }
 0x1f5   : > { %v2851_v47 = vpop.f32.mrf.mxu1  ;;  %7506 = vst [vmem:[%s7872_s29 + $0xa8] sm:$0xff] %v6469_v41   ;;  %v3419_v50 = vadd.f32 %v8125_v13, %v3418_v45  ;;  %v6279_v45 = vld [vmem:[%s7784_s24 + $0x488] sm:$0xff] }
 0x1f6   : > { %v3855_v53 = vmax.f32 %v3134_v42, 0.0  ;;  %v2571_v54 = vpop.f32.mrf.mxu0  ;;  %v2852_v60 = vadd.f32 %v8125_v13, %v2851_v47 }
 0x1f7   : > { %v3969_v55 = vmax.f32 %v3419_v50, 0.0  ;;  %v2572_v59 = vadd.f32 %v8125_v13, %v2571_v54  ;;  %v6166_v50 = vld [vmem:[%s7784_s24 + $0x100] sm:$0xff] }
 0x1f8   : > { %v7034_v56 = vpack.c.bf16 %v3855_v53, %v3854_v52  ;;  %5993 = vmatmul.msk.bf16.gmra.mxu1 %vm1769_vm2, %v6220_v43  ;;  %6050 = vmatmul.msk.bf16.gmra.mxu2 %vm1769_vm2, %v6277_v44  ;;  %v3742_v3 = vmax.f32 %v2852_v60, 0.0  ;;  %v6222_v44 = vld [vmem:[%s7784_s24 + $0x2c0] sm:$0xff]  ;;  %v6336_v52 = vld [vmem:[%s7784_s24 + $0x650] sm:$0xff] }
 0x1f9   : > { %5937 = vmatmul.msk.bf16.gmra.mxu0 %vm1769_vm2, %v6164_v49  ;;  %v7319_v57 = vpack.c.bf16 %v3969_v55, %v3968_v48  ;;  %6107 = vmatmul.msk.bf16.gmra.mxu3 %vm1769_vm2, %v6334_v51  ;;  %v3630_v1 = vmax.f32 %v2572_v59, 0.0 }
 0x1fa   : > { %7619 = vst [vmem:[%s7872_s29 + $0x430] sm:$0xff] %v7034_v56  }
 0x1fb   : > { %v3136_v58 = vpop.f32.mrf.mxu2  ;;  %7676 = vst [vmem:[%s7872_s29 + $0x5f8] sm:$0xff] %v7319_v57  }
 0x1fc   : > { %v3421_v61 = vpop.f32.mrf.mxu3  ;;  %v3137_v7 = vadd.f32 %v8125_v13, %v3136_v58 }
 0x1fd   : > { %v2853_v62 = vpop.f32.mrf.mxu1  ;;  %v3422_v6 = vadd.f32 %v8125_v13, %v3421_v61 }
 0x1fe   : > { %v2854_v63 = vadd.f32 %v8125_v13, %v2853_v62  ;;  %v2573_v0 = vpop.f32.mrf.mxu0  ;;  %v3856_v20 = vmax.f32 %v3137_v7, 0.0 }
 0x1ff   : > { %v2574_v2 = vadd.f32 %v8125_v13, %v2573_v0  ;;  %v3970_v17 = vmax.f32 %v3422_v6, 0.0 }
 0x200   : > { %v3743_v4 = vmax.f32 %v2854_v63, 0.0 }
 0x201   : > { %v3631_v5 = vmax.f32 %v2574_v2, 0.0 }
 0x202   : > { %v6754_v8 = vpack.c.bf16 %v3743_v4, %v3742_v3 }
 0x203   : > { %v3138_v9 = vpop.f32.mrf.mxu2  ;;  %v6474_v10 = vpack.c.bf16 %v3631_v5, %v3630_v1 }
 0x204   : > { %7563 = vst [vmem:[%s7872_s29 + $0x270] sm:$0xff] %v6754_v8   ;;  %v3139_v11 = vadd.f32 %v8125_v13, %v3138_v9  ;;  %v3423_v15 = vpop.f32.mrf.mxu3 }
 0x205   : > { %v2856_v16 = vpop.f32.mrf.mxu1  ;;  %7507 = vst [vmem:[%s7872_s29 + $0xb0] sm:$0xff] %v6474_v10   ;;  %v3424_v18 = vadd.f32 %v8125_v13, %v3423_v15  ;;  %v6280_v15 = vld [vmem:[%s7784_s24 + $0x490] sm:$0xff] }
 0x206   : > { %v3857_v21 = vmax.f32 %v3139_v11, 0.0  ;;  %v2576_v22 = vpop.f32.mrf.mxu0  ;;  %v2857_v28 = vadd.f32 %v8125_v13, %v2856_v16 }
 0x207   : > { %v3971_v23 = vmax.f32 %v3424_v18, 0.0  ;;  %v2577_v27 = vadd.f32 %v8125_v13, %v2576_v22  ;;  %v6167_v18 = vld [vmem:[%s7784_s24 + $0x108] sm:$0xff] }
 0x208   : > { %v7039_v24 = vpack.c.bf16 %v3857_v21, %v3856_v20  ;;  %5994 = vmatmul.msk.bf16.gmra.mxu1 %vm1769_vm2, %v6221_v12  ;;  %6051 = vmatmul.msk.bf16.gmra.mxu2 %vm1769_vm2, %v6278_v14  ;;  %v3744_v35 = vmax.f32 %v2857_v28, 0.0  ;;  %v6223_v14 = vld [vmem:[%s7784_s24 + $0x2c8] sm:$0xff]  ;;  %v6337_v20 = vld [vmem:[%s7784_s24 + $0x658] sm:$0xff] }
 0x209   : > { %5938 = vmatmul.msk.bf16.gmra.mxu0 %vm1769_vm2, %v6165_v46  ;;  %v7324_v25 = vpack.c.bf16 %v3971_v23, %v3970_v17  ;;  %6108 = vmatmul.msk.bf16.gmra.mxu3 %vm1769_vm2, %v6335_v19  ;;  %v3632_v33 = vmax.f32 %v2577_v27, 0.0 }
 0x20a   : > { %7620 = vst [vmem:[%s7872_s29 + $0x438] sm:$0xff] %v7039_v24  }
 0x20b   : > { %v3141_v26 = vpop.f32.mrf.mxu2  ;;  %7677 = vst [vmem:[%s7872_s29 + $0x600] sm:$0xff] %v7324_v25  }
 0x20c   : > { %v3426_v29 = vpop.f32.mrf.mxu3  ;;  %v3142_v39 = vadd.f32 %v8125_v13, %v3141_v26 }
 0x20d   : > { %v2858_v30 = vpop.f32.mrf.mxu1  ;;  %v3427_v38 = vadd.f32 %v8125_v13, %v3426_v29 }
 0x20e   : > { %v2859_v31 = vadd.f32 %v8125_v13, %v2858_v30  ;;  %v2578_v32 = vpop.f32.mrf.mxu0  ;;  %v3858_v53 = vmax.f32 %v3142_v39, 0.0 }
 0x20f   : > { %v2579_v34 = vadd.f32 %v8125_v13, %v2578_v32  ;;  %v3972_v49 = vmax.f32 %v3427_v38, 0.0 }
 0x210   : > { %v3745_v36 = vmax.f32 %v2859_v31, 0.0 }
 0x211   : > { %v3633_v37 = vmax.f32 %v2579_v34, 0.0 }
 0x212   : > { %v6759_v40 = vpack.c.bf16 %v3745_v36, %v3744_v35 }
 0x213   : > { %v3143_v41 = vpop.f32.mrf.mxu2  ;;  %v6479_v42 = vpack.c.bf16 %v3633_v37, %v3632_v33 }
 0x214   : > { %7564 = vst [vmem:[%s7872_s29 + $0x278] sm:$0xff] %v6759_v40   ;;  %v3144_v43 = vadd.f32 %v8125_v13, %v3143_v41  ;;  %v3428_v47 = vpop.f32.mrf.mxu3 }
 0x215   : > { %v2861_v48 = vpop.f32.mrf.mxu1  ;;  %7508 = vst [vmem:[%s7872_s29 + $0xb8] sm:$0xff] %v6479_v42   ;;  %v3429_v51 = vadd.f32 %v8125_v13, %v3428_v47  ;;  %v6224_v47 = vld [vmem:[%s7784_s24 + $0x2d0] sm:$0xff] }
 0x216   : > { %v3859_v54 = vmax.f32 %v3144_v43, 0.0  ;;  %v2581_v55 = vpop.f32.mrf.mxu0  ;;  %v2862_v61 = vadd.f32 %v8125_v13, %v2861_v48  ;;  %v6281_v48 = vld [vmem:[%s7784_s24 + $0x498] sm:$0xff] }
 0x217   : > { %v3973_v56 = vmax.f32 %v3429_v51, 0.0  ;;  %v2582_v60 = vadd.f32 %v8125_v13, %v2581_v55 }
 0x218   : > { %v7044_v57 = vpack.c.bf16 %v3859_v54, %v3858_v53  ;;  %5995 = vmatmul.msk.bf16.gmra.mxu1 %vm1769_vm2, %v6222_v44  ;;  %6052 = vmatmul.msk.bf16.gmra.mxu2 %vm1769_vm2, %v6279_v45  ;;  %v3746_v4 = vmax.f32 %v2862_v61, 0.0  ;;  %v8385_v44 = vld [vmem:[%s8948_s2] ss:$0 sm:$0xff] }
 0x219   : > { %5939 = vmatmul.msk.bf16.gmra.mxu0 %vm1769_vm2, %v6166_v50  ;;  %v7329_v58 = vpack.c.bf16 %v3973_v56, %v3972_v49  ;;  %6109 = vmatmul.msk.bf16.gmra.mxu3 %vm1769_vm2, %v6336_v52  ;;  %v3634_v2 = vmax.f32 %v2582_v60, 0.0  ;;  %v6168_v52 = vld [vmem:[%s7784_s24 + $0x110] sm:$0xff]  ;;  %v6338_v53 = vld [vmem:[%s7784_s24 + $0x660] sm:$0xff] }
 0x21a   : > { %7621 = vst [vmem:[%s7872_s29 + $0x440] sm:$0xff] %v7044_v57  }
 0x21b   : > { %v3146_v59 = vpop.f32.mrf.mxu2  ;;  %7678 = vst [vmem:[%s7872_s29 + $0x608] sm:$0xff] %v7329_v58  }
 0x21c   : > { %v3431_v62 = vpop.f32.mrf.mxu3  ;;  %v3147_v8 = vadd.f32 %v8125_v13, %v3146_v59 }
 0x21d   : > { %v2863_v63 = vpop.f32.mrf.mxu1  ;;  %v3432_v7 = vadd.f32 %v8125_v13, %v3431_v62 }
 0x21e   : > { %v2864_v0 = vadd.f32 %v8125_v13, %v2863_v63  ;;  %v2583_v1 = vpop.f32.mrf.mxu0  ;;  %v3860_v21 = vmax.f32 %v3147_v8, 0.0 }
 0x21f   : > { %v2584_v3 = vadd.f32 %v8125_v13, %v2583_v1  ;;  %v3974_v46 = vmax.f32 %v3432_v7, 0.0 }
 0x220   : > { %v3747_v5 = vmax.f32 %v2864_v0, 0.0 }
 0x221   : > { %v3635_v6 = vmax.f32 %v2584_v3, 0.0 }
 0x222   : > { %v6764_v9 = vpack.c.bf16 %v3747_v5, %v3746_v4 }
 0x223   : > { %v3148_v10 = vpop.f32.mrf.mxu2  ;;  %v6484_v11 = vpack.c.bf16 %v3635_v6, %v3634_v2 }
 0x224   : > { %7565 = vst [vmem:[%s7872_s29 + $0x280] sm:$0xff] %v6764_v9   ;;  %v3149_v12 = vadd.f32 %v8125_v13, %v3148_v10  ;;  %v3433_v16 = vpop.f32.mrf.mxu3 }
 0x225   : > { %v2866_v17 = vpop.f32.mrf.mxu1  ;;  %7509 = vst [vmem:[%s7872_s29 + $0xc0] sm:$0xff] %v6484_v11   ;;  %v3434_v19 = vadd.f32 %v8125_v13, %v3433_v16  ;;  %v6282_v16 = vld [vmem:[%s7784_s24 + $0x4a0] sm:$0xff] }
 0x226   : > { %v3861_v22 = vmax.f32 %v3149_v12, 0.0  ;;  %v2586_v23 = vpop.f32.mrf.mxu0  ;;  %v2867_v29 = vadd.f32 %v8125_v13, %v2866_v17 }
 0x227   : > { %v3975_v24 = vmax.f32 %v3434_v19, 0.0  ;;  %v2587_v28 = vadd.f32 %v8125_v13, %v2586_v23  ;;  %v6169_v19 = vld [vmem:[%s7784_s24 + $0x118] sm:$0xff] }
 0x228   : > { %v7049_v25 = vpack.c.bf16 %v3861_v22, %v3860_v21  ;;  %5996 = vmatmul.msk.bf16.gmra.mxu1 %vm1769_vm2, %v6223_v14  ;;  %6053 = vmatmul.msk.bf16.gmra.mxu2 %vm1769_vm2, %v6280_v15  ;;  %v3748_v36 = vmax.f32 %v2867_v29, 0.0  ;;  %v6225_v15 = vld [vmem:[%s7784_s24 + $0x2d8] sm:$0xff]  ;;  %v6339_v21 = vld [vmem:[%s7784_s24 + $0x668] sm:$0xff] }
 0x229   : > { %5940 = vmatmul.msk.bf16.gmra.mxu0 %vm1769_vm2, %v6167_v18  ;;  %v7334_v26 = vpack.c.bf16 %v3975_v24, %v3974_v46  ;;  %6110 = vmatmul.msk.bf16.gmra.mxu3 %vm1769_vm2, %v6337_v20  ;;  %v3636_v34 = vmax.f32 %v2587_v28, 0.0 }
 0x22a   : > { %7622 = vst [vmem:[%s7872_s29 + $0x448] sm:$0xff] %v7049_v25  }
 0x22b   : > { %v3151_v27 = vpop.f32.mrf.mxu2  ;;  %7679 = vst [vmem:[%s7872_s29 + $0x610] sm:$0xff] %v7334_v26  }
 0x22c   : > { %v3436_v30 = vpop.f32.mrf.mxu3  ;;  %v3152_v40 = vadd.f32 %v8125_v13, %v3151_v27 }
 0x22d   : > { %v2868_v31 = vpop.f32.mrf.mxu1  ;;  %v3437_v39 = vadd.f32 %v8125_v13, %v3436_v30 }
 0x22e   : > { %v2869_v32 = vadd.f32 %v8125_v13, %v2868_v31  ;;  %v2588_v33 = vpop.f32.mrf.mxu0  ;;  %v3862_v54 = vmax.f32 %v3152_v40, 0.0 }
 0x22f   : > { %v2589_v35 = vadd.f32 %v8125_v13, %v2588_v33  ;;  %v3976_v51 = vmax.f32 %v3437_v39, 0.0 }
 0x230   : > { %v3749_v37 = vmax.f32 %v2869_v32, 0.0 }
 0x231   : > { %v3637_v38 = vmax.f32 %v2589_v35, 0.0 }
 0x232   : > { %v6769_v41 = vpack.c.bf16 %v3749_v37, %v3748_v36 }
 0x233   : > { %v3153_v42 = vpop.f32.mrf.mxu2  ;;  %v6489_v43 = vpack.c.bf16 %v3637_v38, %v3636_v34 }
 0x234   : > { %7566 = vst [vmem:[%s7872_s29 + $0x288] sm:$0xff] %v6769_v41   ;;  %v3154_v45 = vadd.f32 %v8385_v44, %v3153_v42  ;;  %v3438_v49 = vpop.f32.mrf.mxu3 }
 0x235   : > { %v2871_v50 = vpop.f32.mrf.mxu1  ;;  %7510 = vst [vmem:[%s7872_s29 + $0xc8] sm:$0xff] %v6489_v43   ;;  %v3439_v13 = vadd.f32 %v8385_v44, %v3438_v49  ;;  %v6283_v49 = vld [vmem:[%s7784_s24 + $0x4a8] sm:$0xff] }
 0x236   : > { %v3863_v55 = vmax.f32 %v3154_v45, 0.0  ;;  %v2591_v56 = vpop.f32.mrf.mxu0  ;;  %v2872_v62 = vadd.f32 %v8385_v44, %v2871_v50 }
 0x237   : > { %v3977_v57 = vmax.f32 %v3439_v13, 0.0  ;;  %v2592_v61 = vadd.f32 %v8385_v44, %v2591_v56  ;;  %v6170_v13 = vld [vmem:[%s7784_s24 + $0x120] sm:$0xff] }
 0x238   : > { %v7054_v58 = vpack.c.bf16 %v3863_v55, %v3862_v54  ;;  %5997 = vmatmul.msk.bf16.gmra.mxu1 %vm1769_vm2, %v6224_v47  ;;  %6054 = vmatmul.msk.bf16.gmra.mxu2 %vm1769_vm2, %v6281_v48  ;;  %v3750_v5 = vmax.f32 %v2872_v62, 0.0  ;;  %v6226_v48 = vld [vmem:[%s7784_s24 + $0x2e0] sm:$0xff]  ;;  %v6340_v54 = vld [vmem:[%s7784_s24 + $0x670] sm:$0xff] }
 0x239   : > { %5941 = vmatmul.msk.bf16.gmra.mxu0 %vm1769_vm2, %v6168_v52  ;;  %v7339_v59 = vpack.c.bf16 %v3977_v57, %v3976_v51  ;;  %6111 = vmatmul.msk.bf16.gmra.mxu3 %vm1769_vm2, %v6338_v53  ;;  %v3638_v3 = vmax.f32 %v2592_v61, 0.0 }
 0x23a   : > { %7623 = vst [vmem:[%s7872_s29 + $0x450] sm:$0xff] %v7054_v58  }
 0x23b   : > { %v3156_v60 = vpop.f32.mrf.mxu2  ;;  %7680 = vst [vmem:[%s7872_s29 + $0x618] sm:$0xff] %v7339_v59  }
 0x23c   : > { %v3441_v63 = vpop.f32.mrf.mxu3  ;;  %v3157_v9 = vadd.f32 %v8385_v44, %v3156_v60 }
 0x23d   : > { %v2873_v0 = vpop.f32.mrf.mxu1  ;;  %v3442_v8 = vadd.f32 %v8385_v44, %v3441_v63 }
 0x23e   : > { %v2874_v1 = vadd.f32 %v8385_v44, %v2873_v0  ;;  %v2593_v2 = vpop.f32.mrf.mxu0  ;;  %v3864_v22 = vmax.f32 %v3157_v9, 0.0 }
 0x23f   : > { %v2594_v4 = vadd.f32 %v8385_v44, %v2593_v2  ;;  %v3978_v18 = vmax.f32 %v3442_v8, 0.0 }
 0x240   : > { %v3751_v6 = vmax.f32 %v2874_v1, 0.0 }
 0x241   : > { %v3639_v7 = vmax.f32 %v2594_v4, 0.0 }
 0x242   : > { %v6774_v10 = vpack.c.bf16 %v3751_v6, %v3750_v5 }
 0x243   : > { %v3158_v11 = vpop.f32.mrf.mxu2  ;;  %v6494_v12 = vpack.c.bf16 %v3639_v7, %v3638_v3 }
 0x244   : > { %7567 = vst [vmem:[%s7872_s29 + $0x290] sm:$0xff] %v6774_v10   ;;  %v3159_v14 = vadd.f32 %v8385_v44, %v3158_v11  ;;  %v3443_v17 = vpop.f32.mrf.mxu3 }
 0x245   : > { %v2876_v46 = vpop.f32.mrf.mxu1  ;;  %7511 = vst [vmem:[%s7872_s29 + $0xd0] sm:$0xff] %v6494_v12   ;;  %v3444_v20 = vadd.f32 %v8385_v44, %v3443_v17  ;;  %v6284_v17 = vld [vmem:[%s7784_s24 + $0x4b0] sm:$0xff] }
 0x246   : > { %v3865_v23 = vmax.f32 %v3159_v14, 0.0  ;;  %v2596_v24 = vpop.f32.mrf.mxu0  ;;  %v2877_v30 = vadd.f32 %v8385_v44, %v2876_v46 }
 0x247   : > { %v3979_v25 = vmax.f32 %v3444_v20, 0.0  ;;  %v2597_v29 = vadd.f32 %v8385_v44, %v2596_v24  ;;  %v6171_v20 = vld [vmem:[%s7784_s24 + $0x128] sm:$0xff] }
 0x248   : > { %v7059_v26 = vpack.c.bf16 %v3865_v23, %v3864_v22  ;;  %5998 = vmatmul.msk.bf16.gmra.mxu1 %vm1769_vm2, %v6225_v15  ;;  %6055 = vmatmul.msk.bf16.gmra.mxu2 %vm1769_vm2, %v6282_v16  ;;  %v3752_v37 = vmax.f32 %v2877_v30, 0.0  ;;  %v6227_v16 = vld [vmem:[%s7784_s24 + $0x2e8] sm:$0xff]  ;;  %v6341_v22 = vld [vmem:[%s7784_s24 + $0x678] sm:$0xff] }
 0x249   : > { %5942 = vmatmul.msk.bf16.gmra.mxu0 %vm1769_vm2, %v6169_v19  ;;  %v7344_v27 = vpack.c.bf16 %v3979_v25, %v3978_v18  ;;  %6112 = vmatmul.msk.bf16.gmra.mxu3 %vm1769_vm2, %v6339_v21  ;;  %v3640_v35 = vmax.f32 %v2597_v29, 0.0 }
 0x24a   : > { %7624 = vst [vmem:[%s7872_s29 + $0x458] sm:$0xff] %v7059_v26  }
 0x24b   : > { %v3161_v28 = vpop.f32.mrf.mxu2  ;;  %7681 = vst [vmem:[%s7872_s29 + $0x620] sm:$0xff] %v7344_v27  }
 0x24c   : > { %v3446_v31 = vpop.f32.mrf.mxu3  ;;  %v3162_v41 = vadd.f32 %v8385_v44, %v3161_v28 }
 0x24d   : > { %v2878_v32 = vpop.f32.mrf.mxu1  ;;  %v3447_v40 = vadd.f32 %v8385_v44, %v3446_v31 }
 0x24e   : > { %v2879_v33 = vadd.f32 %v8385_v44, %v2878_v32  ;;  %v2598_v34 = vpop.f32.mrf.mxu0  ;;  %v3866_v55 = vmax.f32 %v3162_v41, 0.0 }
 0x24f   : > { %v2599_v36 = vadd.f32 %v8385_v44, %v2598_v34  ;;  %v3980_v52 = vmax.f32 %v3447_v40, 0.0 }
 0x250   : > { %v3753_v38 = vmax.f32 %v2879_v33, 0.0 }
 0x251   : > { %v3641_v39 = vmax.f32 %v2599_v36, 0.0 }
 0x252   : > { %v6779_v42 = vpack.c.bf16 %v3753_v38, %v3752_v37 }
 0x253   : > { %v3163_v43 = vpop.f32.mrf.mxu2  ;;  %v6499_v45 = vpack.c.bf16 %v3641_v39, %v3640_v35 }
 0x254   : > { %7568 = vst [vmem:[%s7872_s29 + $0x298] sm:$0xff] %v6779_v42   ;;  %v3164_v47 = vadd.f32 %v8385_v44, %v3163_v43  ;;  %v3448_v50 = vpop.f32.mrf.mxu3 }
 0x255   : > { %v2881_v51 = vpop.f32.mrf.mxu1  ;;  %7512 = vst [vmem:[%s7872_s29 + $0xd8] sm:$0xff] %v6499_v45   ;;  %v3449_v53 = vadd.f32 %v8385_v44, %v3448_v50  ;;  %v6285_v50 = vld [vmem:[%s7784_s24 + $0x4b8] sm:$0xff] }
 0x256   : > { %v3867_v56 = vmax.f32 %v3164_v47, 0.0  ;;  %v2601_v57 = vpop.f32.mrf.mxu0  ;;  %v2882_v63 = vadd.f32 %v8385_v44, %v2881_v51 }
 0x257   : > { %v3981_v58 = vmax.f32 %v3449_v53, 0.0  ;;  %v2602_v62 = vadd.f32 %v8385_v44, %v2601_v57  ;;  %v6172_v53 = vld [vmem:[%s7784_s24 + $0x130] sm:$0xff] }
 0x258   : > { %v7064_v59 = vpack.c.bf16 %v3867_v56, %v3866_v55  ;;  %5999 = vmatmul.msk.bf16.gmra.mxu1 %vm1769_vm2, %v6226_v48  ;;  %6056 = vmatmul.msk.bf16.gmra.mxu2 %vm1769_vm2, %v6283_v49  ;;  %v3754_v6 = vmax.f32 %v2882_v63, 0.0  ;;  %v6228_v49 = vld [vmem:[%s7784_s24 + $0x2f0] sm:$0xff]  ;;  %v6342_v55 = vld [vmem:[%s7784_s24 + $0x680] sm:$0xff] }
 0x259   : > { %5943 = vmatmul.msk.bf16.gmra.mxu0 %vm1769_vm2, %v6170_v13  ;;  %v7349_v60 = vpack.c.bf16 %v3981_v58, %v3980_v52  ;;  %6113 = vmatmul.msk.bf16.gmra.mxu3 %vm1769_vm2, %v6340_v54  ;;  %v3642_v4 = vmax.f32 %v2602_v62, 0.0 }
 0x25a   : > { %7625 = vst [vmem:[%s7872_s29 + $0x460] sm:$0xff] %v7064_v59  }
 0x25b   : > { %v3166_v61 = vpop.f32.mrf.mxu2  ;;  %7682 = vst [vmem:[%s7872_s29 + $0x628] sm:$0xff] %v7349_v60  }
 0x25c   : > { %v3451_v0 = vpop.f32.mrf.mxu3  ;;  %v3167_v10 = vadd.f32 %v8385_v44, %v3166_v61 }
 0x25d   : > { %v2883_v1 = vpop.f32.mrf.mxu1  ;;  %v3452_v9 = vadd.f32 %v8385_v44, %v3451_v0 }
 0x25e   : > { %v2884_v2 = vadd.f32 %v8385_v44, %v2883_v1  ;;  %v2603_v3 = vpop.f32.mrf.mxu0  ;;  %v3868_v23 = vmax.f32 %v3167_v10, 0.0 }
 0x25f   : > { %v2604_v5 = vadd.f32 %v8385_v44, %v2603_v3  ;;  %v3982_v19 = vmax.f32 %v3452_v9, 0.0 }
 0x260   : > { %v3755_v7 = vmax.f32 %v2884_v2, 0.0 }
 0x261   : > { %v3643_v8 = vmax.f32 %v2604_v5, 0.0 }
 0x262   : > { %v6784_v11 = vpack.c.bf16 %v3755_v7, %v3754_v6 }
 0x263   : > { %v3168_v12 = vpop.f32.mrf.mxu2  ;;  %v6504_v14 = vpack.c.bf16 %v3643_v8, %v3642_v4 }
 0x264   : > { %7569 = vst [vmem:[%s7872_s29 + $0x2a0] sm:$0xff] %v6784_v11   ;;  %v3169_v15 = vadd.f32 %v8385_v44, %v3168_v12  ;;  %v3453_v46 = vpop.f32.mrf.mxu3 }
 0x265   : > { %v2886_v18 = vpop.f32.mrf.mxu1  ;;  %7513 = vst [vmem:[%s7872_s29 + $0xe0] sm:$0xff] %v6504_v14   ;;  %v3454_v21 = vadd.f32 %v8385_v44, %v3453_v46  ;;  %v6286_v46 = vld [vmem:[%s7784_s24 + $0x4c0] sm:$0xff] }
 0x266   : > { %v3869_v24 = vmax.f32 %v3169_v15, 0.0  ;;  %v2606_v25 = vpop.f32.mrf.mxu0  ;;  %v2887_v31 = vadd.f32 %v8385_v44, %v2886_v18 }
 0x267   : > { %v3983_v26 = vmax.f32 %v3454_v21, 0.0  ;;  %v2607_v30 = vadd.f32 %v8385_v44, %v2606_v25  ;;  %v6173_v21 = vld [vmem:[%s7784_s24 + $0x138] sm:$0xff] }
 0x268   : > { %v7069_v27 = vpack.c.bf16 %v3869_v24, %v3868_v23  ;;  %6000 = vmatmul.msk.bf16.gmra.mxu1 %vm1769_vm2, %v6227_v16  ;;  %6057 = vmatmul.msk.bf16.gmra.mxu2 %vm1769_vm2, %v6284_v17  ;;  %v3756_v38 = vmax.f32 %v2887_v31, 0.0  ;;  %v6229_v17 = vld [vmem:[%s7784_s24 + $0x2f8] sm:$0xff]  ;;  %v6343_v23 = vld [vmem:[%s7784_s24 + $0x688] sm:$0xff] }
 0x269   : > { %5944 = vmatmul.msk.bf16.gmra.mxu0 %vm1769_vm2, %v6171_v20  ;;  %v7354_v28 = vpack.c.bf16 %v3983_v26, %v3982_v19  ;;  %6114 = vmatmul.msk.bf16.gmra.mxu3 %vm1769_vm2, %v6341_v22  ;;  %v3644_v36 = vmax.f32 %v2607_v30, 0.0 }
 0x26a   : > { %7626 = vst [vmem:[%s7872_s29 + $0x468] sm:$0xff] %v7069_v27  }
 0x26b   : > { %v3171_v29 = vpop.f32.mrf.mxu2  ;;  %7683 = vst [vmem:[%s7872_s29 + $0x630] sm:$0xff] %v7354_v28  }
 0x26c   : > { %v3456_v32 = vpop.f32.mrf.mxu3  ;;  %v3172_v42 = vadd.f32 %v8385_v44, %v3171_v29 }
 0x26d   : > { %v2888_v33 = vpop.f32.mrf.mxu1  ;;  %v3457_v41 = vadd.f32 %v8385_v44, %v3456_v32 }
 0x26e   : > { %v2889_v34 = vadd.f32 %v8385_v44, %v2888_v33  ;;  %v2608_v35 = vpop.f32.mrf.mxu0  ;;  %v3870_v56 = vmax.f32 %v3172_v42, 0.0 }
 0x26f   : > { %v2609_v37 = vadd.f32 %v8385_v44, %v2608_v35  ;;  %v3984_v13 = vmax.f32 %v3457_v41, 0.0 }
 0x270   : > { %v3757_v39 = vmax.f32 %v2889_v34, 0.0 }
 0x271   : > { %v3645_v40 = vmax.f32 %v2609_v37, 0.0 }
 0x272   : > { %v6789_v43 = vpack.c.bf16 %v3757_v39, %v3756_v38 }
 0x273   : > { %v3173_v45 = vpop.f32.mrf.mxu2  ;;  %v6509_v47 = vpack.c.bf16 %v3645_v40, %v3644_v36 }
 0x274   : > { %7570 = vst [vmem:[%s7872_s29 + $0x2a8] sm:$0xff] %v6789_v43   ;;  %v3174_v48 = vadd.f32 %v8385_v44, %v3173_v45  ;;  %v3458_v51 = vpop.f32.mrf.mxu3 }
 0x275   : > { %v2891_v52 = vpop.f32.mrf.mxu1  ;;  %7514 = vst [vmem:[%s7872_s29 + $0xe8] sm:$0xff] %v6509_v47   ;;  %v3459_v54 = vadd.f32 %v8385_v44, %v3458_v51  ;;  %v6287_v51 = vld [vmem:[%s7784_s24 + $0x4c8] sm:$0xff] }
 0x276   : > { %v3871_v57 = vmax.f32 %v3174_v48, 0.0  ;;  %v2611_v58 = vpop.f32.mrf.mxu0  ;;  %v2892_v0 = vadd.f32 %v8385_v44, %v2891_v52 }
 0x277   : > { %v3985_v59 = vmax.f32 %v3459_v54, 0.0  ;;  %v2612_v63 = vadd.f32 %v8385_v44, %v2611_v58  ;;  %v6174_v54 = vld [vmem:[%s7784_s24 + $0x140] sm:$0xff] }
 0x278   : > { %v7074_v60 = vpack.c.bf16 %v3871_v57, %v3870_v56  ;;  %6001 = vmatmul.msk.bf16.gmra.mxu1 %vm1769_vm2, %v6228_v49  ;;  %6058 = vmatmul.msk.bf16.gmra.mxu2 %vm1769_vm2, %v6285_v50  ;;  %v3758_v7 = vmax.f32 %v2892_v0, 0.0  ;;  %v6230_v50 = vld [vmem:[%s7784_s24 + $0x300] sm:$0xff]  ;;  %v6344_v56 = vld [vmem:[%s7784_s24 + $0x690] sm:$0xff] }
 0x279   : > { %5945 = vmatmul.msk.bf16.gmra.mxu0 %vm1769_vm2, %v6172_v53  ;;  %v7359_v61 = vpack.c.bf16 %v3985_v59, %v3984_v13  ;;  %6115 = vmatmul.msk.bf16.gmra.mxu3 %vm1769_vm2, %v6342_v55  ;;  %v3646_v5 = vmax.f32 %v2612_v63, 0.0 }
 0x27a   : > { %7627 = vst [vmem:[%s7872_s29 + $0x470] sm:$0xff] %v7074_v60  }
 0x27b   : > { %v3176_v62 = vpop.f32.mrf.mxu2  ;;  %7684 = vst [vmem:[%s7872_s29 + $0x638] sm:$0xff] %v7359_v61  }
 0x27c   : > { %v3461_v1 = vpop.f32.mrf.mxu3  ;;  %v3177_v11 = vadd.f32 %v8385_v44, %v3176_v62 }
 0x27d   : > { %v2893_v2 = vpop.f32.mrf.mxu1  ;;  %v3462_v10 = vadd.f32 %v8385_v44, %v3461_v1 }
 0x27e   : > { %v2894_v3 = vadd.f32 %v8385_v44, %v2893_v2  ;;  %v2613_v4 = vpop.f32.mrf.mxu0  ;;  %v3872_v24 = vmax.f32 %v3177_v11, 0.0 }
 0x27f   : > { %v2614_v6 = vadd.f32 %v8385_v44, %v2613_v4  ;;  %v3986_v20 = vmax.f32 %v3462_v10, 0.0 }
 0x280   : > { %v3759_v8 = vmax.f32 %v2894_v3, 0.0 }
 0x281   : > { %v3647_v9 = vmax.f32 %v2614_v6, 0.0 }
 0x282   : > { %v6794_v12 = vpack.c.bf16 %v3759_v8, %v3758_v7 }
 0x283   : > { %v3178_v14 = vpop.f32.mrf.mxu2  ;;  %v6514_v15 = vpack.c.bf16 %v3647_v9, %v3646_v5 }
 0x284   : > { %7571 = vst [vmem:[%s7872_s29 + $0x2b0] sm:$0xff] %v6794_v12   ;;  %v3179_v16 = vadd.f32 %v8385_v44, %v3178_v14  ;;  %v3463_v18 = vpop.f32.mrf.mxu3 }
 0x285   : > { %v2896_v19 = vpop.f32.mrf.mxu1  ;;  %7515 = vst [vmem:[%s7872_s29 + $0xf0] sm:$0xff] %v6514_v15   ;;  %v3464_v22 = vadd.f32 %v8385_v44, %v3463_v18  ;;  %v6288_v18 = vld [vmem:[%s7784_s24 + $0x4d0] sm:$0xff] }
 0x286   : > { %v3873_v25 = vmax.f32 %v3179_v16, 0.0  ;;  %v2616_v26 = vpop.f32.mrf.mxu0  ;;  %v2897_v32 = vadd.f32 %v8385_v44, %v2896_v19 }
 0x287   : > { %v3987_v27 = vmax.f32 %v3464_v22, 0.0  ;;  %v2617_v31 = vadd.f32 %v8385_v44, %v2616_v26  ;;  %v6175_v22 = vld [vmem:[%s7784_s24 + $0x148] sm:$0xff] }
 0x288   : > { %v7079_v28 = vpack.c.bf16 %v3873_v25, %v3872_v24  ;;  %6002 = vmatmul.msk.bf16.gmra.mxu1 %vm1769_vm2, %v6229_v17  ;;  %6059 = vmatmul.msk.bf16.gmra.mxu2 %vm1769_vm2, %v6286_v46  ;;  %v3760_v39 = vmax.f32 %v2897_v32, 0.0  ;;  %v6231_v46 = vld [vmem:[%s7784_s24 + $0x308] sm:$0xff]  ;;  %v6345_v24 = vld [vmem:[%s7784_s24 + $0x698] sm:$0xff] }
 0x289   : > { %5946 = vmatmul.msk.bf16.gmra.mxu0 %vm1769_vm2, %v6173_v21  ;;  %v7364_v29 = vpack.c.bf16 %v3987_v27, %v3986_v20  ;;  %6116 = vmatmul.msk.bf16.gmra.mxu3 %vm1769_vm2, %v6343_v23  ;;  %v3648_v37 = vmax.f32 %v2617_v31, 0.0 }
 0x28a   : > { %7628 = vst [vmem:[%s7872_s29 + $0x478] sm:$0xff] %v7079_v28  }
 0x28b   : > { %v3181_v30 = vpop.f32.mrf.mxu2  ;;  %7685 = vst [vmem:[%s7872_s29 + $0x640] sm:$0xff] %v7364_v29  }
 0x28c   : > { %v3466_v33 = vpop.f32.mrf.mxu3  ;;  %v3182_v43 = vadd.f32 %v8385_v44, %v3181_v30 }
 0x28d   : > { %v2898_v34 = vpop.f32.mrf.mxu1  ;;  %v3467_v42 = vadd.f32 %v8385_v44, %v3466_v33 }
 0x28e   : > { %v2899_v35 = vadd.f32 %v8385_v44, %v2898_v34  ;;  %v2618_v36 = vpop.f32.mrf.mxu0  ;;  %v3874_v57 = vmax.f32 %v3182_v43, 0.0 }
 0x28f   : > { %v2619_v38 = vadd.f32 %v8385_v44, %v2618_v36  ;;  %v3988_v53 = vmax.f32 %v3467_v42, 0.0 }
 0x290   : > { %v3761_v40 = vmax.f32 %v2899_v35, 0.0 }
 0x291   : > { %v3649_v41 = vmax.f32 %v2619_v38, 0.0 }
 0x292   : > { %v6799_v45 = vpack.c.bf16 %v3761_v40, %v3760_v39 }
 0x293   : > { %v3183_v47 = vpop.f32.mrf.mxu2  ;;  %v6519_v48 = vpack.c.bf16 %v3649_v41, %v3648_v37 }
 0x294   : > { %7572 = vst [vmem:[%s7872_s29 + $0x2b8] sm:$0xff] %v6799_v45   ;;  %v3184_v49 = vadd.f32 %v8385_v44, %v3183_v47  ;;  %v3468_v52 = vpop.f32.mrf.mxu3 }
 0x295   : > { %v2901_v13 = vpop.f32.mrf.mxu1  ;;  %7516 = vst [vmem:[%s7872_s29 + $0xf8] sm:$0xff] %v6519_v48   ;;  %v3469_v55 = vadd.f32 %v8385_v44, %v3468_v52  ;;  %v6289_v52 = vld [vmem:[%s7784_s24 + $0x4d8] sm:$0xff] }
 0x296   : > { %v3875_v58 = vmax.f32 %v3184_v49, 0.0  ;;  %v2621_v59 = vpop.f32.mrf.mxu0  ;;  %v2902_v1 = vadd.f32 %v8385_v44, %v2901_v13 }
 0x297   : > { %v3989_v60 = vmax.f32 %v3469_v55, 0.0  ;;  %v2622_v0 = vadd.f32 %v8385_v44, %v2621_v59  ;;  %v6176_v55 = vld [vmem:[%s7784_s24 + $0x150] sm:$0xff] }
 0x298   : > { %v7084_v61 = vpack.c.bf16 %v3875_v58, %v3874_v57  ;;  %6003 = vmatmul.msk.bf16.gmra.mxu1 %vm1769_vm2, %v6230_v50  ;;  %6060 = vmatmul.msk.bf16.gmra.mxu2 %vm1769_vm2, %v6287_v51  ;;  %v3762_v8 = vmax.f32 %v2902_v1, 0.0  ;;  %v6232_v51 = vld [vmem:[%s7784_s24 + $0x310] sm:$0xff]  ;;  %v6346_v57 = vld [vmem:[%s7784_s24 + $0x6a0] sm:$0xff] }
 0x299   : > { %5947 = vmatmul.msk.bf16.gmra.mxu0 %vm1769_vm2, %v6174_v54  ;;  %v7369_v62 = vpack.c.bf16 %v3989_v60, %v3988_v53  ;;  %6117 = vmatmul.msk.bf16.gmra.mxu3 %vm1769_vm2, %v6344_v56  ;;  %v3650_v6 = vmax.f32 %v2622_v0, 0.0 }
 0x29a   : > { %7629 = vst [vmem:[%s7872_s29 + $0x480] sm:$0xff] %v7084_v61  }
 0x29b   : > { %v3186_v63 = vpop.f32.mrf.mxu2  ;;  %7686 = vst [vmem:[%s7872_s29 + $0x648] sm:$0xff] %v7369_v62  }
 0x29c   : > { %v3471_v2 = vpop.f32.mrf.mxu3  ;;  %v3187_v12 = vadd.f32 %v8385_v44, %v3186_v63 }
 0x29d   : > { %v2903_v3 = vpop.f32.mrf.mxu1  ;;  %v3472_v11 = vadd.f32 %v8385_v44, %v3471_v2 }
 0x29e   : > { %v2904_v4 = vadd.f32 %v8385_v44, %v2903_v3  ;;  %v2623_v5 = vpop.f32.mrf.mxu0  ;;  %v3876_v25 = vmax.f32 %v3187_v12, 0.0 }
 0x29f   : > { %v2624_v7 = vadd.f32 %v8385_v44, %v2623_v5  ;;  %v3990_v21 = vmax.f32 %v3472_v11, 0.0 }
 0x2a0   : > { %v3763_v9 = vmax.f32 %v2904_v4, 0.0 }
 0x2a1   : > { %v3651_v10 = vmax.f32 %v2624_v7, 0.0 }
 0x2a2   : > { %v6804_v14 = vpack.c.bf16 %v3763_v9, %v3762_v8 }
 0x2a3   : > { %v3188_v15 = vpop.f32.mrf.mxu2  ;;  %v6524_v16 = vpack.c.bf16 %v3651_v10, %v3650_v6 }
 0x2a4   : > { %7573 = vst [vmem:[%s7872_s29 + $0x2c0] sm:$0xff] %v6804_v14   ;;  %v3189_v17 = vadd.f32 %v8385_v44, %v3188_v15  ;;  %v3473_v19 = vpop.f32.mrf.mxu3 }
 0x2a5   : > { %v2906_v20 = vpop.f32.mrf.mxu1  ;;  %7517 = vst [vmem:[%s7872_s29 + $0x100] sm:$0xff] %v6524_v16   ;;  %v3474_v23 = vadd.f32 %v8385_v44, %v3473_v19  ;;  %v6290_v19 = vld [vmem:[%s7784_s24 + $0x4e0] sm:$0xff] }
 0x2a6   : > { %v3877_v26 = vmax.f32 %v3189_v17, 0.0  ;;  %v2626_v27 = vpop.f32.mrf.mxu0  ;;  %v2907_v33 = vadd.f32 %v8385_v44, %v2906_v20 }
 0x2a7   : > { %v3991_v28 = vmax.f32 %v3474_v23, 0.0  ;;  %v2627_v32 = vadd.f32 %v8385_v44, %v2626_v27  ;;  %v6177_v23 = vld [vmem:[%s7784_s24 + $0x158] sm:$0xff] }
 0x2a8   : > { %v7089_v29 = vpack.c.bf16 %v3877_v26, %v3876_v25  ;;  %6004 = vmatmul.msk.bf16.gmra.mxu1 %vm1769_vm2, %v6231_v46  ;;  %6061 = vmatmul.msk.bf16.gmra.mxu2 %vm1769_vm2, %v6288_v18  ;;  %v3764_v40 = vmax.f32 %v2907_v33, 0.0  ;;  %v6233_v18 = vld [vmem:[%s7784_s24 + $0x318] sm:$0xff]  ;;  %v6347_v25 = vld [vmem:[%s7784_s24 + $0x6a8] sm:$0xff] }
 0x2a9   : > { %5948 = vmatmul.msk.bf16.gmra.mxu0 %vm1769_vm2, %v6175_v22  ;;  %v7374_v30 = vpack.c.bf16 %v3991_v28, %v3990_v21  ;;  %6118 = vmatmul.msk.bf16.gmra.mxu3 %vm1769_vm2, %v6345_v24  ;;  %v3652_v38 = vmax.f32 %v2627_v32, 0.0 }
 0x2aa   : > { %7630 = vst [vmem:[%s7872_s29 + $0x488] sm:$0xff] %v7089_v29  }
 0x2ab   : > { %v3191_v31 = vpop.f32.mrf.mxu2  ;;  %7687 = vst [vmem:[%s7872_s29 + $0x650] sm:$0xff] %v7374_v30  }
 0x2ac   : > { %v3476_v34 = vpop.f32.mrf.mxu3  ;;  %v3192_v45 = vadd.f32 %v8385_v44, %v3191_v31 }
 0x2ad   : > { %v2908_v35 = vpop.f32.mrf.mxu1  ;;  %v3477_v43 = vadd.f32 %v8385_v44, %v3476_v34 }
 0x2ae   : > { %v2909_v36 = vadd.f32 %v8385_v44, %v2908_v35  ;;  %v2628_v37 = vpop.f32.mrf.mxu0  ;;  %v3878_v58 = vmax.f32 %v3192_v45, 0.0 }
 0x2af   : > { %v2629_v39 = vadd.f32 %v8385_v44, %v2628_v37  ;;  %v3992_v54 = vmax.f32 %v3477_v43, 0.0 }
 0x2b0   : > { %v3765_v41 = vmax.f32 %v2909_v36, 0.0 }
 0x2b1   : > { %v3653_v42 = vmax.f32 %v2629_v39, 0.0 }
 0x2b2   : > { %v6809_v47 = vpack.c.bf16 %v3765_v41, %v3764_v40 }
 0x2b3   : > { %v3193_v48 = vpop.f32.mrf.mxu2  ;;  %v6529_v49 = vpack.c.bf16 %v3653_v42, %v3652_v38 }
 0x2b4   : > { %7574 = vst [vmem:[%s7872_s29 + $0x2c8] sm:$0xff] %v6809_v47   ;;  %v3194_v50 = vadd.f32 %v8385_v44, %v3193_v48  ;;  %v3478_v13 = vpop.f32.mrf.mxu3 }
 0x2b5   : > { %v2911_v53 = vpop.f32.mrf.mxu1  ;;  %7518 = vst [vmem:[%s7872_s29 + $0x108] sm:$0xff] %v6529_v49   ;;  %v3479_v56 = vadd.f32 %v8385_v44, %v3478_v13  ;;  %v6291_v13 = vld [vmem:[%s7784_s24 + $0x4e8] sm:$0xff] }
 0x2b6   : > { %v3879_v59 = vmax.f32 %v3194_v50, 0.0  ;;  %v2631_v60 = vpop.f32.mrf.mxu0  ;;  %v2912_v2 = vadd.f32 %v8385_v44, %v2911_v53 }
 0x2b7   : > { %v3993_v61 = vmax.f32 %v3479_v56, 0.0  ;;  %v2632_v1 = vadd.f32 %v8385_v44, %v2631_v60  ;;  %v6178_v56 = vld [vmem:[%s7784_s24 + $0x160] sm:$0xff] }
 0x2b8   : > { %v7094_v62 = vpack.c.bf16 %v3879_v59, %v3878_v58  ;;  %6005 = vmatmul.msk.bf16.gmra.mxu1 %vm1769_vm2, %v6232_v51  ;;  %6062 = vmatmul.msk.bf16.gmra.mxu2 %vm1769_vm2, %v6289_v52  ;;  %v3766_v9 = vmax.f32 %v2912_v2, 0.0  ;;  %v6234_v52 = vld [vmem:[%s7784_s24 + $0x320] sm:$0xff]  ;;  %v6348_v58 = vld [vmem:[%s7784_s24 + $0x6b0] sm:$0xff] }
 0x2b9   : > { %5949 = vmatmul.msk.bf16.gmra.mxu0 %vm1769_vm2, %v6176_v55  ;;  %v7379_v63 = vpack.c.bf16 %v3993_v61, %v3992_v54  ;;  %6119 = vmatmul.msk.bf16.gmra.mxu3 %vm1769_vm2, %v6346_v57  ;;  %v3654_v7 = vmax.f32 %v2632_v1, 0.0 }
 0x2ba   : > { %7631 = vst [vmem:[%s7872_s29 + $0x490] sm:$0xff] %v7094_v62  }
 0x2bb   : > { %v3196_v0 = vpop.f32.mrf.mxu2  ;;  %7688 = vst [vmem:[%s7872_s29 + $0x658] sm:$0xff] %v7379_v63  }
 0x2bc   : > { %v3481_v3 = vpop.f32.mrf.mxu3  ;;  %v3197_v14 = vadd.f32 %v8385_v44, %v3196_v0 }
 0x2bd   : > { %v2913_v4 = vpop.f32.mrf.mxu1  ;;  %v3482_v12 = vadd.f32 %v8385_v44, %v3481_v3 }
 0x2be   : > { %v2914_v5 = vadd.f32 %v8385_v44, %v2913_v4  ;;  %v2633_v6 = vpop.f32.mrf.mxu0  ;;  %v3880_v26 = vmax.f32 %v3197_v14, 0.0 }
 0x2bf   : > { %v2634_v8 = vadd.f32 %v8385_v44, %v2633_v6  ;;  %v3994_v22 = vmax.f32 %v3482_v12, 0.0 }
 0x2c0   : > { %v3767_v10 = vmax.f32 %v2914_v5, 0.0 }
 0x2c1   : > { %v3655_v11 = vmax.f32 %v2634_v8, 0.0 }
 0x2c2   : > { %v6814_v15 = vpack.c.bf16 %v3767_v10, %v3766_v9 }
 0x2c3   : > { %v3198_v16 = vpop.f32.mrf.mxu2  ;;  %v6534_v17 = vpack.c.bf16 %v3655_v11, %v3654_v7 }
 0x2c4   : > { %7575 = vst [vmem:[%s7872_s29 + $0x2d0] sm:$0xff] %v6814_v15   ;;  %v3199_v46 = vadd.f32 %v8385_v44, %v3198_v16  ;;  %v3483_v20 = vpop.f32.mrf.mxu3 }
 0x2c5   : > { %v2916_v21 = vpop.f32.mrf.mxu1  ;;  %7519 = vst [vmem:[%s7872_s29 + $0x110] sm:$0xff] %v6534_v17   ;;  %v3484_v24 = vadd.f32 %v8385_v44, %v3483_v20  ;;  %v6292_v20 = vld [vmem:[%s7784_s24 + $0x4f0] sm:$0xff] }
 0x2c6   : > { %v3881_v27 = vmax.f32 %v3199_v46, 0.0  ;;  %v2636_v28 = vpop.f32.mrf.mxu0  ;;  %v2917_v34 = vadd.f32 %v8385_v44, %v2916_v21 }
 0x2c7   : > { %v3995_v29 = vmax.f32 %v3484_v24, 0.0  ;;  %v2637_v33 = vadd.f32 %v8385_v44, %v2636_v28  ;;  %v6179_v24 = vld [vmem:[%s7784_s24 + $0x168] sm:$0xff] }
 0x2c8   : > { %v7099_v30 = vpack.c.bf16 %v3881_v27, %v3880_v26  ;;  %6006 = vmatmul.msk.bf16.gmra.mxu1 %vm1769_vm2, %v6233_v18  ;;  %6063 = vmatmul.msk.bf16.gmra.mxu2 %vm1769_vm2, %v6290_v19  ;;  %v3768_v41 = vmax.f32 %v2917_v34, 0.0  ;;  %v6235_v19 = vld [vmem:[%s7784_s24 + $0x328] sm:$0xff]  ;;  %v6349_v26 = vld [vmem:[%s7784_s24 + $0x6b8] sm:$0xff] }
 0x2c9   : > { %5950 = vmatmul.msk.bf16.gmra.mxu0 %vm1769_vm2, %v6177_v23  ;;  %v7384_v31 = vpack.c.bf16 %v3995_v29, %v3994_v22  ;;  %6120 = vmatmul.msk.bf16.gmra.mxu3 %vm1769_vm2, %v6347_v25  ;;  %v3656_v39 = vmax.f32 %v2637_v33, 0.0 }
 0x2ca   : > { %7632 = vst [vmem:[%s7872_s29 + $0x498] sm:$0xff] %v7099_v30  }
 0x2cb   : > { %v3201_v32 = vpop.f32.mrf.mxu2  ;;  %7689 = vst [vmem:[%s7872_s29 + $0x660] sm:$0xff] %v7384_v31  }
 0x2cc   : > { %v3486_v35 = vpop.f32.mrf.mxu3  ;;  %v3202_v47 = vadd.f32 %v8385_v44, %v3201_v32 }
 0x2cd   : > { %v2918_v36 = vpop.f32.mrf.mxu1  ;;  %v3487_v45 = vadd.f32 %v8385_v44, %v3486_v35 }
 0x2ce   : > { %v2919_v37 = vadd.f32 %v8385_v44, %v2918_v36  ;;  %v2638_v38 = vpop.f32.mrf.mxu0  ;;  %v3882_v59 = vmax.f32 %v3202_v47, 0.0 }
 0x2cf   : > { %v2639_v40 = vadd.f32 %v8385_v44, %v2638_v38  ;;  %v3996_v55 = vmax.f32 %v3487_v45, 0.0 }
 0x2d0   : > { %v3769_v42 = vmax.f32 %v2919_v37, 0.0 }
 0x2d1   : > { %v3657_v43 = vmax.f32 %v2639_v40, 0.0 }
 0x2d2   : > { %v6819_v48 = vpack.c.bf16 %v3769_v42, %v3768_v41 }
 0x2d3   : > { %v3203_v49 = vpop.f32.mrf.mxu2  ;;  %v6539_v50 = vpack.c.bf16 %v3657_v43, %v3656_v39 }
 0x2d4   : > { %7576 = vst [vmem:[%s7872_s29 + $0x2d8] sm:$0xff] %v6819_v48   ;;  %v3204_v51 = vadd.f32 %v8385_v44, %v3203_v49  ;;  %v3488_v53 = vpop.f32.mrf.mxu3 }
 0x2d5   : > { %v2921_v54 = vpop.f32.mrf.mxu1  ;;  %7520 = vst [vmem:[%s7872_s29 + $0x118] sm:$0xff] %v6539_v50   ;;  %v3489_v57 = vadd.f32 %v8385_v44, %v3488_v53  ;;  %v6293_v53 = vld [vmem:[%s7784_s24 + $0x4f8] sm:$0xff] }
 0x2d6   : > { %v3883_v60 = vmax.f32 %v3204_v51, 0.0  ;;  %v2641_v61 = vpop.f32.mrf.mxu0  ;;  %v2922_v3 = vadd.f32 %v8385_v44, %v2921_v54 }
 0x2d7   : > { %v3997_v62 = vmax.f32 %v3489_v57, 0.0  ;;  %v2642_v2 = vadd.f32 %v8385_v44, %v2641_v61  ;;  %v6180_v57 = vld [vmem:[%s7784_s24 + $0x170] sm:$0xff] }
 0x2d8   : > { %v7104_v63 = vpack.c.bf16 %v3883_v60, %v3882_v59  ;;  %6007 = vmatmul.msk.bf16.gmra.mxu1 %vm1769_vm2, %v6234_v52  ;;  %6064 = vmatmul.msk.bf16.gmra.mxu2 %vm1769_vm2, %v6291_v13  ;;  %v3770_v10 = vmax.f32 %v2922_v3, 0.0  ;;  %v6236_v13 = vld [vmem:[%s7784_s24 + $0x330] sm:$0xff]  ;;  %v6350_v59 = vld [vmem:[%s7784_s24 + $0x6c0] sm:$0xff] }
 0x2d9   : > { %5951 = vmatmul.msk.bf16.gmra.mxu0 %vm1769_vm2, %v6178_v56  ;;  %v7389_v0 = vpack.c.bf16 %v3997_v62, %v3996_v55  ;;  %6121 = vmatmul.msk.bf16.gmra.mxu3 %vm1769_vm2, %v6348_v58  ;;  %v3658_v8 = vmax.f32 %v2642_v2, 0.0 }
 0x2da   : > { %7633 = vst [vmem:[%s7872_s29 + $0x4a0] sm:$0xff] %v7104_v63  }
 0x2db   : > { %v3206_v1 = vpop.f32.mrf.mxu2  ;;  %7690 = vst [vmem:[%s7872_s29 + $0x668] sm:$0xff] %v7389_v0  }
 0x2dc   : > { %v3491_v4 = vpop.f32.mrf.mxu3  ;;  %v3207_v15 = vadd.f32 %v8385_v44, %v3206_v1 }
 0x2dd   : > { %v2923_v5 = vpop.f32.mrf.mxu1  ;;  %v3492_v14 = vadd.f32 %v8385_v44, %v3491_v4 }
 0x2de   : > { %v2924_v6 = vadd.f32 %v8385_v44, %v2923_v5  ;;  %v2643_v7 = vpop.f32.mrf.mxu0  ;;  %v3884_v27 = vmax.f32 %v3207_v15, 0.0  ;;  %v8647_v15 = vld [vmem:[%s8948_s2] ss:$0 sm:$0xff] }
 0x2df   : > { %v2644_v9 = vadd.f32 %v8385_v44, %v2643_v7  ;;  %v3998_v23 = vmax.f32 %v3492_v14, 0.0 }
 0x2e0   : > { %v3771_v11 = vmax.f32 %v2924_v6, 0.0 }
 0x2e1   : > { %v3659_v12 = vmax.f32 %v2644_v9, 0.0 }
 0x2e2   : > { %v6824_v16 = vpack.c.bf16 %v3771_v11, %v3770_v10 }
 0x2e3   : > { %v3208_v17 = vpop.f32.mrf.mxu2  ;;  %v6544_v46 = vpack.c.bf16 %v3659_v12, %v3658_v8 }
 0x2e4   : > { %7577 = vst [vmem:[%s7872_s29 + $0x2e0] sm:$0xff] %v6824_v16   ;;  %v3209_v18 = vadd.f32 %v8385_v44, %v3208_v17  ;;  %v3493_v21 = vpop.f32.mrf.mxu3 }
 0x2e5   : > { %v2926_v22 = vpop.f32.mrf.mxu1  ;;  %7521 = vst [vmem:[%s7872_s29 + $0x120] sm:$0xff] %v6544_v46   ;;  %v3494_v25 = vadd.f32 %v8385_v44, %v3493_v21  ;;  %v6294_v21 = vld [vmem:[%s7784_s24 + $0x500] sm:$0xff] }
 0x2e6   : > { %v3885_v28 = vmax.f32 %v3209_v18, 0.0  ;;  %v2646_v29 = vpop.f32.mrf.mxu0  ;;  %v2927_v35 = vadd.f32 %v8385_v44, %v2926_v22 }
 0x2e7   : > { %v3999_v30 = vmax.f32 %v3494_v25, 0.0  ;;  %v2647_v34 = vadd.f32 %v8385_v44, %v2646_v29  ;;  %v6181_v25 = vld [vmem:[%s7784_s24 + $0x178] sm:$0xff] }
 0x2e8   : > { %v7109_v31 = vpack.c.bf16 %v3885_v28, %v3884_v27  ;;  %6008 = vmatmul.msk.bf16.gmra.mxu1 %vm1769_vm2, %v6235_v19  ;;  %6065 = vmatmul.msk.bf16.gmra.mxu2 %vm1769_vm2, %v6292_v20  ;;  %v3772_v42 = vmax.f32 %v2927_v35, 0.0  ;;  %v6237_v20 = vld [vmem:[%s7784_s24 + $0x338] sm:$0xff]  ;;  %v6351_v27 = vld [vmem:[%s7784_s24 + $0x6c8] sm:$0xff] }
 0x2e9   : > { %5952 = vmatmul.msk.bf16.gmra.mxu0 %vm1769_vm2, %v6179_v24  ;;  %v7394_v32 = vpack.c.bf16 %v3999_v30, %v3998_v23  ;;  %6122 = vmatmul.msk.bf16.gmra.mxu3 %vm1769_vm2, %v6349_v26  ;;  %v3660_v40 = vmax.f32 %v2647_v34, 0.0 }
 0x2ea   : > { %7634 = vst [vmem:[%s7872_s29 + $0x4a8] sm:$0xff] %v7109_v31  }
 0x2eb   : > { %v3211_v33 = vpop.f32.mrf.mxu2  ;;  %7691 = vst [vmem:[%s7872_s29 + $0x670] sm:$0xff] %v7394_v32  }
 0x2ec   : > { %v3496_v36 = vpop.f32.mrf.mxu3  ;;  %v3212_v48 = vadd.f32 %v8385_v44, %v3211_v33 }
 0x2ed   : > { %v2928_v37 = vpop.f32.mrf.mxu1  ;;  %v3497_v47 = vadd.f32 %v8385_v44, %v3496_v36 }
 0x2ee   : > { %v2929_v38 = vadd.f32 %v8385_v44, %v2928_v37  ;;  %v2648_v39 = vpop.f32.mrf.mxu0  ;;  %v3886_v60 = vmax.f32 %v3212_v48, 0.0 }
 0x2ef   : > { %v2649_v41 = vadd.f32 %v8385_v44, %v2648_v39  ;;  %v4000_v56 = vmax.f32 %v3497_v47, 0.0 }
 0x2f0   : > { %v3773_v43 = vmax.f32 %v2929_v38, 0.0 }
 0x2f1   : > { %v3661_v45 = vmax.f32 %v2649_v41, 0.0 }
 0x2f2   : > { %v6829_v49 = vpack.c.bf16 %v3773_v43, %v3772_v42 }
 0x2f3   : > { %v3213_v50 = vpop.f32.mrf.mxu2  ;;  %v6549_v51 = vpack.c.bf16 %v3661_v45, %v3660_v40 }
 0x2f4   : > { %7578 = vst [vmem:[%s7872_s29 + $0x2e8] sm:$0xff] %v6829_v49   ;;  %v3214_v52 = vadd.f32 %v8385_v44, %v3213_v50  ;;  %v3498_v54 = vpop.f32.mrf.mxu3 }
 0x2f5   : > { %v2931_v55 = vpop.f32.mrf.mxu1  ;;  %7522 = vst [vmem:[%s7872_s29 + $0x128] sm:$0xff] %v6549_v51   ;;  %v3499_v58 = vadd.f32 %v8385_v44, %v3498_v54  ;;  %v6295_v54 = vld [vmem:[%s7784_s24 + $0x508] sm:$0xff] }
 0x2f6   : > { %v3887_v61 = vmax.f32 %v3214_v52, 0.0  ;;  %v2651_v62 = vpop.f32.mrf.mxu0  ;;  %v2932_v4 = vadd.f32 %v8385_v44, %v2931_v55 }
 0x2f7   : > { %v4001_v63 = vmax.f32 %v3499_v58, 0.0  ;;  %v2652_v3 = vadd.f32 %v8385_v44, %v2651_v62  ;;  %v6182_v58 = vld [vmem:[%s7784_s24 + $0x180] sm:$0xff] }
 0x2f8   : > { %v7114_v0 = vpack.c.bf16 %v3887_v61, %v3886_v60  ;;  %6009 = vmatmul.msk.bf16.gmra.mxu1 %vm1769_vm2, %v6236_v13  ;;  %6066 = vmatmul.msk.bf16.gmra.mxu2 %vm1769_vm2, %v6293_v53  ;;  %v3774_v11 = vmax.f32 %v2932_v4, 0.0  ;;  %v6238_v53 = vld [vmem:[%s7784_s24 + $0x340] sm:$0xff]  ;;  %v6352_v60 = vld [vmem:[%s7784_s24 + $0x6d0] sm:$0xff] }
 0x2f9   : > { %5953 = vmatmul.msk.bf16.gmra.mxu0 %vm1769_vm2, %v6180_v57  ;;  %v7399_v1 = vpack.c.bf16 %v4001_v63, %v4000_v56  ;;  %6123 = vmatmul.msk.bf16.gmra.mxu3 %vm1769_vm2, %v6350_v59  ;;  %v3662_v9 = vmax.f32 %v2652_v3, 0.0 }
 0x2fa   : > { %7635 = vst [vmem:[%s7872_s29 + $0x4b0] sm:$0xff] %v7114_v0  }
 0x2fb   : > { %v3216_v2 = vpop.f32.mrf.mxu2  ;;  %7692 = vst [vmem:[%s7872_s29 + $0x678] sm:$0xff] %v7399_v1  }
 0x2fc   : > { %v3501_v5 = vpop.f32.mrf.mxu3  ;;  %v3217_v17 = vadd.f32 %v8647_v15, %v3216_v2 }
 0x2fd   : > { %v2933_v6 = vpop.f32.mrf.mxu1  ;;  %v3502_v16 = vadd.f32 %v8647_v15, %v3501_v5 }
 0x2fe   : > { %v2934_v7 = vadd.f32 %v8385_v44, %v2933_v6  ;;  %v2653_v8 = vpop.f32.mrf.mxu0  ;;  %v3888_v28 = vmax.f32 %v3217_v17, 0.0 }
 0x2ff   : > { %v2654_v10 = vadd.f32 %v8385_v44, %v2653_v8  ;;  %v4002_v24 = vmax.f32 %v3502_v16, 0.0 }
 0x300   : > { %v3775_v12 = vmax.f32 %v2934_v7, 0.0 }
 0x301   : > { %v3663_v14 = vmax.f32 %v2654_v10, 0.0 }
 0x302   : > { %v6834_v46 = vpack.c.bf16 %v3775_v12, %v3774_v11 }
 0x303   : > { %v3218_v18 = vpop.f32.mrf.mxu2  ;;  %v6554_v19 = vpack.c.bf16 %v3663_v14, %v3662_v9 }
 0x304   : > { %7579 = vst [vmem:[%s7872_s29 + $0x2f0] sm:$0xff] %v6834_v46   ;;  %v3219_v44 = vadd.f32 %v8647_v15, %v3218_v18  ;;  %v3503_v22 = vpop.f32.mrf.mxu3 }
 0x305   : > { %v2936_v23 = vpop.f32.mrf.mxu1  ;;  %7523 = vst [vmem:[%s7872_s29 + $0x130] sm:$0xff] %v6554_v19   ;;  %v3504_v26 = vadd.f32 %v8647_v15, %v3503_v22  ;;  %v6296_v22 = vld [vmem:[%s7784_s24 + $0x510] sm:$0xff] }
 0x306   : > { %v3889_v29 = vmax.f32 %v3219_v44, 0.0  ;;  %v2656_v30 = vpop.f32.mrf.mxu0  ;;  %v2937_v36 = vadd.f32 %v8647_v15, %v2936_v23 }
 0x307   : > { %v4003_v31 = vmax.f32 %v3504_v26, 0.0  ;;  %v2657_v35 = vadd.f32 %v8647_v15, %v2656_v30  ;;  %v6183_v26 = vld [vmem:[%s7784_s24 + $0x188] sm:$0xff] }
 0x308   : > { %v7119_v32 = vpack.c.bf16 %v3889_v29, %v3888_v28  ;;  %6010 = vmatmul.msk.bf16.gmra.mxu1 %vm1769_vm2, %v6237_v20  ;;  %6067 = vmatmul.msk.bf16.gmra.mxu2 %vm1769_vm2, %v6294_v21  ;;  %v3776_v43 = vmax.f32 %v2937_v36, 0.0  ;;  %v6239_v21 = vld [vmem:[%s7784_s24 + $0x348] sm:$0xff]  ;;  %v6353_v28 = vld [vmem:[%s7784_s24 + $0x6d8] sm:$0xff] }
 0x309   : > { %5954 = vmatmul.msk.bf16.gmra.mxu0 %vm1769_vm2, %v6181_v25  ;;  %v7404_v33 = vpack.c.bf16 %v4003_v31, %v4002_v24  ;;  %6124 = vmatmul.msk.bf16.gmra.mxu3 %vm1769_vm2, %v6351_v27  ;;  %v3664_v41 = vmax.f32 %v2657_v35, 0.0 }
 0x30a   : > { %7636 = vst [vmem:[%s7872_s29 + $0x4b8] sm:$0xff] %v7119_v32  }
 0x30b   : > { %v3221_v34 = vpop.f32.mrf.mxu2  ;;  %7693 = vst [vmem:[%s7872_s29 + $0x680] sm:$0xff] %v7404_v33  }
 0x30c   : > { %v3506_v37 = vpop.f32.mrf.mxu3  ;;  %v3222_v49 = vadd.f32 %v8647_v15, %v3221_v34 }
 0x30d   : > { %v2938_v38 = vpop.f32.mrf.mxu1  ;;  %v3507_v48 = vadd.f32 %v8647_v15, %v3506_v37 }
 0x30e   : > { %v2939_v39 = vadd.f32 %v8647_v15, %v2938_v38  ;;  %v2658_v40 = vpop.f32.mrf.mxu0  ;;  %v3890_v61 = vmax.f32 %v3222_v49, 0.0 }
 0x30f   : > { %v2659_v42 = vadd.f32 %v8647_v15, %v2658_v40  ;;  %v4004_v57 = vmax.f32 %v3507_v48, 0.0 }
 0x310   : > { %v3777_v45 = vmax.f32 %v2939_v39, 0.0 }
 0x311   : > { %v3665_v47 = vmax.f32 %v2659_v42, 0.0 }
 0x312   : > { %v6839_v50 = vpack.c.bf16 %v3777_v45, %v3776_v43 }
 0x313   : > { %v3223_v51 = vpop.f32.mrf.mxu2  ;;  %v6559_v52 = vpack.c.bf16 %v3665_v47, %v3664_v41 }
 0x314   : > { %7580 = vst [vmem:[%s7872_s29 + $0x2f8] sm:$0xff] %v6839_v50   ;;  %v3224_v13 = vadd.f32 %v8647_v15, %v3223_v51  ;;  %v3508_v55 = vpop.f32.mrf.mxu3 }
 0x315   : > { %v2941_v56 = vpop.f32.mrf.mxu1  ;;  %7524 = vst [vmem:[%s7872_s29 + $0x138] sm:$0xff] %v6559_v52   ;;  %v3509_v59 = vadd.f32 %v8647_v15, %v3508_v55  ;;  %v6297_v55 = vld [vmem:[%s7784_s24 + $0x518] sm:$0xff] }
 0x316   : > { %v3891_v62 = vmax.f32 %v3224_v13, 0.0  ;;  %v2661_v63 = vpop.f32.mrf.mxu0  ;;  %v2942_v5 = vadd.f32 %v8647_v15, %v2941_v56 }
 0x317   : > { %v4005_v0 = vmax.f32 %v3509_v59, 0.0  ;;  %v2662_v4 = vadd.f32 %v8647_v15, %v2661_v63  ;;  %v6184_v59 = vld [vmem:[%s7784_s24 + $0x190] sm:$0xff] }
 0x318   : > { %v7124_v1 = vpack.c.bf16 %v3891_v62, %v3890_v61  ;;  %6011 = vmatmul.msk.bf16.gmra.mxu1 %vm1769_vm2, %v6238_v53  ;;  %6068 = vmatmul.msk.bf16.gmra.mxu2 %vm1769_vm2, %v6295_v54  ;;  %v3778_v12 = vmax.f32 %v2942_v5, 0.0  ;;  %v6240_v54 = vld [vmem:[%s7784_s24 + $0x350] sm:$0xff]  ;;  %v6354_v61 = vld [vmem:[%s7784_s24 + $0x6e0] sm:$0xff] }
 0x319   : > { %5955 = vmatmul.msk.bf16.gmra.mxu0 %vm1769_vm2, %v6182_v58  ;;  %v7409_v2 = vpack.c.bf16 %v4005_v0, %v4004_v57  ;;  %6125 = vmatmul.msk.bf16.gmra.mxu3 %vm1769_vm2, %v6352_v60  ;;  %v3666_v10 = vmax.f32 %v2662_v4, 0.0 }
 0x31a   : > { %7637 = vst [vmem:[%s7872_s29 + $0x4c0] sm:$0xff] %v7124_v1  }
 0x31b   : > { %v3226_v3 = vpop.f32.mrf.mxu2  ;;  %7694 = vst [vmem:[%s7872_s29 + $0x688] sm:$0xff] %v7409_v2  }
 0x31c   : > { %v3511_v6 = vpop.f32.mrf.mxu3  ;;  %v3227_v46 = vadd.f32 %v8647_v15, %v3226_v3 }
 0x31d   : > { %v2943_v7 = vpop.f32.mrf.mxu1  ;;  %v3512_v17 = vadd.f32 %v8647_v15, %v3511_v6 }
 0x31e   : > { %v2944_v8 = vadd.f32 %v8647_v15, %v2943_v7  ;;  %v2663_v9 = vpop.f32.mrf.mxu0  ;;  %v3892_v29 = vmax.f32 %v3227_v46, 0.0 }
 0x31f   : > { %v2664_v11 = vadd.f32 %v8647_v15, %v2663_v9  ;;  %v4006_v25 = vmax.f32 %v3512_v17, 0.0 }
 0x320   : > { %v3779_v14 = vmax.f32 %v2944_v8, 0.0 }
 0x321   : > { %v3667_v16 = vmax.f32 %v2664_v11, 0.0 }
 0x322   : > { %v6844_v18 = vpack.c.bf16 %v3779_v14, %v3778_v12 }
 0x323   : > { %v3228_v19 = vpop.f32.mrf.mxu2  ;;  %v6564_v44 = vpack.c.bf16 %v3667_v16, %v3666_v10 }
 0x324   : > { %7581 = vst [vmem:[%s7872_s29 + $0x300] sm:$0xff] %v6844_v18   ;;  %v3229_v20 = vadd.f32 %v8647_v15, %v3228_v19  ;;  %v3513_v23 = vpop.f32.mrf.mxu3 }
 0x325   : > { %v2946_v24 = vpop.f32.mrf.mxu1  ;;  %7525 = vst [vmem:[%s7872_s29 + $0x140] sm:$0xff] %v6564_v44   ;;  %v3514_v27 = vadd.f32 %v8647_v15, %v3513_v23  ;;  %v6298_v23 = vld [vmem:[%s7784_s24 + $0x520] sm:$0xff] }
 0x326   : > { %v3893_v30 = vmax.f32 %v3229_v20, 0.0  ;;  %v2666_v31 = vpop.f32.mrf.mxu0  ;;  %v2947_v37 = vadd.f32 %v8647_v15, %v2946_v24 }
 0x327   : > { %v4007_v32 = vmax.f32 %v3514_v27, 0.0  ;;  %v2667_v36 = vadd.f32 %v8647_v15, %v2666_v31  ;;  %v6185_v27 = vld [vmem:[%s7784_s24 + $0x198] sm:$0xff] }
 0x328   : > { %v7129_v33 = vpack.c.bf16 %v3893_v30, %v3892_v29  ;;  %6012 = vmatmul.msk.bf16.gmra.mxu1 %vm1769_vm2, %v6239_v21  ;;  %6069 = vmatmul.msk.bf16.gmra.mxu2 %vm1769_vm2, %v6296_v22  ;;  %v3780_v45 = vmax.f32 %v2947_v37, 0.0  ;;  %v6241_v22 = vld [vmem:[%s7784_s24 + $0x358] sm:$0xff]  ;;  %v6355_v29 = vld [vmem:[%s7784_s24 + $0x6e8] sm:$0xff] }
 0x329   : > { %5956 = vmatmul.msk.bf16.gmra.mxu0 %vm1769_vm2, %v6183_v26  ;;  %v7414_v34 = vpack.c.bf16 %v4007_v32, %v4006_v25  ;;  %6126 = vmatmul.msk.bf16.gmra.mxu3 %vm1769_vm2, %v6353_v28  ;;  %v3668_v42 = vmax.f32 %v2667_v36, 0.0 }
 0x32a   : > { %7638 = vst [vmem:[%s7872_s29 + $0x4c8] sm:$0xff] %v7129_v33  }
 0x32b   : > { %v3231_v35 = vpop.f32.mrf.mxu2  ;;  %7695 = vst [vmem:[%s7872_s29 + $0x690] sm:$0xff] %v7414_v34  }
 0x32c   : > { %v3516_v38 = vpop.f32.mrf.mxu3  ;;  %v3232_v50 = vadd.f32 %v8647_v15, %v3231_v35 }
 0x32d   : > { %v2948_v39 = vpop.f32.mrf.mxu1  ;;  %v3517_v49 = vadd.f32 %v8647_v15, %v3516_v38 }
 0x32e   : > { %v2949_v40 = vadd.f32 %v8647_v15, %v2948_v39  ;;  %v2668_v41 = vpop.f32.mrf.mxu0  ;;  %v3894_v62 = vmax.f32 %v3232_v50, 0.0 }
 0x32f   : > { %v2669_v43 = vadd.f32 %v8647_v15, %v2668_v41  ;;  %v4008_v58 = vmax.f32 %v3517_v49, 0.0 }
 0x330   : > { %v3781_v47 = vmax.f32 %v2949_v40, 0.0 }
 0x331   : > { %v3669_v48 = vmax.f32 %v2669_v43, 0.0 }
 0x332   : > { %v6849_v51 = vpack.c.bf16 %v3781_v47, %v3780_v45 }
 0x333   : > { %v3233_v52 = vpop.f32.mrf.mxu2  ;;  %v6569_v13 = vpack.c.bf16 %v3669_v48, %v3668_v42 }
 0x334   : > { %7582 = vst [vmem:[%s7872_s29 + $0x308] sm:$0xff] %v6849_v51   ;;  %v3234_v53 = vadd.f32 %v8647_v15, %v3233_v52  ;;  %v3518_v56 = vpop.f32.mrf.mxu3 }
 0x335   : > { %v2951_v57 = vpop.f32.mrf.mxu1  ;;  %7526 = vst [vmem:[%s7872_s29 + $0x148] sm:$0xff] %v6569_v13   ;;  %v3519_v60 = vadd.f32 %v8647_v15, %v3518_v56  ;;  %v6299_v56 = vld [vmem:[%s7784_s24 + $0x528] sm:$0xff] }
 0x336   : > { %v3895_v63 = vmax.f32 %v3234_v53, 0.0  ;;  %v2671_v0 = vpop.f32.mrf.mxu0  ;;  %v2952_v6 = vadd.f32 %v8647_v15, %v2951_v57 }
 0x337   : > { %v4009_v1 = vmax.f32 %v3519_v60, 0.0  ;;  %v2672_v5 = vadd.f32 %v8647_v15, %v2671_v0  ;;  %v6186_v60 = vld [vmem:[%s7784_s24 + $0x1a0] sm:$0xff] }
 0x338   : > { %v7134_v2 = vpack.c.bf16 %v3895_v63, %v3894_v62  ;;  %6013 = vmatmul.msk.bf16.gmra.mxu1 %vm1769_vm2, %v6240_v54  ;;  %6070 = vmatmul.msk.bf16.gmra.mxu2 %vm1769_vm2, %v6297_v55  ;;  %v3782_v14 = vmax.f32 %v2952_v6, 0.0  ;;  %v6242_v55 = vld [vmem:[%s7784_s24 + $0x360] sm:$0xff]  ;;  %v6356_v62 = vld [vmem:[%s7784_s24 + $0x6f0] sm:$0xff] }
 0x339   : > { %5957 = vmatmul.msk.bf16.gmra.mxu0 %vm1769_vm2, %v6184_v59  ;;  %v7419_v3 = vpack.c.bf16 %v4009_v1, %v4008_v58  ;;  %6127 = vmatmul.msk.bf16.gmra.mxu3 %vm1769_vm2, %v6354_v61  ;;  %v3670_v11 = vmax.f32 %v2672_v5, 0.0 }
 0x33a   : > { %7639 = vst [vmem:[%s7872_s29 + $0x4d0] sm:$0xff] %v7134_v2  }
 0x33b   : > { %v3236_v4 = vpop.f32.mrf.mxu2  ;;  %7696 = vst [vmem:[%s7872_s29 + $0x698] sm:$0xff] %v7419_v3  }
 0x33c   : > { %v3521_v7 = vpop.f32.mrf.mxu3  ;;  %v3237_v18 = vadd.f32 %v8647_v15, %v3236_v4 }
 0x33d   : > { %v2953_v8 = vpop.f32.mrf.mxu1  ;;  %v3522_v46 = vadd.f32 %v8647_v15, %v3521_v7 }
 0x33e   : > { %v2954_v9 = vadd.f32 %v8647_v15, %v2953_v8  ;;  %v2673_v10 = vpop.f32.mrf.mxu0  ;;  %v3896_v30 = vmax.f32 %v3237_v18, 0.0 }
 0x33f   : > { %v2674_v12 = vadd.f32 %v8647_v15, %v2673_v10  ;;  %v4010_v26 = vmax.f32 %v3522_v46, 0.0 }
 0x340   : > { %v3783_v16 = vmax.f32 %v2954_v9, 0.0 }
 0x341   : > { %v3671_v17 = vmax.f32 %v2674_v12, 0.0 }
 0x342   : > { %v6854_v19 = vpack.c.bf16 %v3783_v16, %v3782_v14 }
 0x343   : > { %v3238_v44 = vpop.f32.mrf.mxu2  ;;  %v6574_v20 = vpack.c.bf16 %v3671_v17, %v3670_v11 }
 0x344   : > { %7583 = vst [vmem:[%s7872_s29 + $0x310] sm:$0xff] %v6854_v19   ;;  %v3239_v21 = vadd.f32 %v8647_v15, %v3238_v44  ;;  %v3523_v24 = vpop.f32.mrf.mxu3 }
 0x345   : > { %v2956_v25 = vpop.f32.mrf.mxu1  ;;  %7527 = vst [vmem:[%s7872_s29 + $0x150] sm:$0xff] %v6574_v20   ;;  %v3524_v28 = vadd.f32 %v8647_v15, %v3523_v24  ;;  %v6300_v24 = vld [vmem:[%s7784_s24 + $0x530] sm:$0xff] }
 0x346   : > { %v3897_v31 = vmax.f32 %v3239_v21, 0.0  ;;  %v2676_v32 = vpop.f32.mrf.mxu0  ;;  %v2957_v38 = vadd.f32 %v8647_v15, %v2956_v25 }
 0x347   : > { %v4011_v33 = vmax.f32 %v3524_v28, 0.0  ;;  %v2677_v37 = vadd.f32 %v8647_v15, %v2676_v32  ;;  %v6187_v28 = vld [vmem:[%s7784_s24 + $0x1a8] sm:$0xff] }
 0x348   : > { %v7139_v34 = vpack.c.bf16 %v3897_v31, %v3896_v30  ;;  %6014 = vmatmul.msk.bf16.gmra.mxu1 %vm1769_vm2, %v6241_v22  ;;  %6071 = vmatmul.msk.bf16.gmra.mxu2 %vm1769_vm2, %v6298_v23  ;;  %v3784_v47 = vmax.f32 %v2957_v38, 0.0  ;;  %v6243_v23 = vld [vmem:[%s7784_s24 + $0x368] sm:$0xff]  ;;  %v6357_v30 = vld [vmem:[%s7784_s24 + $0x6f8] sm:$0xff] }
 0x349   : > { %5958 = vmatmul.msk.bf16.gmra.mxu0 %vm1769_vm2, %v6185_v27  ;;  %v7424_v35 = vpack.c.bf16 %v4011_v33, %v4010_v26  ;;  %6128 = vmatmul.msk.bf16.gmra.mxu3 %vm1769_vm2, %v6355_v29  ;;  %v3672_v43 = vmax.f32 %v2677_v37, 0.0 }
 0x34a   : > { %7640 = vst [vmem:[%s7872_s29 + $0x4d8] sm:$0xff] %v7139_v34  }
 0x34b   : > { %v3241_v36 = vpop.f32.mrf.mxu2  ;;  %7697 = vst [vmem:[%s7872_s29 + $0x6a0] sm:$0xff] %v7424_v35  }
 0x34c   : > { %v3526_v39 = vpop.f32.mrf.mxu3  ;;  %v3242_v51 = vadd.f32 %v8647_v15, %v3241_v36 }
 0x34d   : > { %v2958_v40 = vpop.f32.mrf.mxu1  ;;  %v3527_v50 = vadd.f32 %v8647_v15, %v3526_v39 }
 0x34e   : > { %v2959_v41 = vadd.f32 %v8647_v15, %v2958_v40  ;;  %v2678_v42 = vpop.f32.mrf.mxu0  ;;  %v3898_v63 = vmax.f32 %v3242_v51, 0.0 }
 0x34f   : > { %v2679_v45 = vadd.f32 %v8647_v15, %v2678_v42  ;;  %v4012_v59 = vmax.f32 %v3527_v50, 0.0 }
 0x350   : > { %v3785_v48 = vmax.f32 %v2959_v41, 0.0 }
 0x351   : > { %v3673_v49 = vmax.f32 %v2679_v45, 0.0 }
 0x352   : > { %v6859_v52 = vpack.c.bf16 %v3785_v48, %v3784_v47 }
 0x353   : > { %v3243_v13 = vpop.f32.mrf.mxu2  ;;  %v6579_v53 = vpack.c.bf16 %v3673_v49, %v3672_v43 }
 0x354   : > { %7584 = vst [vmem:[%s7872_s29 + $0x318] sm:$0xff] %v6859_v52   ;;  %v3244_v54 = vadd.f32 %v8647_v15, %v3243_v13  ;;  %v3528_v57 = vpop.f32.mrf.mxu3 }
 0x355   : > { %v2961_v58 = vpop.f32.mrf.mxu1  ;;  %7528 = vst [vmem:[%s7872_s29 + $0x158] sm:$0xff] %v6579_v53   ;;  %v3529_v61 = vadd.f32 %v8647_v15, %v3528_v57  ;;  %v6301_v57 = vld [vmem:[%s7784_s24 + $0x538] sm:$0xff] }
 0x356   : > { %v3899_v0 = vmax.f32 %v3244_v54, 0.0  ;;  %v2681_v1 = vpop.f32.mrf.mxu0  ;;  %v2962_v7 = vadd.f32 %v8647_v15, %v2961_v58 }
 0x357   : > { %v4013_v2 = vmax.f32 %v3529_v61, 0.0  ;;  %v2682_v6 = vadd.f32 %v8647_v15, %v2681_v1  ;;  %v6188_v61 = vld [vmem:[%s7784_s24 + $0x1b0] sm:$0xff] }
 0x358   : > { %v7144_v3 = vpack.c.bf16 %v3899_v0, %v3898_v63  ;;  %6015 = vmatmul.msk.bf16.gmra.mxu1 %vm1769_vm2, %v6242_v55  ;;  %6072 = vmatmul.msk.bf16.gmra.mxu2 %vm1769_vm2, %v6299_v56  ;;  %v3786_v16 = vmax.f32 %v2962_v7, 0.0  ;;  %v6244_v56 = vld [vmem:[%s7784_s24 + $0x370] sm:$0xff]  ;;  %v6358_v63 = vld [vmem:[%s7784_s24 + $0x700] sm:$0xff] }
 0x359   : > { %5959 = vmatmul.msk.bf16.gmra.mxu0 %vm1769_vm2, %v6186_v60  ;;  %v7429_v4 = vpack.c.bf16 %v4013_v2, %v4012_v59  ;;  %6129 = vmatmul.msk.bf16.gmra.mxu3 %vm1769_vm2, %v6356_v62  ;;  %v3674_v12 = vmax.f32 %v2682_v6, 0.0 }
 0x35a   : > { %7641 = vst [vmem:[%s7872_s29 + $0x4e0] sm:$0xff] %v7144_v3  }
 0x35b   : > { %v3246_v5 = vpop.f32.mrf.mxu2  ;;  %7698 = vst [vmem:[%s7872_s29 + $0x6a8] sm:$0xff] %v7429_v4  }
 0x35c   : > { %v3531_v8 = vpop.f32.mrf.mxu3  ;;  %v3247_v19 = vadd.f32 %v8647_v15, %v3246_v5 }
 0x35d   : > { %v2963_v9 = vpop.f32.mrf.mxu1  ;;  %v3532_v18 = vadd.f32 %v8647_v15, %v3531_v8 }
 0x35e   : > { %v2964_v10 = vadd.f32 %v8647_v15, %v2963_v9  ;;  %v2683_v11 = vpop.f32.mrf.mxu0  ;;  %v3900_v31 = vmax.f32 %v3247_v19, 0.0 }
 0x35f   : > { %v2684_v14 = vadd.f32 %v8647_v15, %v2683_v11  ;;  %v4014_v27 = vmax.f32 %v3532_v18, 0.0 }
 0x360   : > { %v3787_v17 = vmax.f32 %v2964_v10, 0.0 }
 0x361   : > { %v3675_v46 = vmax.f32 %v2684_v14, 0.0 }
 0x362   : > { %v6864_v44 = vpack.c.bf16 %v3787_v17, %v3786_v16 }
 0x363   : > { %v3248_v20 = vpop.f32.mrf.mxu2  ;;  %v6584_v21 = vpack.c.bf16 %v3675_v46, %v3674_v12 }
 0x364   : > { %7585 = vst [vmem:[%s7872_s29 + $0x320] sm:$0xff] %v6864_v44   ;;  %v3249_v22 = vadd.f32 %v8647_v15, %v3248_v20  ;;  %v3533_v25 = vpop.f32.mrf.mxu3 }
 0x365   : > { %v2966_v26 = vpop.f32.mrf.mxu1  ;;  %7529 = vst [vmem:[%s7872_s29 + $0x160] sm:$0xff] %v6584_v21   ;;  %v3534_v29 = vadd.f32 %v8647_v15, %v3533_v25  ;;  %v6302_v25 = vld [vmem:[%s7784_s24 + $0x540] sm:$0xff] }
 0x366   : > { %v3901_v32 = vmax.f32 %v3249_v22, 0.0  ;;  %v2686_v33 = vpop.f32.mrf.mxu0  ;;  %v2967_v39 = vadd.f32 %v8647_v15, %v2966_v26 }
 0x367   : > { %v4015_v34 = vmax.f32 %v3534_v29, 0.0  ;;  %v2687_v38 = vadd.f32 %v8647_v15, %v2686_v33  ;;  %v6189_v29 = vld [vmem:[%s7784_s24 + $0x1b8] sm:$0xff] }
 0x368   : > { %v7149_v35 = vpack.c.bf16 %v3901_v32, %v3900_v31  ;;  %6016 = vmatmul.msk.bf16.gmra.mxu1 %vm1769_vm2, %v6243_v23  ;;  %6073 = vmatmul.msk.bf16.gmra.mxu2 %vm1769_vm2, %v6300_v24  ;;  %v3788_v48 = vmax.f32 %v2967_v39, 0.0  ;;  %v6245_v24 = vld [vmem:[%s7784_s24 + $0x378] sm:$0xff] }
 0x369   : > { %5960 = vmatmul.msk.bf16.gmra.mxu0 %vm1769_vm2, %v6187_v28  ;;  %v7434_v36 = vpack.c.bf16 %v4015_v34, %v4014_v27  ;;  %6130 = vmatmul.msk.bf16.gmra.mxu3 %vm1769_vm2, %v6357_v30  ;;  %v3676_v45 = vmax.f32 %v2687_v38, 0.0 }
 0x36a   : > { %7642 = vst [vmem:[%s7872_s29 + $0x4e8] sm:$0xff] %v7149_v35  }
 0x36b   : > { %v3251_v37 = vpop.f32.mrf.mxu2  ;;  %7699 = vst [vmem:[%s7872_s29 + $0x6b0] sm:$0xff] %v7434_v36  }
 0x36c   : > { %v3536_v40 = vpop.f32.mrf.mxu3  ;;  %v3252_v52 = vadd.f32 %v8647_v15, %v3251_v37 }
 0x36d   : > { %v2968_v41 = vpop.f32.mrf.mxu1  ;;  %v3537_v51 = vadd.f32 %v8647_v15, %v3536_v40 }
 0x36e   : > { %v2969_v42 = vadd.f32 %v8647_v15, %v2968_v41  ;;  %v2688_v43 = vpop.f32.mrf.mxu0  ;;  %v3902_v0 = vmax.f32 %v3252_v52, 0.0 }
 0x36f   : > { %v2689_v47 = vadd.f32 %v8647_v15, %v2688_v43  ;;  %v4016_v60 = vmax.f32 %v3537_v51, 0.0 }
 0x370   : > { %v3789_v49 = vmax.f32 %v2969_v42, 0.0 }
 0x371   : > { %v3677_v50 = vmax.f32 %v2689_v47, 0.0 }
 0x372   : > { %v6869_v13 = vpack.c.bf16 %v3789_v49, %v3788_v48 }
 0x373   : > { %v3253_v53 = vpop.f32.mrf.mxu2  ;;  %v6589_v54 = vpack.c.bf16 %v3677_v50, %v3676_v45 }
 0x374   : > { %7586 = vst [vmem:[%s7872_s29 + $0x328] sm:$0xff] %v6869_v13   ;;  %v3254_v55 = vadd.f32 %v8647_v15, %v3253_v53  ;;  %v3538_v58 = vpop.f32.mrf.mxu3 }
 0x375   : > { %v2971_v59 = vpop.f32.mrf.mxu1  ;;  %7530 = vst [vmem:[%s7872_s29 + $0x168] sm:$0xff] %v6589_v54   ;;  %v3539_v62 = vadd.f32 %v8647_v15, %v3538_v58 }
 0x376   : > { %v3903_v1 = vmax.f32 %v3254_v55, 0.0  ;;  %v2691_v2 = vpop.f32.mrf.mxu0  ;;  %v2972_v8 = vadd.f32 %v8647_v15, %v2971_v59 }
 0x377   : > { %v4017_v3 = vmax.f32 %v3539_v62, 0.0  ;;  %v2692_v7 = vadd.f32 %v8647_v15, %v2691_v2 }
 0x378   : > { %v7154_v4 = vpack.c.bf16 %v3903_v1, %v3902_v0  ;;  %6017 = vmatmul.msk.bf16.gmra.mxu1 %vm1769_vm2, %v6244_v56  ;;  %6074 = vmatmul.msk.bf16.gmra.mxu2 %vm1769_vm2, %v6301_v57  ;;  %v3790_v17 = vmax.f32 %v2972_v8, 0.0  ;;  %v6246_v56 = vld [vmem:[%s7784_s24 + $0x380] sm:$0xff]  ;;  %v6303_v57 = vld [vmem:[%s7784_s24 + $0x548] sm:$0xff] }
 0x379   : > { %5961 = vmatmul.msk.bf16.gmra.mxu0 %vm1769_vm2, %v6188_v61  ;;  %v7439_v5 = vpack.c.bf16 %v4017_v3, %v4016_v60  ;;  %6131 = vmatmul.msk.bf16.gmra.mxu3 %vm1769_vm2, %v6358_v63  ;;  %v3678_v14 = vmax.f32 %v2692_v7, 0.0 }
 0x37a   : > { %7643 = vst [vmem:[%s7872_s29 + $0x4f0] sm:$0xff] %v7154_v4  }
 0x37b   : > { %v3256_v6 = vpop.f32.mrf.mxu2  ;;  %7700 = vst [vmem:[%s7872_s29 + $0x6b8] sm:$0xff] %v7439_v5  }
 0x37c   : > { %v3541_v9 = vpop.f32.mrf.mxu3  ;;  %v3257_v44 = vadd.f32 %v8647_v15, %v3256_v6 }
 0x37d   : > { %v2973_v10 = vpop.f32.mrf.mxu1  ;;  %v3542_v19 = vadd.f32 %v8647_v15, %v3541_v9 }
 0x37e   : > { %v2974_v11 = vadd.f32 %v8647_v15, %v2973_v10  ;;  %v2693_v12 = vpop.f32.mrf.mxu0  ;;  %v3904_v31 = vmax.f32 %v3257_v44, 0.0 }
 0x37f   : > { %v2694_v16 = vadd.f32 %v8647_v15, %v2693_v12  ;;  %v4018_v28 = vmax.f32 %v3542_v19, 0.0 }
 0x380   : > { %v3791_v46 = vmax.f32 %v2974_v11, 0.0 }
 0x381   : > { %v3679_v18 = vmax.f32 %v2694_v16, 0.0 }
 0x382   : > { %v6874_v20 = vpack.c.bf16 %v3791_v46, %v3790_v17 }
 0x383   : > { %v3258_v21 = vpop.f32.mrf.mxu2  ;;  %v6594_v22 = vpack.c.bf16 %v3679_v18, %v3678_v14 }
 0x384   : > { %7587 = vst [vmem:[%s7872_s29 + $0x330] sm:$0xff] %v6874_v20   ;;  %v3259_v23 = vadd.f32 %v8647_v15, %v3258_v21  ;;  %v3543_v26 = vpop.f32.mrf.mxu3 }
 0x385   : > { %v2976_v27 = vpop.f32.mrf.mxu1  ;;  %7531 = vst [vmem:[%s7872_s29 + $0x170] sm:$0xff] %v6594_v22   ;;  %v3544_v30 = vadd.f32 %v8647_v15, %v3543_v26 }
 0x386   : > { %v3905_v32 = vmax.f32 %v3259_v23, 0.0  ;;  %v2696_v33 = vpop.f32.mrf.mxu0  ;;  %v2977_v39 = vadd.f32 %v8647_v15, %v2976_v27 }
 0x387   : > { %v4019_v34 = vmax.f32 %v3544_v30, 0.0  ;;  %v2697_v38 = vadd.f32 %v8647_v15, %v2696_v33 }
 0x388   : > { %v7159_v35 = vpack.c.bf16 %v3905_v32, %v3904_v31  ;;  %6018 = vmatmul.msk.bf16.gmra.mxu1 %vm1769_vm2, %v6245_v24  ;;  %6075 = vmatmul.msk.bf16.gmra.mxu2 %vm1769_vm2, %v6302_v25  ;;  %v3792_v48 = vmax.f32 %v2977_v39, 0.0 }
 0x389   : > { %5962 = vmatmul.msk.bf16.gmra.mxu0 %vm1769_vm2, %v6189_v29  ;;  %v7444_v36 = vpack.c.bf16 %v4019_v34, %v4018_v28  ;;  %v3680_v45 = vmax.f32 %v2697_v38, 0.0 }
 0x38a   : > { %7644 = vst [vmem:[%s7872_s29 + $0x4f8] sm:$0xff] %v7159_v35  }
 0x38b   : > { %v3261_v37 = vpop.f32.mrf.mxu2  ;;  %7701 = vst [vmem:[%s7872_s29 + $0x6c0] sm:$0xff] %v7444_v36  }
 0x38c   : > { %v3546_v40 = vpop.f32.mrf.mxu3  ;;  %v3262_v52 = vadd.f32 %v8647_v15, %v3261_v37 }
 0x38d   : > { %v2978_v41 = vpop.f32.mrf.mxu1  ;;  %v3547_v51 = vadd.f32 %v8647_v15, %v3546_v40 }
 0x38e   : > { %v2979_v42 = vadd.f32 %v8647_v15, %v2978_v41  ;;  %v2698_v43 = vpop.f32.mrf.mxu0  ;;  %v3906_v62 = vmax.f32 %v3262_v52, 0.0 }
 0x38f   : > { %v2699_v47 = vadd.f32 %v8647_v15, %v2698_v43  ;;  %v4020_v60 = vmax.f32 %v3547_v51, 0.0 }
 0x390   : > { %v3793_v49 = vmax.f32 %v2979_v42, 0.0 }
 0x391   : > { %v3681_v50 = vmax.f32 %v2699_v47, 0.0 }
 0x392   : > { %v6879_v13 = vpack.c.bf16 %v3793_v49, %v3792_v48 }
 0x393   : > { %v3263_v53 = vpop.f32.mrf.mxu2  ;;  %v6599_v54 = vpack.c.bf16 %v3681_v50, %v3680_v45 }
 0x394   : > { %7588 = vst [vmem:[%s7872_s29 + $0x338] sm:$0xff] %v6879_v13   ;;  %v3264_v55 = vadd.f32 %v8647_v15, %v3263_v53  ;;  %v3548_v58 = vpop.f32.mrf.mxu3 }
 0x395   : > { %v2981_v59 = vpop.f32.mrf.mxu1  ;;  %7532 = vst [vmem:[%s7872_s29 + $0x178] sm:$0xff] %v6599_v54   ;;  %v3549_v61 = vadd.f32 %v8647_v15, %v3548_v58 }
 0x396   : > { %v3907_v63 = vmax.f32 %v3264_v55, 0.0  ;;  %v2701_v0 = vpop.f32.mrf.mxu0  ;;  %v2982_v6 = vadd.f32 %v8647_v15, %v2981_v59 }
 0x397   : > { %v4021_v1 = vmax.f32 %v3549_v61, 0.0  ;;  %v2702_v5 = vadd.f32 %v8647_v15, %v2701_v0 }
 0x398   : > { %v7164_v2 = vpack.c.bf16 %v3907_v63, %v3906_v62  ;;  %6019 = vmatmul.msk.bf16.gmra.mxu1 %vm1769_vm2, %v6246_v56  ;;  %6076 = vmatmul.msk.bf16.gmra.mxu2 %vm1769_vm2, %v6303_v57  ;;  %v3794_v14 = vmax.f32 %v2982_v6, 0.0 }
 0x399   : > { %v7449_v3 = vpack.c.bf16 %v4021_v1, %v4020_v60  ;;  %v3682_v11 = vmax.f32 %v2702_v5, 0.0 }
 0x39a   : > { %7645 = vst [vmem:[%s7872_s29 + $0x500] sm:$0xff] %v7164_v2  }
 0x39b   : > { %v3266_v4 = vpop.f32.mrf.mxu2  ;;  %7702 = vst [vmem:[%s7872_s29 + $0x6c8] sm:$0xff] %v7449_v3  }
 0x39c   : > { %v3551_v7 = vpop.f32.mrf.mxu3  ;;  %v3267_v18 = vadd.f32 %v8647_v15, %v3266_v4 }
 0x39d   : > { %v2983_v8 = vpop.f32.mrf.mxu1  ;;  %v3552_v46 = vadd.f32 %v8647_v15, %v3551_v7 }
 0x39e   : > { %v2984_v9 = vadd.f32 %v8647_v15, %v2983_v8  ;;  %v2703_v10 = vpop.f32.mrf.mxu0  ;;  %v3908_v26 = vmax.f32 %v3267_v18, 0.0 }
 0x39f   : > { %v2704_v12 = vadd.f32 %v8647_v15, %v2703_v10  ;;  %v4022_v24 = vmax.f32 %v3552_v46, 0.0 }
 0x3a0   : > { %v3795_v16 = vmax.f32 %v2984_v9, 0.0 }
 0x3a1   : > { %v3683_v17 = vmax.f32 %v2704_v12, 0.0 }
 0x3a2   : > { %v6884_v19 = vpack.c.bf16 %v3795_v16, %v3794_v14 }
 0x3a3   : > { %v3268_v44 = vpop.f32.mrf.mxu2  ;;  %v6604_v20 = vpack.c.bf16 %v3683_v17, %v3682_v11 }
 0x3a4   : > { %7589 = vst [vmem:[%s7872_s29 + $0x340] sm:$0xff] %v6884_v19   ;;  %v3269_v21 = vadd.f32 %v8647_v15, %v3268_v44  ;;  %v3553_v22 = vpop.f32.mrf.mxu3 }
 0x3a5   : > { %v2986_v23 = vpop.f32.mrf.mxu1  ;;  %7533 = vst [vmem:[%s7872_s29 + $0x180] sm:$0xff] %v6604_v20   ;;  %v3554_v25 = vadd.f32 %v8647_v15, %v3553_v22 }
 0x3a6   : > { %v3909_v27 = vmax.f32 %v3269_v21, 0.0  ;;  %v2706_v28 = vpop.f32.mrf.mxu0  ;;  %v2987_v34 = vadd.f32 %v8647_v15, %v2986_v23 }
 0x3a7   : > { %v4023_v29 = vmax.f32 %v3554_v25, 0.0  ;;  %v2707_v33 = vadd.f32 %v8647_v15, %v2706_v28 }
 0x3a8   : > { %v7169_v30 = vpack.c.bf16 %v3909_v27, %v3908_v26  ;;  %v3796_v41 = vmax.f32 %v2987_v34, 0.0 }
 0x3a9   : > { %v7454_v31 = vpack.c.bf16 %v4023_v29, %v4022_v24  ;;  %v3684_v39 = vmax.f32 %v2707_v33, 0.0 }
 0x3aa   : > { %7646 = vst [vmem:[%s7872_s29 + $0x508] sm:$0xff] %v7169_v30  }
 0x3ab   : > { %v3271_v32 = vpop.f32.mrf.mxu2  ;;  %7703 = vst [vmem:[%s7872_s29 + $0x6d0] sm:$0xff] %v7454_v31  }
 0x3ac   : > { %v3556_v35 = vpop.f32.mrf.mxu3  ;;  %v3272_v47 = vadd.f32 %v8647_v15, %v3271_v32 }
 0x3ad   : > { %v2988_v36 = vpop.f32.mrf.mxu1  ;;  %v3557_v45 = vadd.f32 %v8647_v15, %v3556_v35 }
 0x3ae   : > { %v2989_v37 = vadd.f32 %v8647_v15, %v2988_v36  ;;  %v2708_v38 = vpop.f32.mrf.mxu0  ;;  %v3910_v55 = vmax.f32 %v3272_v47, 0.0 }
 0x3af   : > { %v2709_v40 = vadd.f32 %v8647_v15, %v2708_v38  ;;  %v4024_v53 = vmax.f32 %v3557_v45, 0.0 }
 0x3b0   : > { %v3797_v42 = vmax.f32 %v2989_v37, 0.0 }
 0x3b1   : > { %v3685_v43 = vmax.f32 %v2709_v40, 0.0 }
 0x3b2   : > { %v6889_v48 = vpack.c.bf16 %v3797_v42, %v3796_v41 }
 0x3b3   : > { %v3273_v49 = vpop.f32.mrf.mxu2  ;;  %v6609_v50 = vpack.c.bf16 %v3685_v43, %v3684_v39 }
 0x3b4   : > { %7590 = vst [vmem:[%s7872_s29 + $0x348] sm:$0xff] %v6889_v48   ;;  %v3274_v51 = vadd.f32 %v8647_v15, %v3273_v49  ;;  %v3558_v52 = vpop.f32.mrf.mxu3 }
 0x3b5   : > { %v2991_v13 = vpop.f32.mrf.mxu1  ;;  %7534 = vst [vmem:[%s7872_s29 + $0x188] sm:$0xff] %v6609_v50   ;;  %v3559_v54 = vadd.f32 %v8647_v15, %v3558_v52 }
 0x3b6   : > { %v3911_v56 = vmax.f32 %v3274_v51, 0.0  ;;  %v2711_v57 = vpop.f32.mrf.mxu0  ;;  %v2992_v63 = vadd.f32 %v8647_v15, %v2991_v13 }
 0x3b7   : > { %v4025_v58 = vmax.f32 %v3559_v54, 0.0  ;;  %v2712_v62 = vadd.f32 %v8647_v15, %v2711_v57 }
 0x3b8   : > { %v7174_v59 = vpack.c.bf16 %v3911_v56, %v3910_v55  ;;  %v3798_v6 = vmax.f32 %v2992_v63, 0.0  ;;  %v8891_v56 = vld [vmem:[%s8948_s2] ss:$0 sm:$0xff] }
 0x3b9   : > { %v7459_v60 = vpack.c.bf16 %v4025_v58, %v4024_v53  ;;  %v3686_v4 = vmax.f32 %v2712_v62, 0.0 }
 0x3ba   : > { %7647 = vst [vmem:[%s7872_s29 + $0x510] sm:$0xff] %v7174_v59  }
 0x3bb   : > { %v3276_v61 = vpop.f32.mrf.mxu2  ;;  %7704 = vst [vmem:[%s7872_s29 + $0x6d8] sm:$0xff] %v7459_v60  }
 0x3bc   : > { %v3561_v0 = vpop.f32.mrf.mxu3  ;;  %v3277_v10 = vadd.f32 %v8647_v15, %v3276_v61 }
 0x3bd   : > { %v2993_v1 = vpop.f32.mrf.mxu1  ;;  %v3562_v9 = vadd.f32 %v8647_v15, %v3561_v0 }
 0x3be   : > { %v2994_v2 = vadd.f32 %v8647_v15, %v2993_v1  ;;  %v2713_v3 = vpop.f32.mrf.mxu0  ;;  %v3912_v44 = vmax.f32 %v3277_v10, 0.0 }
 0x3bf   : > { %v2714_v5 = vadd.f32 %v8647_v15, %v2713_v3  ;;  %v4026_v18 = vmax.f32 %v3562_v9, 0.0 }
 0x3c0   : > { %v3799_v7 = vmax.f32 %v2994_v2, 0.0 }
 0x3c1   : > { %v3687_v8 = vmax.f32 %v2714_v5, 0.0 }
 0x3c2   : > { %v6894_v11 = vpack.c.bf16 %v3799_v7, %v3798_v6 }
 0x3c3   : > { %v3278_v12 = vpop.f32.mrf.mxu2  ;;  %v6614_v14 = vpack.c.bf16 %v3687_v8, %v3686_v4 }
 0x3c4   : > { %7591 = vst [vmem:[%s7872_s29 + $0x350] sm:$0xff] %v6894_v11   ;;  %v3279_v16 = vadd.f32 %v8647_v15, %v3278_v12  ;;  %v3563_v17 = vpop.f32.mrf.mxu3 }
 0x3c5   : > { %v2996_v46 = vpop.f32.mrf.mxu1  ;;  %7535 = vst [vmem:[%s7872_s29 + $0x190] sm:$0xff] %v6614_v14   ;;  %v3564_v19 = vadd.f32 %v8647_v15, %v3563_v17 }
 0x3c6   : > { %v3913_v20 = vmax.f32 %v3279_v16, 0.0  ;;  %v2716_v21 = vpop.f32.mrf.mxu0  ;;  %v2997_v27 = vadd.f32 %v8647_v15, %v2996_v46 }
 0x3c7   : > { %v4027_v22 = vmax.f32 %v3564_v19, 0.0  ;;  %v2717_v26 = vadd.f32 %v8647_v15, %v2716_v21 }
 0x3c8   : > { %v7179_v23 = vpack.c.bf16 %v3913_v20, %v3912_v44  ;;  %v3800_v34 = vmax.f32 %v2997_v27, 0.0 }
 0x3c9   : > { %v7464_v24 = vpack.c.bf16 %v4027_v22, %v4026_v18  ;;  %v3688_v32 = vmax.f32 %v2717_v26, 0.0 }
 0x3ca   : > { %7648 = vst [vmem:[%s7872_s29 + $0x518] sm:$0xff] %v7179_v23  }
 0x3cb   : > { %v3281_v25 = vpop.f32.mrf.mxu2  ;;  %7705 = vst [vmem:[%s7872_s29 + $0x6e0] sm:$0xff] %v7464_v24  }
 0x3cc   : > { %v3566_v28 = vpop.f32.mrf.mxu3  ;;  %v3282_v38 = vadd.f32 %v8647_v15, %v3281_v25 }
 0x3cd   : > { %v2998_v29 = vpop.f32.mrf.mxu1  ;;  %v3567_v37 = vadd.f32 %v8647_v15, %v3566_v28 }
 0x3ce   : > { %v2999_v30 = vadd.f32 %v8647_v15, %v2998_v29  ;;  %v2718_v31 = vpop.f32.mrf.mxu0  ;;  %v3914_v49 = vmax.f32 %v3282_v38, 0.0 }
 0x3cf   : > { %v2719_v33 = vadd.f32 %v8647_v15, %v2718_v31  ;;  %v4028_v47 = vmax.f32 %v3567_v37, 0.0 }
 0x3d0   : > { %v3801_v35 = vmax.f32 %v2999_v30, 0.0 }
 0x3d1   : > { %v3689_v36 = vmax.f32 %v2719_v33, 0.0 }
 0x3d2   : > { %v6899_v39 = vpack.c.bf16 %v3801_v35, %v3800_v34 }
 0x3d3   : > { %v3283_v40 = vpop.f32.mrf.mxu2  ;;  %v6619_v41 = vpack.c.bf16 %v3689_v36, %v3688_v32 }
 0x3d4   : > { %7592 = vst [vmem:[%s7872_s29 + $0x358] sm:$0xff] %v6899_v39   ;;  %v3284_v42 = vadd.f32 %v8647_v15, %v3283_v40  ;;  %v3568_v43 = vpop.f32.mrf.mxu3 }
 0x3d5   : > { %v3001_v45 = vpop.f32.mrf.mxu1  ;;  %7536 = vst [vmem:[%s7872_s29 + $0x198] sm:$0xff] %v6619_v41   ;;  %v3569_v48 = vadd.f32 %v8647_v15, %v3568_v43 }
 0x3d6   : > { %v3915_v50 = vmax.f32 %v3284_v42, 0.0  ;;  %v2721_v51 = vpop.f32.mrf.mxu0  ;;  %v3002_v57 = vadd.f32 %v8891_v56, %v3001_v45 }
 0x3d7   : > { %v4029_v52 = vmax.f32 %v3569_v48, 0.0  ;;  %v2722_v55 = vadd.f32 %v8647_v15, %v2721_v51 }
 0x3d8   : > { %v7184_v13 = vpack.c.bf16 %v3915_v50, %v3914_v49  ;;  %v3802_v0 = vmax.f32 %v3002_v57, 0.0 }
 0x3d9   : > { %v7469_v53 = vpack.c.bf16 %v4029_v52, %v4028_v47  ;;  %v3690_v62 = vmax.f32 %v2722_v55, 0.0 }
 0x3da   : > { %7649 = vst [vmem:[%s7872_s29 + $0x520] sm:$0xff] %v7184_v13  }
 0x3db   : > { %v3286_v54 = vpop.f32.mrf.mxu2  ;;  %7706 = vst [vmem:[%s7872_s29 + $0x6e8] sm:$0xff] %v7469_v53  }
 0x3dc   : > { %v3571_v58 = vpop.f32.mrf.mxu3  ;;  %v3287_v3 = vadd.f32 %v8891_v56, %v3286_v54 }
 0x3dd   : > { %v3003_v59 = vpop.f32.mrf.mxu1  ;;  %v3572_v2 = vadd.f32 %v8891_v56, %v3571_v58 }
 0x3de   : > { %v3004_v60 = vadd.f32 %v8891_v56, %v3003_v59  ;;  %v2723_v61 = vpop.f32.mrf.mxu0  ;;  %v3916_v12 = vmax.f32 %v3287_v3, 0.0 }
 0x3df   : > { %v2724_v63 = vadd.f32 %v8891_v56, %v2723_v61  ;;  %v4030_v10 = vmax.f32 %v3572_v2, 0.0 }
 0x3e0   : > { %v3803_v15 = vmax.f32 %v3004_v60, 0.0 }
 0x3e1   : > { %v3691_v1 = vmax.f32 %v2724_v63, 0.0 }
 0x3e2   : > { %v6904_v4 = vpack.c.bf16 %v3803_v15, %v3802_v0 }
 0x3e3   : > { %v3288_v5 = vpop.f32.mrf.mxu2  ;;  %v6624_v6 = vpack.c.bf16 %v3691_v1, %v3690_v62 }
 0x3e4   : > { %7593 = vst [vmem:[%s7872_s29 + $0x360] sm:$0xff] %v6904_v4   ;;  %v3289_v7 = vadd.f32 %v8891_v56, %v3288_v5  ;;  %v3573_v8 = vpop.f32.mrf.mxu3 }
 0x3e5   : > { %v3006_v9 = vpop.f32.mrf.mxu1  ;;  %7537 = vst [vmem:[%s7872_s29 + $0x1a0] sm:$0xff] %v6624_v6   ;;  %v3574_v11 = vadd.f32 %v8891_v56, %v3573_v8 }
 0x3e6   : > { %v3917_v14 = vmax.f32 %v3289_v7, 0.0  ;;  %v2726_v16 = vpop.f32.mrf.mxu0  ;;  %v3007_v20 = vadd.f32 %v8891_v56, %v3006_v9 }
 0x3e7   : > { %v4031_v17 = vmax.f32 %v3574_v11, 0.0  ;;  %v2727_v44 = vadd.f32 %v8891_v56, %v2726_v16 }
 0x3e8   : > { %v7189_v46 = vpack.c.bf16 %v3917_v14, %v3916_v12  ;;  %v3804_v27 = vmax.f32 %v3007_v20, 0.0 }
 0x3e9   : > { %v7474_v18 = vpack.c.bf16 %v4031_v17, %v4030_v10  ;;  %v3692_v25 = vmax.f32 %v2727_v44, 0.0 }
 0x3ea   : > { %7650 = vst [vmem:[%s7872_s29 + $0x528] sm:$0xff] %v7189_v46  }
 0x3eb   : > { %v3291_v19 = vpop.f32.mrf.mxu2  ;;  %7707 = vst [vmem:[%s7872_s29 + $0x6f0] sm:$0xff] %v7474_v18  }
 0x3ec   : > { %v3576_v21 = vpop.f32.mrf.mxu3  ;;  %v3292_v31 = vadd.f32 %v8891_v56, %v3291_v19 }
 0x3ed   : > { %v3008_v22 = vpop.f32.mrf.mxu1  ;;  %v3577_v30 = vadd.f32 %v8891_v56, %v3576_v21 }
 0x3ee   : > { %v3009_v23 = vadd.f32 %v8891_v56, %v3008_v22  ;;  %v2728_v24 = vpop.f32.mrf.mxu0  ;;  %v3918_v40 = vmax.f32 %v3292_v31, 0.0 }
 0x3ef   : > { %v2729_v26 = vadd.f32 %v8891_v56, %v2728_v24  ;;  %v4032_v38 = vmax.f32 %v3577_v30, 0.0 }
 0x3f0   : > { %v3805_v28 = vmax.f32 %v3009_v23, 0.0 }
 0x3f1   : > { %v3693_v29 = vmax.f32 %v2729_v26, 0.0 }
 0x3f2   : > { %v6909_v32 = vpack.c.bf16 %v3805_v28, %v3804_v27 }
 0x3f3   : > { %v3293_v33 = vpop.f32.mrf.mxu2  ;;  %v6629_v34 = vpack.c.bf16 %v3693_v29, %v3692_v25 }
 0x3f4   : > { %7594 = vst [vmem:[%s7872_s29 + $0x368] sm:$0xff] %v6909_v32   ;;  %v3294_v35 = vadd.f32 %v8891_v56, %v3293_v33  ;;  %v3578_v36 = vpop.f32.mrf.mxu3 }
 0x3f5   : > { %v3011_v37 = vpop.f32.mrf.mxu1  ;;  %7538 = vst [vmem:[%s7872_s29 + $0x1a8] sm:$0xff] %v6629_v34   ;;  %v3579_v39 = vadd.f32 %v8891_v56, %v3578_v36 }
 0x3f6   : > { %v3919_v41 = vmax.f32 %v3294_v35, 0.0  ;;  %v2731_v42 = vpop.f32.mrf.mxu0  ;;  %v3012_v50 = vadd.f32 %v8891_v56, %v3011_v37 }
 0x3f7   : > { %v4033_v43 = vmax.f32 %v3579_v39, 0.0  ;;  %v2732_v49 = vadd.f32 %v8891_v56, %v2731_v42 }
 0x3f8   : > { %v7194_v45 = vpack.c.bf16 %v3919_v41, %v3918_v40  ;;  %v3806_v57 = vmax.f32 %v3012_v50, 0.0 }
 0x3f9   : > { %v7479_v47 = vpack.c.bf16 %v4033_v43, %v4032_v38  ;;  %v3694_v54 = vmax.f32 %v2732_v49, 0.0 }
 0x3fa   : > { %7651 = vst [vmem:[%s7872_s29 + $0x530] sm:$0xff] %v7194_v45  }
 0x3fb   : > { %v3296_v48 = vpop.f32.mrf.mxu2  ;;  %7708 = vst [vmem:[%s7872_s29 + $0x6f8] sm:$0xff] %v7479_v47  }
 0x3fc   : > { %v3581_v51 = vpop.f32.mrf.mxu3  ;;  %v3297_v61 = vadd.f32 %v8891_v56, %v3296_v48 }
 0x3fd   : > { %v3013_v52 = vpop.f32.mrf.mxu1  ;;  %v3582_v60 = vadd.f32 %v8891_v56, %v3581_v51 }
 0x3fe   : > { %v3014_v13 = vadd.f32 %v8891_v56, %v3013_v52  ;;  %v2733_v53 = vpop.f32.mrf.mxu0  ;;  %v3920_v5 = vmax.f32 %v3297_v61, 0.0 }
 0x3ff   : > { %v2734_v55 = vadd.f32 %v8891_v56, %v2733_v53  ;;  %v4034_v3 = vmax.f32 %v3582_v60, 0.0 }
 0x400   : > { %v3807_v58 = vmax.f32 %v3014_v13, 0.0 }
 0x401   : > { %v3695_v59 = vmax.f32 %v2734_v55, 0.0 }
 0x402   : > { %v6914_v62 = vpack.c.bf16 %v3807_v58, %v3806_v57 }
 0x403   : > { %v3298_v63 = vpop.f32.mrf.mxu2  ;;  %v6634_v0 = vpack.c.bf16 %v3695_v59, %v3694_v54 }
 0x404   : > { %7595 = vst [vmem:[%s7872_s29 + $0x370] sm:$0xff] %v6914_v62   ;;  %v3299_v15 = vadd.f32 %v8891_v56, %v3298_v63  ;;  %v3583_v1 = vpop.f32.mrf.mxu3 }
 0x405   : > { %v3016_v2 = vpop.f32.mrf.mxu1  ;;  %7539 = vst [vmem:[%s7872_s29 + $0x1b0] sm:$0xff] %v6634_v0   ;;  %v3584_v4 = vadd.f32 %v8891_v56, %v3583_v1 }
 0x406   : > { %v3921_v6 = vmax.f32 %v3299_v15, 0.0  ;;  %v2736_v7 = vpop.f32.mrf.mxu0  ;;  %v3017_v14 = vadd.f32 %v8891_v56, %v3016_v2 }
 0x407   : > { %v4035_v8 = vmax.f32 %v3584_v4, 0.0  ;;  %v2737_v12 = vadd.f32 %v8891_v56, %v2736_v7 }
 0x408   : > { %v7199_v9 = vpack.c.bf16 %v3921_v6, %v3920_v5  ;;  %v3808_v44 = vmax.f32 %v3017_v14, 0.0 }
 0x409   : > { %v7484_v10 = vpack.c.bf16 %v4035_v8, %v4034_v3  ;;  %v3696_v18 = vmax.f32 %v2737_v12, 0.0 }
 0x40a   : > { %7652 = vst [vmem:[%s7872_s29 + $0x538] sm:$0xff] %v7199_v9  }
 0x40b   : > { %v3301_v11 = vpop.f32.mrf.mxu2  ;;  %7709 = vst [vmem:[%s7872_s29 + $0x700] sm:$0xff] %v7484_v10  }
 0x40c   : > { %v3302_v22 = vadd.f32 %v8891_v56, %v3301_v11 }
 0x40d   : > { %v3018_v16 = vpop.f32.mrf.mxu1 }
 0x40e   : > { %v3019_v17 = vadd.f32 %v8891_v56, %v3018_v16  ;;  %v2738_v46 = vpop.f32.mrf.mxu0  ;;  %v3922_v28 = vmax.f32 %v3302_v22, 0.0 }
 0x40f   : > { %v2739_v19 = vadd.f32 %v8891_v56, %v2738_v46 }
 0x410   : > { %v3809_v20 = vmax.f32 %v3019_v17, 0.0 }
 0x411   : > { %v3697_v21 = vmax.f32 %v2739_v19, 0.0 }
 0x412   : > { %v6919_v23 = vpack.c.bf16 %v3809_v20, %v3808_v44 }
 0x413   : > { %v3303_v24 = vpop.f32.mrf.mxu2  ;;  %v6639_v25 = vpack.c.bf16 %v3697_v21, %v3696_v18 }
 0x414   : > { %7596 = vst [vmem:[%s7872_s29 + $0x378] sm:$0xff] %v6919_v23   ;;  %v3304_v26 = vadd.f32 %v8891_v56, %v3303_v24 }
 0x415   : > { %v3021_v27 = vpop.f32.mrf.mxu1  ;;  %7540 = vst [vmem:[%s7872_s29 + $0x1b8] sm:$0xff] %v6639_v25  }
 0x416   : > { %v3923_v29 = vmax.f32 %v3304_v26, 0.0  ;;  %v3022_v32 = vadd.f32 %v8891_v56, %v3021_v27 }
 0x418   : > { %v7204_v30 = vpack.c.bf16 %v3923_v29, %v3922_v28  ;;  %v3810_v35 = vmax.f32 %v3022_v32, 0.0 }
 0x41a   : > { %7653 = vst [vmem:[%s7872_s29 + $0x540] sm:$0xff] %v7204_v30  }
 0x41b   : > { %v3306_v31 = vpop.f32.mrf.mxu2 }
 0x41c   : > { %v3307_v37 = vadd.f32 %v8891_v56, %v3306_v31 }
 0x41d   : > { %v3023_v33 = vpop.f32.mrf.mxu1 }
 0x41e   : > { %v3024_v34 = vadd.f32 %v8891_v56, %v3023_v33  ;;  %v3924_v41 = vmax.f32 %v3307_v37, 0.0 }
 0x420   : > { %v3811_v36 = vmax.f32 %v3024_v34, 0.0 }
 0x422   : > { %v6924_v38 = vpack.c.bf16 %v3811_v36, %v3810_v35 }
 0x423   : > { %v3308_v39 = vpop.f32.mrf.mxu2 }
 0x424   : > { %7597 = vst [vmem:[%s7872_s29 + $0x380] sm:$0xff] %v6924_v38   ;;  %v3309_v40 = vadd.f32 %v8891_v56, %v3308_v39 }
 0x426   : > { %v3925_v42 = vmax.f32 %v3309_v40, 0.0 }
 0x428   : > { %v7209_v43 = vpack.c.bf16 %v3925_v42, %v3924_v41 }
 0x42a   : > { %7654 = vst [vmem:[%s7872_s29 + $0x548] sm:$0xff] %v7209_v43  }
 0x42b PF: > { %s13_s12 = sadd.s32 1, %s7736_s12  }
 0x42c   : > { %p10_p4 = scmp.ge.s32.totalorder %s13_s12, 4  }
 0x42e   :  { %12 = sbr.rel (!%p10_p4) target bundleno = 1 (0x1), region = 62 }

// kernel: simple_net_dropout_forward.4
= control target key start
LH: loop header
LB: loop body
LE: loop exit
PB: predicated region body
PF: predicated region fallthrough
CT: control target
= control target key end

     0   :  { %s1284_s12 = smov 0   ;;  %s1493_s0 = inlined_call_operand.vmem [shape: bf16[512,250], index: 0, kind: input, shape index: {}]   ;;  %s1494_s1 = inlined_call_operand.vmem [shape: bf16[250,128], index: 1, kind: input, shape index: {}]   ;;  %s1495_s2 = inlined_call_operand.vmem [shape: f32[1,128], index: 2, kind: input, shape index: {}]   ;;  %s1496_s3 = inlined_call_operand.vmem [shape: bf16[512,128], index: 3, kind: output, shape index: {}]  }
   0x1 LB: > { %s867_s13 = sadd.s32 4294967295, %s1262_s12   ;;  %p871_p0 = scmp.ge.s32.totalorder %s1262_s12, 1  ;;  %s1262_s12 = sphi %s1284_s12, %s13_s12  }
   0x2   : > { %p139_p1 = scmp.lt.s32.totalorder %s1262_s12, 3 }
   0x4   : > { %p140_p2 = pnand %p871_p0, %p139_p1 }
   0x5   : > { %s872_s28 = sshll.u32 (!%p140_p2), %s867_s13, 5 }
   0x6   : > { %143 = sbr.rel (%p140_p2) target bundleno = 306 (0x132), region = 32  ;;  %p165_p3 = scmp.lt.s32.totalorder (!%p140_p2), %s872_s28, 63 }
   0xb   : > { %v1127_v0 = vld [vmem:[%s1494_s1 + $0x38] sm:$0xff]  ;;  %vm533_vm0 = vcmask 1044480   ;;  %v1126_v4 = vld [vmem:[%s1494_s1 + $0x30] sm:$0xff]  ;;  %v1125_v7 = vld [vmem:[%s1494_s1 + $0x28] sm:$0xff]  ;;  %s1498_s28 = smov (!%p165_p3, %s872_s28), 63  ;;  %vm484_vm1 = vcmask 998400  }
   0xc   : > { %v1067_v1 = vld [vmem:[%s1494_s1 + $0x78] sm:$0xf]  ;;  %v1135_v2 = vld [vmem:[%s1494_s1 + $0x78] sm:$0x10]  ;;  %537 = vmatpush.bf16.msra.mxu0 %v1127_v0  ;;  %1231 = vmatpush.bf16.msra.mxu2 %v1127_v0  ;;  %v1134_v6 = vld [vmem:[%s1494_s1 + $0x70] sm:$0xff]  ;;  %s1087_s13 = sshll.u32 %s1498_s28, 3 }
   0xd   : > { %v1068_v3 = vor.u32 %v1135_v2, %v1067_v1  ;;  %v1133_v8 = vld [vmem:[%s1494_s1 + $0x68] sm:$0xff]  ;;  %v1124_v9 = vld [vmem:[%s1494_s1 + $0x20] sm:$0xff]  ;;  %v1123_v11 = vld [vmem:[%s1494_s1 + $0x18] sm:$0xff]  ;;  %s1340_s20 = scalar_lea.vmem %s1493_s0, %s1087_s13  ;;  %s876_s30 = sshll.u32 %s1498_s28, 2 }
   0xe   : > { %v1132_v10 = vld [vmem:[%s1494_s1 + $0x60] sm:$0xff]  ;;  %v1131_v12 = vld [vmem:[%s1494_s1 + $0x58] sm:$0xff]  ;;  %v1122_v13 = vld [vmem:[%s1494_s1 + $0x10] sm:$0xff]  ;;  %s1443_s6 = scalar_lea.vmem %s1496_s3, %s876_s30 }
   0xf   : > { %v535_v5 = vsel %vm533_vm0, %v1068_v3, 0  ;;  %v1130_v14 = vld [vmem:[%s1494_s1 + $0x50] sm:$0xff]  ;;  %v1121_v15 = vld [vmem:[%s1494_s1 + $0x8] sm:$0xff]  ;;  %v1120_v17 = vld [vmem:[%s1494_s1] sm:$0xff] }
  0x10   : > { %626 = vmatpush.bf16.msra.mxu1 %v535_v5  ;;  %1239 = vmatpush.bf16.msra.mxu3 %v535_v5  ;;  %v1129_v16 = vld [vmem:[%s1494_s1 + $0x48] sm:$0xff]  ;;  %v879_v18 = vld [vmem:[%s1340_s20] sm:$0xf]  ;;  %v1088_v23 = vld [vmem:[%s1340_s20 + $0x4] sm:$0xf] }
  0x11   : > { %538 = vmatpush.bf16.msra.mxu0 %v1126_v4  ;;  %1232 = vmatpush.bf16.msra.mxu2 %v1126_v4  ;;  %v1089_v19 = vld [vmem:[%s1340_s20 + $0x4] sm:$0xf0]  ;;  %v943_v20 = vld [vmem:[%s1340_s20 + $0x80] sm:$0xf]  ;;  %v881_v24 = vld [vmem:[%s1340_s20 + $0x8] sm:$0xf0] }
  0x12   : > { %v1105_v21 = vld [vmem:[%s1340_s20 + $0x84] sm:$0xf0]  ;;  %v1128_v22 = vld [vmem:[%s1494_s1 + $0x40] sm:$0xff]  ;;  %v945_v26 = vld [vmem:[%s1340_s20 + $0x88] sm:$0xf0]  ;;  %v880_v27 = vor.u32 %v1089_v19, %v879_v18  ;;  %v884_v29 = vor.u32 %v1088_v23, %v881_v24 }
  0x13   : > { %v1104_v25 = vld [vmem:[%s1340_s20 + $0x84] sm:$0xf]  ;;  %v944_v28 = vor.u32 %v1105_v21, %v943_v20  ;;  %v887_v31 = vld [vmem:[%s1340_s20 + $0x10] sm:$0xf]  ;;  %v1091_v32 = vld [vmem:[%s1340_s20 + $0x14] sm:$0xf0] }
  0x14   : > { %627 = vmatpush.bf16.msra.mxu1 %v1134_v6  ;;  %1240 = vmatpush.bf16.msra.mxu3 %v1134_v6  ;;  %v948_v30 = vor.u32 %v1104_v25, %v945_v26  ;;  %v951_v33 = vld [vmem:[%s1340_s20 + $0x90] sm:$0xf]  ;;  %v1107_v34 = vld [vmem:[%s1340_s20 + $0x94] sm:$0xf0]  ;;  %v1090_v35 = vld [vmem:[%s1340_s20 + $0x14] sm:$0xf]  ;;  %v888_v39 = vor.u32 %v1091_v32, %v887_v31 }
  0x15   : > { %539 = vmatpush.bf16.msra.mxu0 %v1125_v7  ;;  %1233 = vmatpush.bf16.msra.mxu2 %v1125_v7  ;;  %v889_v36 = vld [vmem:[%s1340_s20 + $0x18] sm:$0xf0]  ;;  %v1106_v37 = vld [vmem:[%s1340_s20 + $0x94] sm:$0xf]  ;;  %v952_v40 = vor.u32 %v1107_v34, %v951_v33  ;;  %v895_v43 = vld [vmem:[%s1340_s20 + $0x20] sm:$0xf] }
  0x16   : > { %v953_v38 = vld [vmem:[%s1340_s20 + $0x98] sm:$0xf0]  ;;  %v892_v41 = vor.u32 %v1090_v35, %v889_v36  ;;  %v1093_v44 = vld [vmem:[%s1340_s20 + $0x24] sm:$0xf0]  ;;  %v959_v45 = vld [vmem:[%s1340_s20 + $0xa0] sm:$0xf] }
  0x17   : > { %v956_v42 = vor.u32 %v1106_v37, %v953_v38  ;;  %v1109_v46 = vld [vmem:[%s1340_s20 + $0xa4] sm:$0xf0]  ;;  %v1092_v47 = vld [vmem:[%s1340_s20 + $0x24] sm:$0xf]  ;;  %v897_v48 = vld [vmem:[%s1340_s20 + $0x28] sm:$0xf0]  ;;  %v896_v51 = vor.u32 %v1093_v44, %v895_v43 }
  0x18   : > { %628 = vmatpush.bf16.msra.mxu1 %v1133_v8  ;;  %1241 = vmatpush.bf16.msra.mxu3 %v1133_v8  ;;  %v1108_v49 = vld [vmem:[%s1340_s20 + $0xa4] sm:$0xf]  ;;  %v961_v50 = vld [vmem:[%s1340_s20 + $0xa8] sm:$0xf0]  ;;  %v960_v52 = vor.u32 %v1109_v46, %v959_v45  ;;  %v900_v53 = vor.u32 %v1092_v47, %v897_v48  ;;  %v903_v55 = vld [vmem:[%s1340_s20 + $0x30] sm:$0xf] }
  0x19   : > { %540 = vmatpush.bf16.msra.mxu0 %v1124_v9  ;;  %1234 = vmatpush.bf16.msra.mxu2 %v1124_v9  ;;  %v964_v54 = vor.u32 %v1108_v49, %v961_v50  ;;  %v1095_v56 = vld [vmem:[%s1340_s20 + $0x34] sm:$0xf0]  ;;  %v967_v57 = vld [vmem:[%s1340_s20 + $0xb0] sm:$0xf]  ;;  %v1094_v59 = vld [vmem:[%s1340_s20 + $0x34] sm:$0xf] }
  0x1a   : > { %v1111_v58 = vld [vmem:[%s1340_s20 + $0xb4] sm:$0xf0]  ;;  %v905_v60 = vld [vmem:[%s1340_s20 + $0x38] sm:$0xf0]  ;;  %v1110_v61 = vld [vmem:[%s1340_s20 + $0xb4] sm:$0xf]  ;;  %v904_v63 = vor.u32 %v1095_v56, %v903_v55 }
  0x1b   : > { %v969_v62 = vld [vmem:[%s1340_s20 + $0xb8] sm:$0xf0]  ;;  %v968_v0 = vor.u32 %v1111_v58, %v967_v57  ;;  %v908_v1 = vor.u32 %v1094_v59, %v905_v60  ;;  %v911_v3 = vld [vmem:[%s1340_s20 + $0x40] sm:$0xf]  ;;  %v1097_v4 = vld [vmem:[%s1340_s20 + $0x44] sm:$0xf0] }
  0x1c   : > { %629 = vmatpush.bf16.msra.mxu1 %v1132_v10  ;;  %1242 = vmatpush.bf16.msra.mxu3 %v1132_v10  ;;  %v972_v2 = vor.u32 %v1110_v61, %v969_v62  ;;  %v975_v5 = vld [vmem:[%s1340_s20 + $0xc0] sm:$0xf]  ;;  %v1113_v6 = vld [vmem:[%s1340_s20 + $0xc4] sm:$0xf0]  ;;  %v1096_v7 = vld [vmem:[%s1340_s20 + $0x44] sm:$0xf] }
  0x1d   : > { %541 = vmatpush.bf16.msra.mxu0 %v1123_v11  ;;  %1235 = vmatpush.bf16.msra.mxu2 %v1123_v11  ;;  %v913_v8 = vld [vmem:[%s1340_s20 + $0x48] sm:$0xf0]  ;;  %v1112_v9 = vld [vmem:[%s1340_s20 + $0xc4] sm:$0xf]  ;;  %v912_v11 = vor.u32 %v1097_v4, %v911_v3  ;;  %v1115_v18 = vld [vmem:[%s1340_s20 + $0xd4] sm:$0xf0] }
  0x1e   : > { %v977_v10 = vld [vmem:[%s1340_s20 + $0xc8] sm:$0xf0]  ;;  %v1098_v19 = vld [vmem:[%s1340_s20 + $0x54] sm:$0xf]  ;;  %v921_v20 = vld [vmem:[%s1340_s20 + $0x58] sm:$0xf0] }
  0x1f   : > { %v1114_v21 = vld [vmem:[%s1340_s20 + $0xd4] sm:$0xf]  ;;  %v924_v25 = vor.u32 %v1098_v19, %v921_v20  ;;  %v1100_v31 = vld [vmem:[%s1340_s20 + $0x64] sm:$0xf]  ;;  %v929_v32 = vld [vmem:[%s1340_s20 + $0x68] sm:$0xf0] }
  0x20   : > { %630 = vmatpush.bf16.msra.mxu1 %v1131_v12  ;;  %1243 = vmatpush.bf16.msra.mxu3 %v1131_v12  ;;  %v976_v12 = vor.u32 %v1113_v6, %v975_v5  ;;  %v1116_v33 = vld [vmem:[%s1340_s20 + $0xe4] sm:$0xf]  ;;  %v993_v34 = vld [vmem:[%s1340_s20 + $0xe8] sm:$0xf0]  ;;  %v932_v37 = vor.u32 %v1100_v31, %v929_v32  ;;  %v1102_v43 = vld [vmem:[%s1340_s20 + $0x74] sm:$0xf] }
  0x21   : > { %542 = vmatpush.bf16.msra.mxu0 %v1122_v13  ;;  %1236 = vmatpush.bf16.msra.mxu2 %v1122_v13  ;;  %v916_v13 = vor.u32 %v1096_v7, %v913_v8  ;;  %v996_v38 = vor.u32 %v1116_v33, %v993_v34  ;;  %v937_v44 = vld [vmem:[%s1340_s20 + $0x78] sm:$0xf0]  ;;  %v1118_v45 = vld [vmem:[%s1340_s20 + $0xf4] sm:$0xf] }
  0x22   : > { %v1001_v46 = vld [vmem:[%s1340_s20 + $0xf8] sm:$0xf0]  ;;  %v940_v49 = vor.u32 %v1102_v43, %v937_v44 }
  0x23   : > { %v1004_v50 = vor.u32 %v1118_v45, %v1001_v46 }
  0x24   : > { %631 = vmatpush.bf16.msra.mxu1 %v1130_v14  ;;  %1244 = vmatpush.bf16.msra.mxu3 %v1130_v14  ;;  %v980_v14 = vor.u32 %v1112_v9, %v977_v10 }
  0x25   : > { %543 = vmatpush.bf16.msra.mxu0 %v1121_v15  ;;  %1237 = vmatpush.bf16.msra.mxu2 %v1121_v15  ;;  %v919_v15 = vld [vmem:[%s1340_s20 + $0x50] sm:$0xf] }
  0x28   : > { %632 = vmatpush.bf16.msra.mxu1 %v1129_v16  ;;  %1245 = vmatpush.bf16.msra.mxu3 %v1129_v16  ;;  %v1099_v16 = vld [vmem:[%s1340_s20 + $0x54] sm:$0xf0] }
  0x29   : > { %544 = vmatpush.bf16.msra.mxu0 %v1120_v17  ;;  %1238 = vmatpush.bf16.msra.mxu2 %v1120_v17  ;;  %v983_v17 = vld [vmem:[%s1340_s20 + $0xd0] sm:$0xf]  ;;  %v920_v23 = vor.u32 %v1099_v16, %v919_v15 }
  0x2a   : > { %v984_v24 = vor.u32 %v1115_v18, %v983_v17 }
  0x2c   : > { %633 = vmatpush.bf16.msra.mxu1 %v1128_v22  ;;  %1246 = vmatpush.bf16.msra.mxu3 %v1128_v22  ;;  %v985_v22 = vld [vmem:[%s1340_s20 + $0xd8] sm:$0xf0] }
  0x2d   : > { %545 = vmatmul.bf16.vlgmr.msra.gmra.mxu0 %v880_v27  ;;  %585 = vmatmul.bf16.vlgmr.msra.gmra.mxu2 %v944_v28  ;;  %v988_v26 = vor.u32 %v1114_v21, %v985_v22  ;;  %v927_v27 = vld [vmem:[%s1340_s20 + $0x60] sm:$0xf]  ;;  %v1101_v28 = vld [vmem:[%s1340_s20 + $0x64] sm:$0xf0] }
  0x2e   : > { %v928_v35 = vor.u32 %v1101_v28, %v927_v27 }
  0x2f   : > { %1069 = vmatmul.msk.bf16.vlgmr.msra.gmra.mxu1 %vm484_vm1, %v884_v29  ;;  %1077 = vmatmul.msk.bf16.vlgmr.msra.gmra.mxu3 %vm484_vm1, %v948_v30  ;;  %v991_v29 = vld [vmem:[%s1340_s20 + $0xe0] sm:$0xf]  ;;  %v1117_v30 = vld [vmem:[%s1340_s20 + $0xe4] sm:$0xf0] }
  0x30   : > { %v992_v36 = vor.u32 %v1117_v30, %v991_v29 }
  0x3d   : > { %550 = vmatmul.bf16.gmra.mxu0 %v888_v39  ;;  %590 = vmatmul.bf16.gmra.mxu2 %v952_v40  ;;  %v935_v39 = vld [vmem:[%s1340_s20 + $0x70] sm:$0xf]  ;;  %v1103_v40 = vld [vmem:[%s1340_s20 + $0x74] sm:$0xf0] }
  0x3e   : > { %v936_v47 = vor.u32 %v1103_v40, %v935_v39 }
  0x3f   : > { %1070 = vmatmul.msk.bf16.gmra.mxu1 %vm484_vm1, %v892_v41  ;;  %1078 = vmatmul.msk.bf16.gmra.mxu3 %vm484_vm1, %v956_v42  ;;  %v999_v41 = vld [vmem:[%s1340_s20 + $0xf0] sm:$0xf]  ;;  %v1119_v42 = vld [vmem:[%s1340_s20 + $0xf4] sm:$0xf0] }
  0x40   : > { %v1000_v48 = vor.u32 %v1119_v42, %v999_v41 }
  0x4d   : > { %555 = vmatmul.bf16.gmra.mxu0 %v896_v51  ;;  %595 = vmatmul.bf16.gmra.mxu2 %v960_v52  ;;  %v1434_v52 = vld [vmem:[%s1495_s2] ss:$0 sm:$0xff] }
  0x4f   : > { %1071 = vmatmul.msk.bf16.gmra.mxu1 %vm484_vm1, %v900_v53  ;;  %1079 = vmatmul.msk.bf16.gmra.mxu3 %vm484_vm1, %v964_v54 }
  0x5d   : > { %560 = vmatmul.bf16.gmra.mxu0 %v904_v63  ;;  %600 = vmatmul.bf16.gmra.mxu2 %v968_v0 }
  0x5f   : > { %1072 = vmatmul.msk.bf16.gmra.mxu1 %vm484_vm1, %v908_v1  ;;  %1080 = vmatmul.msk.bf16.gmra.mxu3 %vm484_vm1, %v972_v2 }
  0x6d   : > { %565 = vmatmul.bf16.gmra.mxu0 %v912_v11  ;;  %605 = vmatmul.bf16.gmra.mxu2 %v976_v12 }
  0x6f   : > { %1073 = vmatmul.msk.bf16.gmra.mxu1 %vm484_vm1, %v916_v13  ;;  %1081 = vmatmul.msk.bf16.gmra.mxu3 %vm484_vm1, %v980_v14 }
  0x7d   : > { %570 = vmatmul.bf16.gmra.mxu0 %v920_v23  ;;  %610 = vmatmul.bf16.gmra.mxu2 %v984_v24 }
  0x7f   : > { %1074 = vmatmul.msk.bf16.gmra.mxu1 %vm484_vm1, %v924_v25  ;;  %1082 = vmatmul.msk.bf16.gmra.mxu3 %vm484_vm1, %v988_v26 }
  0x8d   : > { %575 = vmatmul.bf16.gmra.mxu0 %v928_v35  ;;  %615 = vmatmul.bf16.gmra.mxu2 %v992_v36 }
  0x8f   : > { %1075 = vmatmul.msk.bf16.gmra.mxu1 %vm484_vm1, %v932_v37  ;;  %1083 = vmatmul.msk.bf16.gmra.mxu3 %vm484_vm1, %v996_v38 }
  0x9d   : > { %580 = vmatmul.bf16.gmra.mxu0 %v936_v47  ;;  %620 = vmatmul.bf16.gmra.mxu2 %v1000_v48 }
  0x9f   : > { %1076 = vmatmul.msk.bf16.gmra.mxu1 %vm484_vm1, %v940_v49  ;;  %1084 = vmatmul.msk.bf16.gmra.mxu3 %vm484_vm1, %v1004_v50 }
  0xaa   : > { %v546_v51 = vpop.f32.mrf.mxu0 }
  0xab   : > { %v547_v54 = vadd.f32 %v1434_v52, %v546_v51 }
  0xac   : > { %v635_v53 = vpop.f32.mrf.mxu1 }
  0xad   : > { %v636_v58 = vadd.f32 %v635_v53, %v547_v54 }
  0xaf   : > { %v715_v63 = vmax.f32 %v636_v58, 0.0 }
  0xb0   : > { %v586_v55 = vpop.f32.mrf.mxu2 }
  0xb1   : > { %v587_v61 = vadd.f32 %v1434_v52, %v586_v55 }
  0xb2   : > { %v675_v56 = vpop.f32.mrf.mxu3  ;;  %v548_v57 = vpop.f32.mrf.mxu0 }
  0xb3   : > { %v549_v59 = vadd.f32 %v1434_v52, %v548_v57  ;;  %v676_v2 = vadd.f32 %v675_v56, %v587_v61 }
  0xb4   : > { %v637_v60 = vpop.f32.mrf.mxu1 }
  0xb5   : > { %v638_v62 = vadd.f32 %v637_v60, %v549_v59  ;;  %v731_v9 = vmax.f32 %v676_v2, 0.0 }
  0xb7   : > { %v716_v0 = vmax.f32 %v638_v62, 0.0 }
  0xb8   : > { %v588_v1 = vpop.f32.mrf.mxu2 }
  0xb9   : > { %v1139_v3 = vpack.c.bf16 %v716_v0, %v715_v63  ;;  %v589_v4 = vadd.f32 %v1434_v52, %v588_v1 }
  0xba   : > { %v677_v5 = vpop.f32.mrf.mxu3  ;;  %v551_v6 = vpop.f32.mrf.mxu0 }
  0xbb   : > { %1140 = vst [vmem:[%s1443_s6] sm:$0xff] %v1139_v3   ;;  %v678_v7 = vadd.f32 %v677_v5, %v589_v4  ;;  %v552_v12 = vadd.f32 %v1434_v52, %v551_v6 }
  0xbc   : > { %v640_v8 = vpop.f32.mrf.mxu1 }
  0xbd   : > { %v732_v10 = vmax.f32 %v678_v7, 0.0  ;;  %v641_v16 = vadd.f32 %v640_v8, %v552_v12 }
  0xbf   : > { %v1179_v11 = vpack.c.bf16 %v732_v10, %v731_v9  ;;  %v717_v21 = vmax.f32 %v641_v16, 0.0 }
  0xc0   : > { %v591_v13 = vpop.f32.mrf.mxu2 }
  0xc1   : > { %1223 = vst [vmem:[%s1443_s6 + $0x40] sm:$0xff] %v1179_v11   ;;  %v592_v19 = vadd.f32 %v1434_v52, %v591_v13 }
  0xc2   : > { %v680_v14 = vpop.f32.mrf.mxu3  ;;  %v553_v15 = vpop.f32.mrf.mxu0 }
  0xc3   : > { %v554_v17 = vadd.f32 %v1434_v52, %v553_v15  ;;  %v681_v24 = vadd.f32 %v680_v14, %v592_v19 }
  0xc4   : > { %v642_v18 = vpop.f32.mrf.mxu1 }
  0xc5   : > { %v643_v20 = vadd.f32 %v642_v18, %v554_v17  ;;  %v733_v31 = vmax.f32 %v681_v24, 0.0 }
  0xc7   : > { %v718_v22 = vmax.f32 %v643_v20, 0.0 }
  0xc8   : > { %v593_v23 = vpop.f32.mrf.mxu2 }
  0xc9   : > { %v1144_v25 = vpack.c.bf16 %v718_v22, %v717_v21  ;;  %v594_v26 = vadd.f32 %v1434_v52, %v593_v23 }
  0xca   : > { %v682_v27 = vpop.f32.mrf.mxu3  ;;  %v556_v28 = vpop.f32.mrf.mxu0 }
  0xcb   : > { %1216 = vst [vmem:[%s1443_s6 + $0x8] sm:$0xff] %v1144_v25   ;;  %v683_v29 = vadd.f32 %v682_v27, %v594_v26  ;;  %v557_v34 = vadd.f32 %v1434_v52, %v556_v28 }
  0xcc   : > { %v645_v30 = vpop.f32.mrf.mxu1 }
  0xcd   : > { %v734_v32 = vmax.f32 %v683_v29, 0.0  ;;  %v646_v38 = vadd.f32 %v645_v30, %v557_v34 }
  0xcf   : > { %v1184_v33 = vpack.c.bf16 %v734_v32, %v733_v31  ;;  %v719_v43 = vmax.f32 %v646_v38, 0.0 }
  0xd0   : > { %v596_v35 = vpop.f32.mrf.mxu2 }
  0xd1   : > { %1224 = vst [vmem:[%s1443_s6 + $0x48] sm:$0xff] %v1184_v33   ;;  %v597_v41 = vadd.f32 %v1434_v52, %v596_v35 }
  0xd2   : > { %v685_v36 = vpop.f32.mrf.mxu3  ;;  %v558_v37 = vpop.f32.mrf.mxu0 }
  0xd3   : > { %v559_v39 = vadd.f32 %v1434_v52, %v558_v37  ;;  %v686_v46 = vadd.f32 %v685_v36, %v597_v41 }
  0xd4   : > { %v647_v40 = vpop.f32.mrf.mxu1 }
  0xd5   : > { %v648_v42 = vadd.f32 %v647_v40, %v559_v39  ;;  %v735_v54 = vmax.f32 %v686_v46, 0.0 }
  0xd7   : > { %v720_v44 = vmax.f32 %v648_v42, 0.0 }
  0xd8   : > { %v598_v45 = vpop.f32.mrf.mxu2 }
  0xd9   : > { %v1149_v47 = vpack.c.bf16 %v720_v44, %v719_v43  ;;  %v599_v48 = vadd.f32 %v1434_v52, %v598_v45 }
  0xda   : > { %v687_v49 = vpop.f32.mrf.mxu3  ;;  %v561_v50 = vpop.f32.mrf.mxu0 }
  0xdb   : > { %1217 = vst [vmem:[%s1443_s6 + $0x10] sm:$0xff] %v1149_v47   ;;  %v688_v51 = vadd.f32 %v687_v49, %v599_v48  ;;  %v562_v57 = vadd.f32 %v1434_v52, %v561_v50 }
  0xdc   : > { %v650_v53 = vpop.f32.mrf.mxu1 }
  0xdd   : > { %v736_v55 = vmax.f32 %v688_v51, 0.0  ;;  %v651_v61 = vadd.f32 %v650_v53, %v562_v57 }
  0xdf   : > { %v1189_v56 = vpack.c.bf16 %v736_v55, %v735_v54  ;;  %v721_v2 = vmax.f32 %v651_v61, 0.0 }
  0xe0   : > { %v601_v58 = vpop.f32.mrf.mxu2 }
  0xe1   : > { %1225 = vst [vmem:[%s1443_s6 + $0x50] sm:$0xff] %v1189_v56   ;;  %v602_v0 = vadd.f32 %v1434_v52, %v601_v58 }
  0xe2   : > { %v690_v59 = vpop.f32.mrf.mxu3  ;;  %v563_v60 = vpop.f32.mrf.mxu0 }
  0xe3   : > { %v564_v62 = vadd.f32 %v1434_v52, %v563_v60  ;;  %v691_v5 = vadd.f32 %v690_v59, %v602_v0 }
  0xe4   : > { %v652_v63 = vpop.f32.mrf.mxu1 }
  0xe5   : > { %v653_v1 = vadd.f32 %v652_v63, %v564_v62  ;;  %v737_v12 = vmax.f32 %v691_v5, 0.0 }
  0xe7   : > { %v722_v3 = vmax.f32 %v653_v1, 0.0 }
  0xe8   : > { %v603_v4 = vpop.f32.mrf.mxu2 }
  0xe9   : > { %v1154_v6 = vpack.c.bf16 %v722_v3, %v721_v2  ;;  %v604_v7 = vadd.f32 %v1434_v52, %v603_v4 }
  0xea   : > { %v692_v8 = vpop.f32.mrf.mxu3  ;;  %v566_v9 = vpop.f32.mrf.mxu0 }
  0xeb   : > { %1218 = vst [vmem:[%s1443_s6 + $0x18] sm:$0xff] %v1154_v6   ;;  %v693_v10 = vadd.f32 %v692_v8, %v604_v7  ;;  %v567_v15 = vadd.f32 %v1434_v52, %v566_v9 }
  0xec   : > { %v655_v11 = vpop.f32.mrf.mxu1 }
  0xed   : > { %v738_v13 = vmax.f32 %v693_v10, 0.0  ;;  %v656_v19 = vadd.f32 %v655_v11, %v567_v15 }
  0xef   : > { %v1194_v14 = vpack.c.bf16 %v738_v13, %v737_v12  ;;  %v723_v24 = vmax.f32 %v656_v19, 0.0 }
  0xf0   : > { %v606_v16 = vpop.f32.mrf.mxu2 }
  0xf1   : > { %1226 = vst [vmem:[%s1443_s6 + $0x58] sm:$0xff] %v1194_v14   ;;  %v607_v22 = vadd.f32 %v1434_v52, %v606_v16 }
  0xf2   : > { %v695_v17 = vpop.f32.mrf.mxu3  ;;  %v568_v18 = vpop.f32.mrf.mxu0 }
  0xf3   : > { %v569_v20 = vadd.f32 %v1434_v52, %v568_v18  ;;  %v696_v27 = vadd.f32 %v695_v17, %v607_v22 }
  0xf4   : > { %v657_v21 = vpop.f32.mrf.mxu1 }
  0xf5   : > { %v658_v23 = vadd.f32 %v657_v21, %v569_v20  ;;  %v739_v34 = vmax.f32 %v696_v27, 0.0 }
  0xf7   : > { %v724_v25 = vmax.f32 %v658_v23, 0.0 }
  0xf8   : > { %v608_v26 = vpop.f32.mrf.mxu2 }
  0xf9   : > { %v1159_v28 = vpack.c.bf16 %v724_v25, %v723_v24  ;;  %v609_v29 = vadd.f32 %v1434_v52, %v608_v26 }
  0xfa   : > { %v697_v30 = vpop.f32.mrf.mxu3  ;;  %v571_v31 = vpop.f32.mrf.mxu0 }
  0xfb   : > { %1219 = vst [vmem:[%s1443_s6 + $0x20] sm:$0xff] %v1159_v28   ;;  %v698_v32 = vadd.f32 %v697_v30, %v609_v29  ;;  %v572_v37 = vadd.f32 %v1434_v52, %v571_v31 }
  0xfc   : > { %v660_v33 = vpop.f32.mrf.mxu1 }
  0xfd   : > { %v740_v35 = vmax.f32 %v698_v32, 0.0  ;;  %v661_v41 = vadd.f32 %v660_v33, %v572_v37 }
  0xff   : > { %v1199_v36 = vpack.c.bf16 %v740_v35, %v739_v34  ;;  %v725_v46 = vmax.f32 %v661_v41, 0.0 }
 0x100   : > { %v611_v38 = vpop.f32.mrf.mxu2 }
 0x101   : > { %1227 = vst [vmem:[%s1443_s6 + $0x60] sm:$0xff] %v1199_v36   ;;  %v612_v44 = vadd.f32 %v1434_v52, %v611_v38 }
 0x102   : > { %v700_v39 = vpop.f32.mrf.mxu3  ;;  %v573_v40 = vpop.f32.mrf.mxu0 }
 0x103   : > { %v574_v42 = vadd.f32 %v1434_v52, %v573_v40  ;;  %v701_v49 = vadd.f32 %v700_v39, %v612_v44 }
 0x104   : > { %v662_v43 = vpop.f32.mrf.mxu1 }
 0x105   : > { %v663_v45 = vadd.f32 %v662_v43, %v574_v42  ;;  %v741_v57 = vmax.f32 %v701_v49, 0.0 }
 0x107   : > { %v726_v47 = vmax.f32 %v663_v45, 0.0 }
 0x108   : > { %v613_v48 = vpop.f32.mrf.mxu2 }
 0x109   : > { %v1164_v50 = vpack.c.bf16 %v726_v47, %v725_v46  ;;  %v614_v51 = vadd.f32 %v1434_v52, %v613_v48 }
 0x10a   : > { %v702_v53 = vpop.f32.mrf.mxu3  ;;  %v576_v54 = vpop.f32.mrf.mxu0 }
 0x10b   : > { %1220 = vst [vmem:[%s1443_s6 + $0x28] sm:$0xff] %v1164_v50   ;;  %v703_v55 = vadd.f32 %v702_v53, %v614_v51  ;;  %v577_v60 = vadd.f32 %v1434_v52, %v576_v54 }
 0x10c   : > { %v665_v56 = vpop.f32.mrf.mxu1 }
 0x10d   : > { %v742_v58 = vmax.f32 %v703_v55, 0.0  ;;  %v666_v0 = vadd.f32 %v665_v56, %v577_v60 }
 0x10f   : > { %v1204_v59 = vpack.c.bf16 %v742_v58, %v741_v57  ;;  %v727_v5 = vmax.f32 %v666_v0, 0.0 }
 0x110   : > { %v616_v61 = vpop.f32.mrf.mxu2 }
 0x111   : > { %1228 = vst [vmem:[%s1443_s6 + $0x68] sm:$0xff] %v1204_v59   ;;  %v617_v3 = vadd.f32 %v1434_v52, %v616_v61 }
 0x112   : > { %v705_v62 = vpop.f32.mrf.mxu3  ;;  %v578_v63 = vpop.f32.mrf.mxu0 }
 0x113   : > { %v579_v1 = vadd.f32 %v1434_v52, %v578_v63  ;;  %v706_v8 = vadd.f32 %v705_v62, %v617_v3 }
 0x114   : > { %v667_v2 = vpop.f32.mrf.mxu1 }
 0x115   : > { %v668_v4 = vadd.f32 %v667_v2, %v579_v1  ;;  %v743_v15 = vmax.f32 %v706_v8, 0.0 }
 0x117   : > { %v728_v6 = vmax.f32 %v668_v4, 0.0 }
 0x118   : > { %v618_v7 = vpop.f32.mrf.mxu2 }
 0x119   : > { %v1169_v9 = vpack.c.bf16 %v728_v6, %v727_v5  ;;  %v619_v10 = vadd.f32 %v1434_v52, %v618_v7 }
 0x11a   : > { %v707_v11 = vpop.f32.mrf.mxu3  ;;  %v581_v12 = vpop.f32.mrf.mxu0 }
 0x11b   : > { %1221 = vst [vmem:[%s1443_s6 + $0x30] sm:$0xff] %v1169_v9   ;;  %v708_v13 = vadd.f32 %v707_v11, %v619_v10  ;;  %v582_v18 = vadd.f32 %v1434_v52, %v581_v12 }
 0x11c   : > { %v670_v14 = vpop.f32.mrf.mxu1 }
 0x11d   : > { %v744_v16 = vmax.f32 %v708_v13, 0.0  ;;  %v671_v22 = vadd.f32 %v670_v14, %v582_v18 }
 0x11f   : > { %v1209_v17 = vpack.c.bf16 %v744_v16, %v743_v15  ;;  %v729_v27 = vmax.f32 %v671_v22, 0.0 }
 0x120   : > { %v621_v19 = vpop.f32.mrf.mxu2 }
 0x121   : > { %1229 = vst [vmem:[%s1443_s6 + $0x70] sm:$0xff] %v1209_v17   ;;  %v622_v25 = vadd.f32 %v1434_v52, %v621_v19 }
 0x122   : > { %v710_v20 = vpop.f32.mrf.mxu3  ;;  %v583_v21 = vpop.f32.mrf.mxu0 }
 0x123   : > { %v584_v23 = vadd.f32 %v1434_v52, %v583_v21  ;;  %v711_v30 = vadd.f32 %v710_v20, %v622_v25 }
 0x124   : > { %v672_v24 = vpop.f32.mrf.mxu1 }
 0x125   : > { %v673_v26 = vadd.f32 %v672_v24, %v584_v23  ;;  %v745_v35 = vmax.f32 %v711_v30, 0.0 }
 0x127   : > { %v730_v28 = vmax.f32 %v673_v26, 0.0 }
 0x128   : > { %v623_v29 = vpop.f32.mrf.mxu2 }
 0x129   : > { %v1174_v31 = vpack.c.bf16 %v730_v28, %v729_v27  ;;  %v624_v32 = vadd.f32 %v1434_v52, %v623_v29 }
 0x12a   : > { %v712_v33 = vpop.f32.mrf.mxu3 }
 0x12b   : > { %1222 = vst [vmem:[%s1443_s6 + $0x38] sm:$0xff] %v1174_v31   ;;  %v713_v34 = vadd.f32 %v712_v33, %v624_v32 }
 0x12d   : > { %v746_v36 = vmax.f32 %v713_v34, 0.0 }
 0x12f   : > { %v1214_v37 = vpack.c.bf16 %v746_v36, %v745_v35 }
 0x131   : > { %1230 = vst [vmem:[%s1443_s6 + $0x78] sm:$0xff] %v1214_v37  }
 0x132 PF: > { %s13_s12 = sadd.s32 1, %s1262_s12  }
 0x133   : > { %p10_p4 = scmp.ge.s32.totalorder %s13_s12, 4  }
 0x135   :  { %12 = sbr.rel (!%p10_p4) target bundleno = 1 (0x1), region = 62 }

// kernel: simple_net_dropout_forward.5
= control target key start
LH: loop header
LB: loop body
LE: loop exit
PB: predicated region body
PF: predicated region fallthrough
CT: control target
= control target key end

     0   :  { %vm806_vm0 = vcmask 1041408   ;;  %vm803_vm1 = vcmask 949248   ;;  %s3272_s0 = inlined_call_operand.vmem [shape: bf16[2,500], index: 0, kind: input, shape index: {}]   ;;  %s3273_s1 = inlined_call_operand.vmem [shape: bf16[500,512], index: 1, kind: input, shape index: {}]   ;;  %s3274_s2 = inlined_call_operand.vmem [shape: f32[1,512], index: 2, kind: input, shape index: {}]   ;;  %s3275_s3 = inlined_call_operand.vmem [shape: bf16[512,128], index: 3, kind: input, shape index: {}]   ;;  %s3276_s4 = inlined_call_operand.vmem [shape: f32[1,128], index: 4, kind: input, shape index: {}]   ;;  %s3277_s5 = inlined_call_operand.vmem [shape: bf16[128,128], index: 5, kind: input, shape index: {}]   ;;  %s3278_s6 = inlined_call_operand.vmem [shape: f32[1,128], index: 6, kind: input, shape index: {}]   ;;  %s3279_s7 = inlined_call_operand.hbm [shape: f32[2,128], index: 7, kind: output, shape index: {}]  }
   0x1   :  { %v1561_v0 = vld [vmem:[%s3273_s1 + $0xe0] sm:$0xf]  ;;  %v2137_v1 = vld [vmem:[%s3273_s1 + $0xec] sm:$0xf0] }
   0x2   :  { %v1689_v2 = vld [vmem:[%s3273_s1 + $0x1e0] sm:$0xf]  ;;  %v1562_v3 = vor.u32 %v2137_v1, %v1561_v0  ;;  %v2169_v4 = vld [vmem:[%s3273_s1 + $0x1ec] sm:$0xf0] }
   0x3   :  { %v1817_v5 = vld [vmem:[%s3273_s1 + $0x2e0] sm:$0xf]  ;;  %v2201_v6 = vld [vmem:[%s3273_s1 + $0x2ec] sm:$0xf0]  ;;  %v1690_v7 = vor.u32 %v2169_v4, %v1689_v2 }
   0x4   :  { %v1818_v8 = vor.u32 %v2201_v6, %v1817_v5  ;;  %v2362_v9 = vld [vmem:[%s3273_s1 + $0x3e0] sm:$0x33]  ;;  %819 = vmatpush.bf16.msra.mxu0 %v1562_v3  ;;  %v2133_v12 = vld [vmem:[%s3273_s1 + $0xcc] sm:$0xf0] }
   0x5   :  { %v1545_v10 = vld [vmem:[%s3273_s1 + $0xc0] sm:$0xf]  ;;  %v547_v11 = vunpack.c.l.b16 %v2362_v9  ;;  %v2165_v14 = vld [vmem:[%s3273_s1 + $0x1cc] sm:$0xf0]  ;;  %832 = vmatpush.bf16.msra.mxu1 %v1690_v7 }
   0x6   :  { %v1673_v13 = vld [vmem:[%s3273_s1 + $0x1c0] sm:$0xf]  ;;  %845 = vmatpush.bf16.msra.mxu2 %v1818_v8  ;;  %v1546_v15 = vor.u32 %v2133_v12, %v1545_v10  ;;  %v2197_v18 = vld [vmem:[%s3273_s1 + $0x2cc] sm:$0xf0] }
   0x7   :  { %v1674_v16 = vor.u32 %v2165_v14, %v1673_v13  ;;  %v1801_v17 = vld [vmem:[%s3273_s1 + $0x2c0] sm:$0xf]  ;;  %v675_v20 = vpack.c.b16 %v547_v11, %v547_v11  ;;  %v2229_v22 = vld [vmem:[%s3273_s1 + $0x3cc] sm:$0xf0] }
   0x8   :  { %v1929_v19 = vld [vmem:[%s3273_s1 + $0x3c0] sm:$0xf]  ;;  %v1802_v21 = vor.u32 %v2197_v18, %v1801_v17  ;;  %v2129_v24 = vld [vmem:[%s3273_s1 + $0xac] sm:$0xf0]  ;;  %820 = vmatpush.bf16.msra.mxu0 %v1546_v15 }
   0x9   :  { %v1529_v23 = vld [vmem:[%s3273_s1 + $0xa0] sm:$0xf]  ;;  %v2161_v26 = vld [vmem:[%s3273_s1 + $0x1ac] sm:$0xf0]  ;;  %v808_v28 = vsel %vm806_vm0, %v675_v20, 0  ;;  %833 = vmatpush.bf16.msra.mxu1 %v1674_v16  ;;  %v1930_v31 = vor.u32 %v2229_v22, %v1929_v19 }
   0xa   :  { %v1657_v25 = vld [vmem:[%s3273_s1 + $0x1a0] sm:$0xf]  ;;  %v1530_v29 = vor.u32 %v2129_v24, %v1529_v23  ;;  %v2193_v30 = vld [vmem:[%s3273_s1 + $0x2ac] sm:$0xf0]  ;;  %858 = vmatpush.bf16.msra.mxu3 %v808_v28  ;;  %846 = vmatpush.bf16.msra.mxu2 %v1802_v21  ;;  %v2135_v28 = vld [vmem:[%s3273_s1 + $0xe4] sm:$0xf] }
   0xb   :  { %v1785_v27 = vld [vmem:[%s3273_s1 + $0x2a0] sm:$0xf]  ;;  %v1658_v32 = vor.u32 %v2161_v26, %v1657_v25  ;;  %v2125_v35 = vld [vmem:[%s3273_s1 + $0x8c] sm:$0xf0] }
   0xc   :  { %v1913_v33 = vld [vmem:[%s3273_s1 + $0x3a0] sm:$0xf]  ;;  %v1786_v36 = vor.u32 %v2193_v30, %v1785_v27  ;;  %v2225_v37 = vld [vmem:[%s3273_s1 + $0x3ac] sm:$0xf0]  ;;  %821 = vmatpush.bf16.msra.mxu0 %v1530_v29  ;;  %v548_v27 = vunpack.c.h.b16 %v2362_v9  ;;  %v1563_v29 = vld [vmem:[%s3273_s1 + $0xf0] sm:$0xf0] }
   0xd   :  { %v1513_v34 = vld [vmem:[%s3273_s1 + $0x80] sm:$0xf]  ;;  %v2157_v39 = vld [vmem:[%s3273_s1 + $0x18c] sm:$0xf0]  ;;  %834 = vmatpush.bf16.msra.mxu1 %v1658_v32  ;;  %v1914_v43 = vor.u32 %v2225_v37, %v1913_v33  ;;  %v2167_v30 = vld [vmem:[%s3273_s1 + $0x1e4] sm:$0xf]  ;;  %v1566_v37 = vor.u32 %v2135_v28, %v1563_v29 }
   0xe   :  { %v1641_v38 = vld [vmem:[%s3273_s1 + $0x180] sm:$0xf]  ;;  %v2189_v41 = vld [vmem:[%s3273_s1 + $0x28c] sm:$0xf0]  ;;  %v1514_v42 = vor.u32 %v2125_v35, %v1513_v34  ;;  %859 = vmatpush.bf16.msra.mxu3 %v1930_v31  ;;  %847 = vmatpush.bf16.msra.mxu2 %v1786_v36  ;;  %v1691_v32 = vld [vmem:[%s3273_s1 + $0x1f0] sm:$0xf0] }
   0xf   :  { %v1769_v40 = vld [vmem:[%s3273_s1 + $0x280] sm:$0xf]  ;;  %v1642_v44 = vor.u32 %v2157_v39, %v1641_v38  ;;  %v2121_v47 = vld [vmem:[%s3273_s1 + $0x6c] sm:$0xf0]  ;;  %v2199_v9 = vld [vmem:[%s3273_s1 + $0x2e4] sm:$0xf] }
  0x10   :  { %v1897_v45 = vld [vmem:[%s3273_s1 + $0x380] sm:$0xf]  ;;  %v1770_v48 = vor.u32 %v2189_v41, %v1769_v40  ;;  %v2221_v49 = vld [vmem:[%s3273_s1 + $0x38c] sm:$0xf0]  ;;  %822 = vmatpush.bf16.msra.mxu0 %v1514_v42  ;;  %v1819_v33 = vld [vmem:[%s3273_s1 + $0x2f0] sm:$0xf0]  ;;  %v676_v40 = vpack.c.b16 %v548_v27, %v548_v27  ;;  %v1694_v42 = vor.u32 %v2167_v30, %v1691_v32 }
  0x11   :  { %v1497_v46 = vld [vmem:[%s3273_s1 + $0x60] sm:$0xf]  ;;  %v2153_v51 = vld [vmem:[%s3273_s1 + $0x16c] sm:$0xf0]  ;;  %835 = vmatpush.bf16.msra.mxu1 %v1642_v44  ;;  %v1898_v55 = vor.u32 %v2221_v49, %v1897_v45  ;;  %v2131_v41 = vld [vmem:[%s3273_s1 + $0xc4] sm:$0xf] }
  0x12   :  { %v1625_v50 = vld [vmem:[%s3273_s1 + $0x160] sm:$0xf]  ;;  %v2185_v53 = vld [vmem:[%s3273_s1 + $0x26c] sm:$0xf0]  ;;  %v1498_v54 = vor.u32 %v2121_v47, %v1497_v46  ;;  %860 = vmatpush.bf16.msra.mxu3 %v1914_v43  ;;  %848 = vmatpush.bf16.msra.mxu2 %v1770_v48  ;;  %v1822_v43 = vor.u32 %v2199_v9, %v1819_v33  ;;  %v1547_v44 = vld [vmem:[%s3273_s1 + $0xd0] sm:$0xf0] }
  0x13   :  { %v1753_v52 = vld [vmem:[%s3273_s1 + $0x260] sm:$0xf]  ;;  %v1626_v56 = vor.u32 %v2153_v51, %v1625_v50  ;;  %v2117_v59 = vld [vmem:[%s3273_s1 + $0x4c] sm:$0xf0]  ;;  %v2163_v45 = vld [vmem:[%s3273_s1 + $0x1c4] sm:$0xf] }
  0x14   :  { %v1881_v57 = vld [vmem:[%s3273_s1 + $0x360] sm:$0xf]  ;;  %v1754_v60 = vor.u32 %v2185_v53, %v1753_v52  ;;  %v2217_v61 = vld [vmem:[%s3273_s1 + $0x36c] sm:$0xf0]  ;;  %823 = vmatpush.bf16.msra.mxu0 %v1498_v54  ;;  %v1675_v46 = vld [vmem:[%s3273_s1 + $0x1d0] sm:$0xf0]  ;;  %v1550_v52 = vor.u32 %v2131_v41, %v1547_v44 }
  0x15   :  { %v1481_v58 = vld [vmem:[%s3273_s1 + $0x40] sm:$0xf]  ;;  %v2149_v63 = vld [vmem:[%s3273_s1 + $0x14c] sm:$0xf0]  ;;  %836 = vmatpush.bf16.msra.mxu1 %v1626_v56  ;;  %v1882_v3 = vor.u32 %v2217_v61, %v1881_v57  ;;  %v2195_v47 = vld [vmem:[%s3273_s1 + $0x2c4] sm:$0xf] }
  0x16   :  { %v1609_v62 = vld [vmem:[%s3273_s1 + $0x140] sm:$0xf]  ;;  %v2181_v1 = vld [vmem:[%s3273_s1 + $0x24c] sm:$0xf0]  ;;  %v1482_v2 = vor.u32 %v2117_v59, %v1481_v58  ;;  %861 = vmatpush.bf16.msra.mxu3 %v1898_v55  ;;  %849 = vmatpush.bf16.msra.mxu2 %v1754_v60  ;;  %v1803_v48 = vld [vmem:[%s3273_s1 + $0x2d0] sm:$0xf0]  ;;  %v1678_v55 = vor.u32 %v2163_v45, %v1675_v46 }
  0x17   :  { %v1737_v0 = vld [vmem:[%s3273_s1 + $0x240] sm:$0xf]  ;;  %v1610_v4 = vor.u32 %v2149_v63, %v1609_v62  ;;  %v2113_v7 = vld [vmem:[%s3273_s1 + $0x2c] sm:$0xf0]  ;;  %v811_v51 = vsel %vm806_vm0, %v676_v40, 0  ;;  %v1806_v56 = vor.u32 %v2195_v47, %v1803_v48 }
  0x18   :  { %v1865_v5 = vld [vmem:[%s3273_s1 + $0x340] sm:$0xf]  ;;  %v1738_v8 = vor.u32 %v2181_v1, %v1737_v0  ;;  %v2213_v10 = vld [vmem:[%s3273_s1 + $0x34c] sm:$0xf0]  ;;  %824 = vmatpush.bf16.msra.mxu0 %v1482_v2  ;;  %v2227_v53 = vld [vmem:[%s3273_s1 + $0x3c4] sm:$0xf] }
  0x19   :  { %v1465_v6 = vld [vmem:[%s3273_s1 + $0x20] sm:$0xf]  ;;  %v2145_v12 = vld [vmem:[%s3273_s1 + $0x12c] sm:$0xf0]  ;;  %837 = vmatpush.bf16.msra.mxu1 %v1610_v4  ;;  %v1866_v18 = vor.u32 %v2213_v10, %v1865_v5  ;;  %v1931_v54 = vld [vmem:[%s3273_s1 + $0x3d0] sm:$0xf0] }
  0x1a   :  { %v1593_v11 = vld [vmem:[%s3273_s1 + $0x120] sm:$0xf]  ;;  %v2177_v14 = vld [vmem:[%s3273_s1 + $0x22c] sm:$0xf0]  ;;  %v1466_v15 = vor.u32 %v2113_v7, %v1465_v6  ;;  %862 = vmatpush.bf16.msra.mxu3 %v1882_v3  ;;  %850 = vmatpush.bf16.msra.mxu2 %v1738_v8  ;;  %v2127_v57 = vld [vmem:[%s3273_s1 + $0xa4] sm:$0xf]  ;;  %v1934_v0 = vor.u32 %v2227_v53, %v1931_v54 }
  0x1b   :  { %v1721_v13 = vld [vmem:[%s3273_s1 + $0x220] sm:$0xf]  ;;  %v2209_v17 = vld [vmem:[%s3273_s1 + $0x32c] sm:$0xf0]  ;;  %v1594_v19 = vor.u32 %v2145_v12, %v1593_v11  ;;  %v1531_v58 = vld [vmem:[%s3273_s1 + $0xb0] sm:$0xf0] }
  0x1c   :  { %v1849_v16 = vld [vmem:[%s3273_s1 + $0x320] sm:$0xf]  ;;  %v2109_v21 = vld [vmem:[%s3273_s1 + $0xc] sm:$0xf0]  ;;  %v1722_v23 = vor.u32 %v2177_v14, %v1721_v13  ;;  %825 = vmatpush.bf16.msra.mxu0 %v1466_v15  ;;  %v2159_v59 = vld [vmem:[%s3273_s1 + $0x1a4] sm:$0xf]  ;;  %v1534_v1 = vor.u32 %v2127_v57, %v1531_v58 }
  0x1d   :  { %v1449_v20 = vld [vmem:[%s3273_s1] sm:$0xf]  ;;  %v2141_v24 = vld [vmem:[%s3273_s1 + $0x10c] sm:$0xf0]  ;;  %838 = vmatpush.bf16.msra.mxu1 %v1594_v19  ;;  %v1850_v34 = vor.u32 %v2209_v17, %v1849_v16  ;;  %v1659_v60 = vld [vmem:[%s3273_s1 + $0x1b0] sm:$0xf0] }
  0x1e   :  { %v1577_v22 = vld [vmem:[%s3273_s1 + $0x100] sm:$0xf]  ;;  %v2173_v26 = vld [vmem:[%s3273_s1 + $0x20c] sm:$0xf0]  ;;  %v1450_v31 = vor.u32 %v2109_v21, %v1449_v20  ;;  %863 = vmatpush.bf16.msra.mxu3 %v1866_v18  ;;  %851 = vmatpush.bf16.msra.mxu2 %v1722_v23  ;;  %v2191_v61 = vld [vmem:[%s3273_s1 + $0x2a4] sm:$0xf]  ;;  %v1662_v5 = vor.u32 %v2159_v59, %v1659_v60 }
  0x1f   :  { %v1705_v25 = vld [vmem:[%s3273_s1 + $0x200] sm:$0xf]  ;;  %v1578_v35 = vor.u32 %v2141_v24, %v1577_v22  ;;  %v2205_v39 = vld [vmem:[%s3273_s1 + $0x30c] sm:$0xf0]  ;;  %v1787_v62 = vld [vmem:[%s3273_s1 + $0x2b0] sm:$0xf0] }
  0x20   :  { %v1706_v36 = vor.u32 %v2173_v26, %v1705_v25  ;;  %v1833_v38 = vld [vmem:[%s3273_s1 + $0x300] sm:$0xf]  ;;  %826 = vmatpush.bf16.msra.mxu0 %v1450_v31  ;;  %v2223_v63 = vld [vmem:[%s3273_s1 + $0x3a4] sm:$0xf]  ;;  %v1915_v2 = vld [vmem:[%s3273_s1 + $0x3b0] sm:$0xf0]  ;;  %v1790_v6 = vor.u32 %v2191_v61, %v1787_v62 }
  0x21   :  { %v27_v49 = vld [vmem:[%s3272_s0] sm:$0xf]  ;;  %839 = vmatpush.bf16.msra.mxu1 %v1578_v35  ;;  %v1834_v50 = vor.u32 %v2205_v39, %v1833_v38  ;;  %v2123_v3 = vld [vmem:[%s3273_s1 + $0x84] sm:$0xf]  ;;  %v1515_v4 = vld [vmem:[%s3273_s1 + $0x90] sm:$0xf0]  ;;  %v1918_v16 = vor.u32 %v2223_v63, %v1915_v2 }
  0x22   :  { %864 = vmatpush.bf16.msra.mxu3 %v1850_v34  ;;  %165 = vst [vmem:[#allocation1] ss:$9 sm:$0xff] %v27_v49  ;;  %852 = vmatpush.bf16.msra.mxu2 %v1706_v36  ;;  %v2155_v7 = vld [vmem:[%s3273_s1 + $0x184] sm:$0xf]  ;;  %v1643_v8 = vld [vmem:[%s3273_s1 + $0x190] sm:$0xf0]  ;;  %v1518_v17 = vor.u32 %v2123_v3, %v1515_v4 }
  0x23   :  { %v2187_v10 = vld [vmem:[%s3273_s1 + $0x284] sm:$0xf]  ;;  %v1771_v11 = vld [vmem:[%s3273_s1 + $0x290] sm:$0xf0]  ;;  %v1646_v20 = vor.u32 %v2155_v7, %v1643_v8  ;;  %v2138_v2 = vld [vmem:[%s3273_s1 + $0xf4] sm:$0xf0] }
  0x24   :  { %871 = vmatpush.bf16.msrb.mxu0 %v1566_v37  ;;  %v2219_v18 = vld [vmem:[%s3273_s1 + $0x384] sm:$0xf]  ;;  %v1899_v19 = vld [vmem:[%s3273_s1 + $0x390] sm:$0xf0]  ;;  %v1774_v21 = vor.u32 %v2187_v10, %v1771_v11  ;;  %v1697_v3 = vld [vmem:[%s3273_s1 + $0x1e8] sm:$0xf] }
  0x25   :  { %884 = vmatpush.bf16.msrb.mxu1 %v1694_v42  ;;  %v2119_v22 = vld [vmem:[%s3273_s1 + $0x64] sm:$0xf]  ;;  %v1499_v23 = vld [vmem:[%s3273_s1 + $0x70] sm:$0xf0]  ;;  %v1902_v28 = vor.u32 %v2219_v18, %v1899_v19  ;;  %v2170_v4 = vld [vmem:[%s3273_s1 + $0x1f4] sm:$0xf0] }
  0x26   :  { %897 = vmatpush.bf16.msrb.mxu2 %v1822_v43  ;;  %865 = vmatpush.bf16.msra.mxu3 %v1834_v50  ;;  %v2151_v24 = vld [vmem:[%s3273_s1 + $0x164] sm:$0xf]  ;;  %v1627_v25 = vld [vmem:[%s3273_s1 + $0x170] sm:$0xf0]  ;;  %v1502_v29 = vor.u32 %v2119_v22, %v1499_v23  ;;  %v1825_v7 = vld [vmem:[%s3273_s1 + $0x2e8] sm:$0xf]  ;;  %v1698_v19 = vor.u32 %v2170_v4, %v1697_v3 }
  0x27   :  { %v2183_v26 = vld [vmem:[%s3273_s1 + $0x264] sm:$0xf]  ;;  %v1755_v27 = vld [vmem:[%s3273_s1 + $0x270] sm:$0xf0]  ;;  %v1630_v32 = vor.u32 %v2151_v24, %v1627_v25  ;;  %v2202_v8 = vld [vmem:[%s3273_s1 + $0x2f4] sm:$0xf0] }
  0x28   :  { %872 = vmatpush.bf16.msrb.mxu0 %v1550_v52  ;;  %v2215_v30 = vld [vmem:[%s3273_s1 + $0x364] sm:$0xf]  ;;  %v1883_v31 = vld [vmem:[%s3273_s1 + $0x370] sm:$0xf0]  ;;  %v1758_v9 = vor.u32 %v2183_v26, %v1755_v27  ;;  %v1826_v22 = vor.u32 %v2202_v8, %v1825_v7  ;;  %v2134_v23 = vld [vmem:[%s3273_s1 + $0xd4] sm:$0xf0] }
  0x29   :  { %885 = vmatpush.bf16.msrb.mxu1 %v1678_v55  ;;  %v2623_v12 = vld [vmem:[#allocation1 + $0x12] sm:$0xff]  ;;  %v2625_v13 = vld [vmem:[#allocation1] sm:$0xff]  ;;  %v2631_v15 = vld [vmem:[#allocation1 + $0x9] sm:$0xff]  ;;  %v1886_v39 = vor.u32 %v2215_v30, %v1883_v31 }
  0x2a   :  { %910 = vmatpush.bf16.msrb.mxu3 %v811_v51  ;;  %898 = vmatpush.bf16.msrb.mxu2 %v1806_v56  ;;  %v2629_v14 = vld [vmem:[#allocation1 + $0x1b] sm:$0xff]  ;;  %v2115_v33 = vld [vmem:[%s3273_s1 + $0x44] sm:$0xf]  ;;  %v1483_v34 = vld [vmem:[%s3273_s1 + $0x50] sm:$0xf0] }
  0x2b   :  { %853 = vmatmul.bf16.vlgmr.msra.gmra.mxu2 %v2623_v12  ;;  %827 = vmatmul.bf16.vlgmr.msra.gmra.mxu0 %v2625_v13  ;;  %v2147_v35 = vld [vmem:[%s3273_s1 + $0x144] sm:$0xf]  ;;  %v1611_v36 = vld [vmem:[%s3273_s1 + $0x150] sm:$0xf0]  ;;  %v1486_v40 = vor.u32 %v2115_v33, %v1483_v34  ;;  %v2711_v51 = vld [vmem:[%s3273_s1 + $0x3e8] sm:$0x33] }
  0x2c   :  { %873 = vmatpush.bf16.msrb.mxu0 %v1534_v1  ;;  %1943 = vmatmul.msk.bf16.vlgmr.msra.gmra.mxu3 %vm803_vm1, %v2629_v14  ;;  %v2179_v37 = vld [vmem:[%s3273_s1 + $0x244] sm:$0xf]  ;;  %v1739_v38 = vld [vmem:[%s3273_s1 + $0x250] sm:$0xf0]  ;;  %v1614_v43 = vor.u32 %v2147_v35, %v1611_v36  ;;  %v549_v1 = vunpack.c.l.b16 %v2711_v51  ;;  %v1681_v24 = vld [vmem:[%s3273_s1 + $0x1c8] sm:$0xf] }
  0x2d   :  { %886 = vmatpush.bf16.msrb.mxu1 %v1662_v5  ;;  %v2211_v41 = vld [vmem:[%s3273_s1 + $0x344] sm:$0xf]  ;;  %v1867_v42 = vld [vmem:[%s3273_s1 + $0x350] sm:$0xf0]  ;;  %v1742_v44 = vor.u32 %v2179_v37, %v1739_v38  ;;  %v2166_v25 = vld [vmem:[%s3273_s1 + $0x1d4] sm:$0xf0] }
  0x2e   :  { %911 = vmatpush.bf16.msrb.mxu3 %v1934_v0  ;;  %899 = vmatpush.bf16.msrb.mxu2 %v1790_v6  ;;  %v2111_v45 = vld [vmem:[%s3273_s1 + $0x24] sm:$0xf]  ;;  %v1467_v46 = vld [vmem:[%s3273_s1 + $0x30] sm:$0xf0]  ;;  %v1870_v52 = vor.u32 %v2211_v41, %v1867_v42  ;;  %v1569_v0 = vld [vmem:[%s3273_s1 + $0xe8] sm:$0xf] }
  0x2f   :  { %840 = vmatmul.bf16.vlgmr.msra.gmra.mxu1 %v2631_v15  ;;  %v2143_v47 = vld [vmem:[%s3273_s1 + $0x124] sm:$0xf]  ;;  %v1595_v48 = vld [vmem:[%s3273_s1 + $0x130] sm:$0xf0]  ;;  %v1470_v53 = vor.u32 %v2111_v45, %v1467_v46  ;;  %v1570_v18 = vor.u32 %v2138_v2, %v1569_v0  ;;  %v1809_v27 = vld [vmem:[%s3273_s1 + $0x2c8] sm:$0xf] }
  0x30   :  { %874 = vmatpush.bf16.msrb.mxu0 %v1518_v17  ;;  %v2175_v49 = vld [vmem:[%s3273_s1 + $0x224] sm:$0xf]  ;;  %v1723_v50 = vld [vmem:[%s3273_s1 + $0x230] sm:$0xf0]  ;;  %v1598_v57 = vor.u32 %v2143_v47, %v1595_v48  ;;  %v1537_v33 = vld [vmem:[%s3273_s1 + $0xa8] sm:$0xf] }
  0x31   :  { %887 = vmatpush.bf16.msrb.mxu1 %v1646_v20  ;;  %v2207_v54 = vld [vmem:[%s3273_s1 + $0x324] sm:$0xf]  ;;  %v1851_v55 = vld [vmem:[%s3273_s1 + $0x330] sm:$0xf0]  ;;  %v1726_v58 = vor.u32 %v2175_v49, %v1723_v50  ;;  %v677_v20 = vpack.c.b16 %v549_v1, %v549_v1  ;;  %v2130_v35 = vld [vmem:[%s3273_s1 + $0xb4] sm:$0xf0] }
  0x32   :  { %912 = vmatpush.bf16.msrb.mxu3 %v1918_v16  ;;  %900 = vmatpush.bf16.msrb.mxu2 %v1774_v21  ;;  %v2107_v56 = vld [vmem:[%s3273_s1 + $0x4] sm:$0xf]  ;;  %v1451_v59 = vld [vmem:[%s3273_s1 + $0x10] sm:$0xf0]  ;;  %v1854_v5 = vor.u32 %v2207_v54, %v1851_v55  ;;  %v1553_v21 = vld [vmem:[%s3273_s1 + $0xc8] sm:$0xf]  ;;  %v1538_v41 = vor.u32 %v2130_v35, %v1537_v33 }
  0x33   :  { %v2139_v60 = vld [vmem:[%s3273_s1 + $0x104] sm:$0xf]  ;;  %v1579_v61 = vld [vmem:[%s3273_s1 + $0x110] sm:$0xf0]  ;;  %v1454_v6 = vor.u32 %v2107_v56, %v1451_v59  ;;  %v814_v30 = vsel %vm806_vm0, %v677_v20, 0  ;;  %v1554_v31 = vor.u32 %v2134_v23, %v1553_v21 }
  0x34   :  { %875 = vmatpush.bf16.msrb.mxu0 %v1502_v29  ;;  %v2171_v62 = vld [vmem:[%s3273_s1 + $0x204] sm:$0xf]  ;;  %v1707_v63 = vld [vmem:[%s3273_s1 + $0x210] sm:$0xf0]  ;;  %v1582_v10 = vor.u32 %v2139_v60, %v1579_v61  ;;  %v1937_v29 = vld [vmem:[%s3273_s1 + $0x3c8] sm:$0xf] }
  0x35   :  { %888 = vmatpush.bf16.msrb.mxu1 %v1630_v32  ;;  %v1710_v11 = vor.u32 %v2171_v62, %v1707_v63  ;;  %v2203_v16 = vld [vmem:[%s3273_s1 + $0x304] sm:$0xf]  ;;  %v1835_v17 = vld [vmem:[%s3273_s1 + $0x310] sm:$0xf0]  ;;  %v1682_v32 = vor.u32 %v2166_v25, %v1681_v24  ;;  %v1665_v36 = vld [vmem:[%s3273_s1 + $0x1a8] sm:$0xf] }
  0x36   :  { %913 = vmatpush.bf16.msrb.mxu3 %v1902_v28  ;;  %901 = vmatpush.bf16.msrb.mxu2 %v1758_v9  ;;  %v1838_v26 = vor.u32 %v2203_v16, %v1835_v17  ;;  %v2198_v28 = vld [vmem:[%s3273_s1 + $0x2d4] sm:$0xf0]  ;;  %v1793_v38 = vld [vmem:[%s3273_s1 + $0x2a8] sm:$0xf] }
  0x37   :  { %v2230_v9 = vld [vmem:[%s3273_s1 + $0x3d4] sm:$0xf0]  ;;  %v1810_v34 = vor.u32 %v2198_v28, %v1809_v27  ;;  %v1521_v45 = vld [vmem:[%s3273_s1 + $0x88] sm:$0xf] }
  0x38   :  { %876 = vmatpush.bf16.msrb.mxu0 %v1486_v40  ;;  %v2162_v37 = vld [vmem:[%s3273_s1 + $0x1b4] sm:$0xf0]  ;;  %v1938_v40 = vor.u32 %v2230_v9, %v1937_v29  ;;  %v1649_v48 = vld [vmem:[%s3273_s1 + $0x188] sm:$0xf] }
  0x39   :  { %889 = vmatpush.bf16.msrb.mxu1 %v1614_v43  ;;  %v1666_v42 = vor.u32 %v2162_v37, %v1665_v36  ;;  %v1921_v43 = vld [vmem:[%s3273_s1 + $0x3a8] sm:$0xf]  ;;  %v2126_v47 = vld [vmem:[%s3273_s1 + $0x94] sm:$0xf0] }
  0x3a   :  { %914 = vmatpush.bf16.msrb.mxu3 %v1886_v39  ;;  %902 = vmatpush.bf16.msrb.mxu2 %v1742_v44  ;;  %v2194_v39 = vld [vmem:[%s3273_s1 + $0x2b4] sm:$0xf0]  ;;  %v1777_v50 = vld [vmem:[%s3273_s1 + $0x288] sm:$0xf]  ;;  %v1522_v54 = vor.u32 %v2126_v47, %v1521_v45 }
  0x3b   :  { %v2226_v44 = vld [vmem:[%s3273_s1 + $0x3b4] sm:$0xf0]  ;;  %v1794_v46 = vor.u32 %v2194_v39, %v1793_v38  ;;  %v1905_v56 = vld [vmem:[%s3273_s1 + $0x388] sm:$0xf] }
  0x3c   :  { %877 = vmatpush.bf16.msrb.mxu0 %v1470_v53  ;;  %v2158_v49 = vld [vmem:[%s3273_s1 + $0x194] sm:$0xf0]  ;;  %v1922_v53 = vor.u32 %v2226_v44, %v1921_v43  ;;  %v1633_v61 = vld [vmem:[%s3273_s1 + $0x168] sm:$0xf] }
  0x3d   :  { %890 = vmatpush.bf16.msrb.mxu1 %v1598_v57  ;;  %v1650_v55 = vor.u32 %v2158_v49, %v1649_v48  ;;  %v2222_v57 = vld [vmem:[%s3273_s1 + $0x394] sm:$0xf0]  ;;  %v1761_v63 = vld [vmem:[%s3273_s1 + $0x268] sm:$0xf] }
  0x3e   :  { %915 = vmatpush.bf16.msrb.mxu3 %v1870_v52  ;;  %903 = vmatpush.bf16.msrb.mxu2 %v1726_v58  ;;  %v2190_v52 = vld [vmem:[%s3273_s1 + $0x294] sm:$0xf0]  ;;  %v1505_v58 = vld [vmem:[%s3273_s1 + $0x68] sm:$0xf]  ;;  %v1906_v1 = vor.u32 %v2222_v57, %v1905_v56 }
  0x3f   :  { %v1778_v59 = vor.u32 %v2190_v52, %v1777_v50  ;;  %v2122_v60 = vld [vmem:[%s3273_s1 + $0x74] sm:$0xf0]  ;;  %v1889_v4 = vld [vmem:[%s3273_s1 + $0x368] sm:$0xf] }
  0x40   :  { %878 = vmatpush.bf16.msrb.mxu0 %v1454_v6  ;;  %v2154_v62 = vld [vmem:[%s3273_s1 + $0x174] sm:$0xf0]  ;;  %v1506_v2 = vor.u32 %v2122_v60, %v1505_v58  ;;  %v1489_v6 = vld [vmem:[%s3273_s1 + $0x48] sm:$0xf] }
  0x41   :  { %891 = vmatpush.bf16.msrb.mxu1 %v1582_v10  ;;  %v2186_v0 = vld [vmem:[%s3273_s1 + $0x274] sm:$0xf0]  ;;  %v1634_v3 = vor.u32 %v2154_v62, %v1633_v61  ;;  %v1617_v10 = vld [vmem:[%s3273_s1 + $0x148] sm:$0xf] }
  0x42   :  { %916 = vmatpush.bf16.msrb.mxu3 %v1854_v5  ;;  %904 = vmatpush.bf16.msrb.mxu2 %v1710_v11  ;;  %v2218_v5 = vld [vmem:[%s3273_s1 + $0x374] sm:$0xf0]  ;;  %v1762_v7 = vor.u32 %v2186_v0, %v1761_v63  ;;  %v1745_v16 = vld [vmem:[%s3273_s1 + $0x248] sm:$0xf] }
  0x43   :  { %879 = vmatmul.bf16.vlgmr.msrb.gmra.mxu0 %v2625_v13  ;;  %v2118_v8 = vld [vmem:[%s3273_s1 + $0x54] sm:$0xf0]  ;;  %v1473_v23 = vld [vmem:[%s3273_s1 + $0x28] sm:$0xf] }
  0x44   :  { %923 = vmatpush.bf16.msra.mxu0 %v1570_v18  ;;  %892 = vmatmul.bf16.vlgmr.msrb.gmra.mxu1 %v2631_v15  ;;  %v2150_v11 = vld [vmem:[%s3273_s1 + $0x154] sm:$0xf0]  ;;  %v1890_v18 = vor.u32 %v2218_v5, %v1889_v4  ;;  %v1490_v20 = vor.u32 %v2118_v8, %v1489_v6  ;;  %v1729_v28 = vld [vmem:[%s3273_s1 + $0x228] sm:$0xf] }
  0x45   :  { %936 = vmatpush.bf16.msra.mxu1 %v1698_v19  ;;  %905 = vmatmul.bf16.vlgmr.msrb.gmra.mxu2 %v2623_v12  ;;  %v2182_v17 = vld [vmem:[%s3273_s1 + $0x254] sm:$0xf0]  ;;  %v1873_v19 = vld [vmem:[%s3273_s1 + $0x348] sm:$0xf]  ;;  %v1618_v21 = vor.u32 %v2150_v11, %v1617_v10 }
  0x46   :  { %949 = vmatpush.bf16.msra.mxu2 %v1826_v22  ;;  %917 = vmatpush.bf16.msrb.mxu3 %v1838_v26  ;;  %v2214_v22 = vld [vmem:[%s3273_s1 + $0x354] sm:$0xf0]  ;;  %v1746_v25 = vor.u32 %v2182_v17, %v1745_v16  ;;  %v1601_v26 = vld [vmem:[%s3273_s1 + $0x128] sm:$0xf] }
  0x47   :  { %v2114_v24 = vld [vmem:[%s3273_s1 + $0x34] sm:$0xf0]  ;;  %v1457_v9 = vld [vmem:[%s3273_s1 + $0x8] sm:$0xf] }
  0x48   :  { %924 = vmatpush.bf16.msra.mxu0 %v1554_v31  ;;  %v2146_v27 = vld [vmem:[%s3273_s1 + $0x134] sm:$0xf0]  ;;  %v1874_v31 = vor.u32 %v2214_v22, %v1873_v19  ;;  %v1585_v36 = vld [vmem:[%s3273_s1 + $0x108] sm:$0xf] }
  0x49   :  { %937 = vmatpush.bf16.msra.mxu1 %v1682_v32  ;;  %1944 = vmatmul.msk.bf16.vlgmr.msrb.gmra.mxu3 %vm803_vm1, %v2629_v14  ;;  %v2178_v29 = vld [vmem:[%s3273_s1 + $0x234] sm:$0xf0]  ;;  %v1602_v35 = vor.u32 %v2146_v27, %v1601_v26  ;;  %v1713_v38 = vld [vmem:[%s3273_s1 + $0x208] sm:$0xf] }
  0x4a   :  { %962 = vmatpush.bf16.msra.mxu3 %v814_v30  ;;  %950 = vmatpush.bf16.msra.mxu2 %v1810_v34  ;;  %v1857_v30 = vld [vmem:[%s3273_s1 + $0x328] sm:$0xf]  ;;  %v2210_v32 = vld [vmem:[%s3273_s1 + $0x334] sm:$0xf0]  ;;  %v1474_v34 = vor.u32 %v2114_v24, %v1473_v23  ;;  %v1730_v39 = vor.u32 %v2178_v29, %v1729_v28 }
  0x4b   :  { %v2110_v33 = vld [vmem:[%s3273_s1 + $0x14] sm:$0xf0] }
  0x4c   :  { %925 = vmatpush.bf16.msra.mxu0 %v1538_v41  ;;  %v2142_v37 = vld [vmem:[%s3273_s1 + $0x114] sm:$0xf0]  ;;  %v550_v41 = vunpack.c.h.b16 %v2711_v51 }
  0x4d   :  { %938 = vmatpush.bf16.msra.mxu1 %v1666_v42 }
  0x4e   :  { %963 = vmatpush.bf16.msra.mxu3 %v1938_v40  ;;  %951 = vmatpush.bf16.msra.mxu2 %v1794_v46  ;;  %v2174_v40 = vld [vmem:[%s3273_s1 + $0x214] sm:$0xf0] }
  0x50   :  { %926 = vmatpush.bf16.msra.mxu0 %v1522_v54 }
  0x51   :  { %939 = vmatpush.bf16.msra.mxu1 %v1650_v55 }
  0x52   :  { %964 = vmatpush.bf16.msra.mxu3 %v1922_v53  ;;  %952 = vmatpush.bf16.msra.mxu2 %v1778_v59 }
  0x54   :  { %927 = vmatpush.bf16.msra.mxu0 %v1506_v2 }
  0x55   :  { %940 = vmatpush.bf16.msra.mxu1 %v1634_v3 }
  0x56   :  { %965 = vmatpush.bf16.msra.mxu3 %v1906_v1  ;;  %953 = vmatpush.bf16.msra.mxu2 %v1762_v7 }
  0x58   :  { %928 = vmatpush.bf16.msra.mxu0 %v1490_v20 }
  0x59   :  { %941 = vmatpush.bf16.msra.mxu1 %v1618_v21 }
  0x5a   :  { %966 = vmatpush.bf16.msra.mxu3 %v1890_v18  ;;  %954 = vmatpush.bf16.msra.mxu2 %v1746_v25 }
  0x5b   :  { %12 = vsyncpa [#allocation3], 0  ;;  %v2136_v42 = vld [vmem:[%s3273_s1 + $0xec] sm:$0xf]  ;;  %v1571_v43 = vld [vmem:[%s3273_s1 + $0xf8] sm:$0xf0]  ;;  %v1858_v45 = vor.u32 %v2210_v32, %v1857_v30  ;;  %v1458_v48 = vor.u32 %v2110_v33, %v1457_v9  ;;  %v1586_v49 = vor.u32 %v2142_v37, %v1585_v36  ;;  %v1714_v53 = vor.u32 %v2174_v40, %v1713_v38 }
  0x5c   :  { %v2168_v44 = vld [vmem:[%s3273_s1 + $0x1ec] sm:$0xf]  ;;  %v1699_v46 = vld [vmem:[%s3273_s1 + $0x1f8] sm:$0xf0]  ;;  %929 = vmatpush.bf16.msra.mxu0 %v1474_v34  ;;  %v1841_v50 = vld [vmem:[%s3273_s1 + $0x308] sm:$0xf]  ;;  %v1574_v54 = vor.u32 %v2136_v42, %v1571_v43  ;;  %v678_v55 = vpack.c.b16 %v550_v41, %v550_v41 }
  0x5d   :  { %v2200_v51 = vld [vmem:[%s3273_s1 + $0x2ec] sm:$0xf]  ;;  %v1827_v47 = vld [vmem:[%s3273_s1 + $0x2f8] sm:$0xf0]  ;;  %942 = vmatpush.bf16.msra.mxu1 %v1602_v35  ;;  %v2206_v52 = vld [vmem:[%s3273_s1 + $0x314] sm:$0xf0]  ;;  %v1702_v56 = vor.u32 %v2168_v44, %v1699_v46 }
  0x5e   :  { %967 = vmatpush.bf16.msra.mxu3 %v1874_v31  ;;  %955 = vmatpush.bf16.msra.mxu2 %v1730_v39  ;;  %v1830_v57 = vor.u32 %v2200_v51, %v1827_v47  ;;  %v2132_v58 = vld [vmem:[%s3273_s1 + $0xcc] sm:$0xf]  ;;  %v1555_v59 = vld [vmem:[%s3273_s1 + $0xd8] sm:$0xf0]  ;;  %v1842_v61 = vor.u32 %v2206_v52, %v1841_v50  ;;  %v817_v1 = vsel %vm806_vm0, %v678_v55, 0  ;;  %s1438_s14 = sshll.u32 %s3279_s7, 4  ;;  %s1439_s14 = int_to_ptr.hbm [resolvable:$true] %s1438_s14 }
  0x5f   :  { %v2164_v60 = vld [vmem:[%s3273_s1 + $0x1cc] sm:$0xf]  ;;  %v1683_v62 = vld [vmem:[%s3273_s1 + $0x1d8] sm:$0xf0]  ;;  %v1558_v2 = vor.u32 %v2132_v58, %v1555_v59 }
  0x60   :  { %v2196_v63 = vld [vmem:[%s3273_s1 + $0x2cc] sm:$0xf]  ;;  %v1811_v0 = vld [vmem:[%s3273_s1 + $0x2d8] sm:$0xf0]  ;;  %930 = vmatpush.bf16.msra.mxu0 %v1458_v48  ;;  %v1686_v5 = vor.u32 %v2164_v60, %v1683_v62 }
  0x61   :  { %943 = vmatpush.bf16.msra.mxu1 %v1586_v49  ;;  %v2228_v3 = vld [vmem:[%s3273_s1 + $0x3cc] sm:$0xf]  ;;  %v1939_v4 = vld [vmem:[%s3273_s1 + $0x3d8] sm:$0xf0]  ;;  %v1814_v6 = vor.u32 %v2196_v63, %v1811_v0 }
  0x62   :  { %968 = vmatpush.bf16.msra.mxu3 %v1858_v45  ;;  %956 = vmatpush.bf16.msra.mxu2 %v1714_v53  ;;  %v2128_v7 = vld [vmem:[%s3273_s1 + $0xac] sm:$0xf]  ;;  %v1539_v8 = vld [vmem:[%s3273_s1 + $0xb8] sm:$0xf0]  ;;  %v1942_v18 = vor.u32 %v2228_v3, %v1939_v4 }
  0x63   :  { %v2160_v10 = vld [vmem:[%s3273_s1 + $0x1ac] sm:$0xf]  ;;  %931 = vmatmul.bf16.vlgmr.msra.gmra.mxu0 %v2625_v13  ;;  %v1667_v11 = vld [vmem:[%s3273_s1 + $0x1b8] sm:$0xf0]  ;;  %v1542_v19 = vor.u32 %v2128_v7, %v1539_v8 }
  0x64   :  { %975 = vmatpush.bf16.msrb.mxu0 %v1574_v54  ;;  %v2192_v16 = vld [vmem:[%s3273_s1 + $0x2ac] sm:$0xf]  ;;  %v1795_v17 = vld [vmem:[%s3273_s1 + $0x2b8] sm:$0xf0]  ;;  %944 = vmatmul.bf16.vlgmr.msra.gmra.mxu1 %v2631_v15  ;;  %v1670_v22 = vor.u32 %v2160_v10, %v1667_v11 }
  0x65   :  { %988 = vmatpush.bf16.msrb.mxu1 %v1702_v56  ;;  %957 = vmatmul.bf16.vlgmr.msra.gmra.mxu2 %v2623_v12  ;;  %v2224_v20 = vld [vmem:[%s3273_s1 + $0x3ac] sm:$0xf]  ;;  %v1923_v21 = vld [vmem:[%s3273_s1 + $0x3b8] sm:$0xf0]  ;;  %v1798_v23 = vor.u32 %v2192_v16, %v1795_v17 }
  0x66   :  { %1001 = vmatpush.bf16.msrb.mxu2 %v1830_v57  ;;  %969 = vmatpush.bf16.msra.mxu3 %v1842_v61  ;;  %v2124_v24 = vld [vmem:[%s3273_s1 + $0x8c] sm:$0xf]  ;;  %v1523_v25 = vld [vmem:[%s3273_s1 + $0x98] sm:$0xf0]  ;;  %v1926_v30 = vor.u32 %v2224_v20, %v1923_v21 }
  0x67   :  { %v2156_v26 = vld [vmem:[%s3273_s1 + $0x18c] sm:$0xf]  ;;  %v1651_v27 = vld [vmem:[%s3273_s1 + $0x198] sm:$0xf0]  ;;  %v1526_v31 = vor.u32 %v2124_v24, %v1523_v25 }
  0x68   :  { %976 = vmatpush.bf16.msrb.mxu0 %v1558_v2  ;;  %v2188_v28 = vld [vmem:[%s3273_s1 + $0x28c] sm:$0xf]  ;;  %v1779_v29 = vld [vmem:[%s3273_s1 + $0x298] sm:$0xf0]  ;;  %v1654_v33 = vor.u32 %v2156_v26, %v1651_v27  ;;  %v2237_v27 = vld [vmem:[%s3275_s3 + $0x30] sm:$0xff] }
  0x69   :  { %989 = vmatpush.bf16.msrb.mxu1 %v1686_v5  ;;  %1945 = vmatmul.msk.bf16.vlgmr.msra.gmra.mxu3 %vm803_vm1, %v2629_v14  ;;  %v2220_v32 = vld [vmem:[%s3273_s1 + $0x38c] sm:$0xf]  ;;  %v1907_v9 = vld [vmem:[%s3273_s1 + $0x398] sm:$0xf0]  ;;  %v1782_v34 = vor.u32 %v2188_v28, %v1779_v29  ;;  %v2235_v29 = vld [vmem:[%s3275_s3 + $0x20] sm:$0xff] }
  0x6a   :  { %1014 = vmatpush.bf16.msrb.mxu3 %v817_v1  ;;  %1002 = vmatpush.bf16.msrb.mxu2 %v1814_v6  ;;  %v2120_v35 = vld [vmem:[%s3273_s1 + $0x6c] sm:$0xf]  ;;  %v1507_v36 = vld [vmem:[%s3273_s1 + $0x78] sm:$0xf0]  ;;  %v1910_v41 = vor.u32 %v2220_v32, %v1907_v9  ;;  %v2231_v9 = vld [vmem:[%s3275_s3] sm:$0xff] }
  0x6b   :  { %v2152_v37 = vld [vmem:[%s3273_s1 + $0x16c] sm:$0xf]  ;;  %v1635_v38 = vld [vmem:[%s3273_s1 + $0x178] sm:$0xf0]  ;;  %v1510_v42 = vor.u32 %v2120_v35, %v1507_v36 }
  0x6c   :  { %977 = vmatpush.bf16.msrb.mxu0 %v1542_v19  ;;  %v2184_v39 = vld [vmem:[%s3273_s1 + $0x26c] sm:$0xf]  ;;  %v1763_v40 = vld [vmem:[%s3273_s1 + $0x278] sm:$0xf0]  ;;  %v1638_v45 = vor.u32 %v2152_v37, %v1635_v38 }
  0x6d   :  { %990 = vmatpush.bf16.msrb.mxu1 %v1670_v22  ;;  %v2216_v43 = vld [vmem:[%s3273_s1 + $0x36c] sm:$0xf]  ;;  %v1891_v44 = vld [vmem:[%s3273_s1 + $0x378] sm:$0xf0]  ;;  %v1766_v46 = vor.u32 %v2184_v39, %v1763_v40 }
  0x6e   :  { %1015 = vmatpush.bf16.msrb.mxu3 %v1942_v18  ;;  %1003 = vmatpush.bf16.msrb.mxu2 %v1798_v23  ;;  %v2116_v51 = vld [vmem:[%s3273_s1 + $0x4c] sm:$0xf]  ;;  %v1491_v47 = vld [vmem:[%s3273_s1 + $0x58] sm:$0xf0]  ;;  %v1894_v53 = vor.u32 %v2216_v43, %v1891_v44 }
  0x6f   :  { %v2148_v48 = vld [vmem:[%s3273_s1 + $0x14c] sm:$0xf]  ;;  %v1619_v49 = vld [vmem:[%s3273_s1 + $0x158] sm:$0xf0]  ;;  %v1494_v54 = vor.u32 %v2116_v51, %v1491_v47  ;;  %v2253_v51 = vld [vmem:[%s3275_s3 + $0xb0] sm:$0xff] }
  0x70   :  { %978 = vmatpush.bf16.msrb.mxu0 %v1526_v31  ;;  %v2180_v50 = vld [vmem:[%s3273_s1 + $0x24c] sm:$0xf]  ;;  %v1747_v52 = vld [vmem:[%s3273_s1 + $0x258] sm:$0xf0]  ;;  %v1622_v57 = vor.u32 %v2148_v48, %v1619_v49 }
  0x71   :  { %991 = vmatpush.bf16.msrb.mxu1 %v1654_v33  ;;  %v2212_v55 = vld [vmem:[%s3273_s1 + $0x34c] sm:$0xf]  ;;  %v1875_v56 = vld [vmem:[%s3273_s1 + $0x358] sm:$0xf0]  ;;  %v1750_v58 = vor.u32 %v2180_v50, %v1747_v52  ;;  %v3176_v33 = vld [vmem:[%s3274_s2] sm:$0xf] }
  0x72   :  { %1016 = vmatpush.bf16.msrb.mxu3 %v1926_v30  ;;  %1004 = vmatpush.bf16.msrb.mxu2 %v1782_v34  ;;  %v2112_v59 = vld [vmem:[%s3273_s1 + $0x2c] sm:$0xf]  ;;  %v1475_v60 = vld [vmem:[%s3273_s1 + $0x38] sm:$0xf0]  ;;  %v1878_v1 = vor.u32 %v2212_v55, %v1875_v56  ;;  %v2243_v30 = vld [vmem:[%s3275_s3 + $0x60] sm:$0xff]  ;;  %v156_v35 = vperm.slane %v3176_v33, 0 }
  0x73   :  { %v2144_v61 = vld [vmem:[%s3273_s1 + $0x12c] sm:$0xf]  ;;  %v1603_v62 = vld [vmem:[%s3273_s1 + $0x138] sm:$0xf0]  ;;  %v1478_v2 = vor.u32 %v2112_v59, %v1475_v60  ;;  %v2241_v34 = vld [vmem:[%s3275_s3 + $0x50] sm:$0xff] }
  0x74   :  { %979 = vmatpush.bf16.msrb.mxu0 %v1510_v42  ;;  %v2176_v63 = vld [vmem:[%s3273_s1 + $0x22c] sm:$0xf]  ;;  %v1731_v0 = vld [vmem:[%s3273_s1 + $0x238] sm:$0xf0]  ;;  %v1606_v5 = vor.u32 %v2144_v61, %v1603_v62  ;;  %v2249_v60 = vld [vmem:[%s3275_s3 + $0x90] sm:$0xff] }
  0x75   :  { %992 = vmatpush.bf16.msrb.mxu1 %v1638_v45  ;;  %v2208_v3 = vld [vmem:[%s3273_s1 + $0x32c] sm:$0xf]  ;;  %v1859_v4 = vld [vmem:[%s3273_s1 + $0x338] sm:$0xf0]  ;;  %v1734_v6 = vor.u32 %v2176_v63, %v1731_v0 }
  0x76   :  { %1017 = vmatpush.bf16.msrb.mxu3 %v1910_v41  ;;  %1005 = vmatpush.bf16.msrb.mxu2 %v1766_v46  ;;  %v2108_v7 = vld [vmem:[%s3273_s1 + $0xc] sm:$0xf]  ;;  %v1459_v8 = vld [vmem:[%s3273_s1 + $0x18] sm:$0xf0]  ;;  %v1862_v18 = vor.u32 %v2208_v3, %v1859_v4  ;;  %v2239_v41 = vld [vmem:[%s3275_s3 + $0x40] sm:$0xff] }
  0x77   :  { %v2140_v10 = vld [vmem:[%s3273_s1 + $0x10c] sm:$0xf]  ;;  %v1587_v11 = vld [vmem:[%s3273_s1 + $0x118] sm:$0xf0]  ;;  %v1462_v19 = vor.u32 %v2108_v7, %v1459_v8 }
  0x78   :  { %980 = vmatpush.bf16.msrb.mxu0 %v1494_v54  ;;  %v2172_v16 = vld [vmem:[%s3273_s1 + $0x20c] sm:$0xf]  ;;  %v1715_v17 = vld [vmem:[%s3273_s1 + $0x218] sm:$0xf0]  ;;  %v1590_v22 = vor.u32 %v2140_v10, %v1587_v11  ;;  %v2251_v54 = vld [vmem:[%s3275_s3 + $0xa0] sm:$0xff] }
  0x79   :  { %993 = vmatpush.bf16.msrb.mxu1 %v1622_v57  ;;  %v2204_v20 = vld [vmem:[%s3273_s1 + $0x30c] sm:$0xf]  ;;  %v1843_v21 = vld [vmem:[%s3273_s1 + $0x318] sm:$0xf0]  ;;  %v1718_v23 = vor.u32 %v2172_v16, %v1715_v17  ;;  %v157_v57 = vperm.slane %v3176_v33, 1  ;;  %v2261_v16 = vld [vmem:[%s3275_s3 + $0xf0] sm:$0xff] }
  0x7a   :  { %1018 = vmatpush.bf16.msrb.mxu3 %v1894_v53  ;;  %1006 = vmatpush.bf16.msrb.mxu2 %v1750_v58  ;;  %v2238_v24 = vld [vmem:[%s3275_s3 + $0x38] sm:$0xff]  ;;  %v1846_v26 = vor.u32 %v2204_v20, %v1843_v21  ;;  %v2236_v28 = vld [vmem:[%s3275_s3 + $0x28] sm:$0xff]  ;;  %v158_v20 = vperm.slane %v3176_v33, 2 }
  0x7b   :  { %v2246_v25 = vld [vmem:[%s3275_s3 + $0x78] sm:$0xff]  ;;  %v2232_v31 = vld [vmem:[%s3275_s3 + $0x8] sm:$0xff] }
  0x7c   :  { %981 = vmatpush.bf16.msrb.mxu0 %v1478_v2  ;;  %v2242_v32 = vld [vmem:[%s3275_s3 + $0x58] sm:$0xff]  ;;  %v2240_v38 = vld [vmem:[%s3275_s3 + $0x48] sm:$0xff] }
  0x7d   :  { %994 = vmatpush.bf16.msrb.mxu1 %v1606_v5  ;;  %v2254_v43 = vld [vmem:[%s3275_s3 + $0xb8] sm:$0xff]  ;;  %v2252_v50 = vld [vmem:[%s3275_s3 + $0xa8] sm:$0xff]  ;;  %v2247_v5 = vld [vmem:[%s3275_s3 + $0x80] sm:$0xff] }
  0x7e   :  { %1019 = vmatpush.bf16.msrb.mxu3 %v1878_v1  ;;  %1007 = vmatpush.bf16.msrb.mxu2 %v1734_v6  ;;  %v2250_v56 = vld [vmem:[%s3275_s3 + $0x98] sm:$0xff]  ;;  %v2248_v63 = vld [vmem:[%s3275_s3 + $0x88] sm:$0xff] }
  0x7f   :  { %v2262_v7 = vld [vmem:[%s3275_s3 + $0xf8] sm:$0xff]  ;;  %v2260_v17 = vld [vmem:[%s3275_s3 + $0xe8] sm:$0xff] }
  0x80   :  { %982 = vmatpush.bf16.msrb.mxu0 %v1462_v19  ;;  %v2259_v19 = vld [vmem:[%s3275_s3 + $0xe0] sm:$0xff]  ;;  %v2258_v21 = vld [vmem:[%s3275_s3 + $0xd8] sm:$0xff] }
  0x81   :  { %995 = vmatpush.bf16.msrb.mxu1 %v1590_v22 }
  0x82   :  { %1020 = vmatpush.bf16.msrb.mxu3 %v1862_v18  ;;  %1008 = vmatpush.bf16.msrb.mxu2 %v1718_v23  ;;  %v2257_v23 = vld [vmem:[%s3275_s3 + $0xd0] sm:$0xff] }
  0x83   :  { %983 = vmatmul.bf16.vlgmr.msrb.gmra.mxu0 %v2625_v13  ;;  %v2245_v13 = vld [vmem:[%s3275_s3 + $0x70] sm:$0xff] }
  0x84   :  { %1295 = vmatpush.bf16.msra.mxu0 %v2238_v24  ;;  %996 = vmatmul.bf16.vlgmr.msrb.gmra.mxu1 %v2631_v15  ;;  %v2233_v15 = vld [vmem:[%s3275_s3 + $0x10] sm:$0xff] }
  0x85   :  { %1308 = vmatpush.bf16.msra.mxu1 %v2246_v25  ;;  %1009 = vmatmul.bf16.vlgmr.msrb.gmra.mxu2 %v2623_v12  ;;  %v2234_v12 = vld [vmem:[%s3275_s3 + $0x18] sm:$0xff] }
  0x86   :  { %1021 = vmatpush.bf16.msrb.mxu3 %v1846_v26  ;;  %1321 = vmatpush.bf16.msra.mxu2 %v2254_v43 }
  0x88   :  { %1296 = vmatpush.bf16.msra.mxu0 %v2237_v27  ;;  %v2256_v27 = vld [vmem:[%s3275_s3 + $0xc8] sm:$0xff] }
  0x89   :  { %1946 = vmatmul.msk.bf16.vlgmr.msrb.gmra.mxu3 %vm803_vm1, %v2629_v14  ;;  %1309 = vmatpush.bf16.msra.mxu1 %v2245_v13  ;;  %v2244_v14 = vld [vmem:[%s3275_s3 + $0x68] sm:$0xff] }
  0x8a   :  { %1322 = vmatpush.bf16.msra.mxu2 %v2253_v51  ;;  %1334 = vmatpush.bf16.msra.mxu3 %v2262_v7 }
  0x8c   :  { %1297 = vmatpush.bf16.msra.mxu0 %v2236_v28 }
  0x8d   :  { %1310 = vmatpush.bf16.msra.mxu1 %v2244_v14 }
  0x8e   :  { %1323 = vmatpush.bf16.msra.mxu2 %v2252_v50  ;;  %1335 = vmatpush.bf16.msra.mxu3 %v2261_v16 }
  0x90   :  { %1298 = vmatpush.bf16.msra.mxu0 %v2235_v29 }
  0x91   :  { %1311 = vmatpush.bf16.msra.mxu1 %v2243_v30 }
  0x92   :  { %1324 = vmatpush.bf16.msra.mxu2 %v2251_v54  ;;  %1336 = vmatpush.bf16.msra.mxu3 %v2260_v17 }
  0x94   :  { %1299 = vmatpush.bf16.msra.mxu0 %v2234_v12  ;;  %v2255_v12 = vld [vmem:[%s3275_s3 + $0xc0] sm:$0xff] }
  0x95   :  { %1312 = vmatpush.bf16.msra.mxu1 %v2242_v32 }
  0x96   :  { %1325 = vmatpush.bf16.msra.mxu2 %v2250_v56  ;;  %1337 = vmatpush.bf16.msra.mxu3 %v2259_v19  ;;  %v2267_v56 = vld [vmem:[%s3277_s5 + $0x20] sm:$0xff] }
  0x98   :  { %1300 = vmatpush.bf16.msra.mxu0 %v2233_v15 }
  0x99   :  { %1313 = vmatpush.bf16.msra.mxu1 %v2241_v34 }
  0x9a   :  { %1326 = vmatpush.bf16.msra.mxu2 %v2249_v60  ;;  %1338 = vmatpush.bf16.msra.mxu3 %v2258_v21  ;;  %v2263_v60 = vld [vmem:[%s3277_s5] sm:$0xff] }
  0x9c   :  { %1301 = vmatpush.bf16.msra.mxu0 %v2232_v31 }
  0x9d   :  { %1314 = vmatpush.bf16.msra.mxu1 %v2240_v38 }
  0x9e   :  { %1327 = vmatpush.bf16.msra.mxu2 %v2248_v63  ;;  %1339 = vmatpush.bf16.msra.mxu3 %v2257_v23  ;;  %v2272_v63 = vld [vmem:[%s3276_s4] ss:$0 sm:$0xff] }
  0xa0   :  { %1302 = vmatpush.bf16.msra.mxu0 %v2231_v9 }
  0xa1   :  { %1315 = vmatpush.bf16.msra.mxu1 %v2239_v41 }
  0xa2   :  { %1328 = vmatpush.bf16.msra.mxu2 %v2247_v5  ;;  %1340 = vmatpush.bf16.msra.mxu3 %v2256_v27 }
  0xa6   :  { %1341 = vmatpush.bf16.msra.mxu3 %v2255_v12 }
  0xa8   :  { %v828_v36 = vpop.f32.mrf.mxu0 }
  0xa9   :  { %v829_v37 = vadd.f32 %v828_v36, %v156_v35  ;;  %v159_v35 = vperm.slane %v3176_v33, 3  ;;  %v2270_v33 = vld [vmem:[%s3277_s5 + $0x38] sm:$0xff] }
  0xaa   :  { %1417 = vmatpush.bf16.msrb.mxu0 %v2270_v33 }
  0xac   :  { %v841_v39 = vpop.f32.mrf.mxu1 }
  0xad   :  { %v842_v40 = vadd.f32 %v841_v39, %v829_v37 }
  0xae   :  { %v854_v42 = vpop.f32.mrf.mxu2 }
  0xaf   :  { %v855_v44 = vadd.f32 %v854_v42, %v842_v40  ;;  %v867_v46 = vpop.f32.mrf.mxu3 }
  0xb0   :  { %v830_v45 = vpop.f32.mrf.mxu0 }
  0xb1   :  { %v868_v47 = vadd.f32 %v867_v46, %v855_v44 }
  0xb3   :  { %v1027_v49 = vmax.f32 %v868_v47, 0.0 }
  0xb4   :  { %v843_v48 = vpop.f32.mrf.mxu1 }
  0xb5   :  { %v1031_v52 = vpack.c.bf16 %v1027_v49, %v1027_v49 }
  0xb6   :  { %v856_v53 = vpop.f32.mrf.mxu2 }
  0xb7   :  { %1303 = vmatmul.bf16.vlgmr.msra.gmra.mxu0 %v1031_v52  ;;  %v869_v55 = vpop.f32.mrf.mxu3  ;;  %v2269_v53 = vld [vmem:[%s3277_s5 + $0x30] sm:$0xff] }
  0xb8   :  { %1418 = vmatpush.bf16.msrb.mxu0 %v2269_v53  ;;  %v2268_v55 = vld [vmem:[%s3277_s5 + $0x28] sm:$0xff] }
  0xbc   :  { %1419 = vmatpush.bf16.msrb.mxu0 %v2268_v55 }
  0xc0   :  { %v880_v58 = vpop.f32.mrf.mxu0  ;;  %1420 = vmatpush.bf16.msrb.mxu0 %v2267_v56 }
  0xc1   :  { %v881_v59 = vadd.f32 %v880_v58, %v157_v57  ;;  %v893_v61 = vpop.f32.mrf.mxu1  ;;  %v2266_v57 = vld [vmem:[%s3277_s5 + $0x18] sm:$0xff]  ;;  %v2265_v58 = vld [vmem:[%s3277_s5 + $0x10] sm:$0xff] }
  0xc3   :  { %v894_v62 = vadd.f32 %v893_v61, %v881_v59  ;;  %v2264_v59 = vld [vmem:[%s3277_s5 + $0x8] sm:$0xff]  ;;  %s2300_s5 = smov [#allocation2]  }
  0xc4   :  { %1421 = vmatpush.bf16.msrb.mxu0 %v2266_v57  ;;  %s1436_s2 = sshll.u32 %s2300_s5, 4  ;;  %s1437_s2 = int_to_ptr.vmem [resolvable:$true] %s1436_s2 }
  0xc8   :  { %v906_v0 = vpop.f32.mrf.mxu2  ;;  %v882_v2 = vpop.f32.mrf.mxu0  ;;  %1422 = vmatpush.bf16.msrb.mxu0 %v2265_v58 }
  0xc9   :  { %v907_v1 = vadd.f32 %v906_v0, %v894_v62  ;;  %v895_v4 = vpop.f32.mrf.mxu1 }
  0xcc   :  { %v919_v3 = vpop.f32.mrf.mxu3  ;;  %1423 = vmatpush.bf16.msrb.mxu0 %v2264_v59 }
  0xcd   :  { %v920_v6 = vadd.f32 %v919_v3, %v907_v1 }
  0xcf   :  { %v1028_v8 = vmax.f32 %v920_v6, 0.0 }
  0xd0   :  { %v908_v11 = vpop.f32.mrf.mxu2  ;;  %1424 = vmatpush.bf16.msrb.mxu0 %v2263_v60 }
  0xd1   :  { %v1032_v10 = vpack.c.bf16 %v1028_v8, %v1028_v8  ;;  %v2273_v8 = vld [vmem:[%s3278_s6] ss:$0 sm:$0xff] }
  0xd3   :  { %1316 = vmatmul.bf16.vlgmr.msra.gmra.mxu1 %v1032_v10 }
  0xd4   :  { %v921_v18 = vpop.f32.mrf.mxu3 }
  0xe0   :  { %v932_v22 = vpop.f32.mrf.mxu0 }
  0xe1   :  { %v933_v24 = vadd.f32 %v932_v22, %v158_v20  ;;  %v945_v25 = vpop.f32.mrf.mxu1 }
  0xe3   :  { %v946_v26 = vadd.f32 %v945_v25, %v933_v24 }
  0xe8   :  { %v958_v28 = vpop.f32.mrf.mxu2  ;;  %v934_v13 = vpop.f32.mrf.mxu0 }
  0xe9   :  { %v959_v29 = vadd.f32 %v958_v28, %v946_v26  ;;  %v947_v15 = vpop.f32.mrf.mxu1 }
  0xec   :  { %v971_v14 = vpop.f32.mrf.mxu3 }
  0xed   :  { %v972_v30 = vadd.f32 %v971_v14, %v959_v29 }
  0xef   :  { %v1029_v31 = vmax.f32 %v972_v30, 0.0 }
  0xf0   :  { %v960_v9 = vpop.f32.mrf.mxu2 }
  0xf1   :  { %v1033_v32 = vpack.c.bf16 %v1029_v31, %v1029_v31 }
  0xf3   :  { %1329 = vmatmul.bf16.vlgmr.msra.gmra.mxu2 %v1033_v32 }
  0xf4   :  { %v973_v34 = vpop.f32.mrf.mxu3 }
 0x100   :  { %v984_v36 = vpop.f32.mrf.mxu0 }
 0x101   :  { %v985_v37 = vadd.f32 %v984_v36, %v159_v35  ;;  %v997_v38 = vpop.f32.mrf.mxu1 }
 0x103   :  { %v998_v39 = vadd.f32 %v997_v38, %v985_v37 }
 0x108   :  { %v1010_v40 = vpop.f32.mrf.mxu2  ;;  %v986_v42 = vpop.f32.mrf.mxu0 }
 0x109   :  { %v1011_v41 = vadd.f32 %v1010_v40, %v998_v39  ;;  %v999_v43 = vpop.f32.mrf.mxu1 }
 0x10c   :  { %v1023_v44 = vpop.f32.mrf.mxu3 }
 0x10d   :  { %v1024_v45 = vadd.f32 %v1023_v44, %v1011_v41 }
 0x10f   :  { %v1030_v46 = vmax.f32 %v1024_v45, 0.0 }
 0x110   :  { %v1012_v47 = vpop.f32.mrf.mxu2 }
 0x111   :  { %v1034_v51 = vpack.c.bf16 %v1030_v46, %v1030_v46 }
 0x113   :  { %1342 = vmatmul.bf16.vlgmr.msra.gmra.mxu3 %v1034_v51 }
 0x114   :  { %v1025_v48 = vpop.f32.mrf.mxu3 }
 0x134   :  { %v1304_v49 = vpop.f32.mrf.mxu0 }
 0x135   :  { %v1305_v0 = vadd.f32 %v2272_v63, %v1304_v49 }
 0x13c   :  { %v1306_v50 = vpop.f32.mrf.mxu0 }
 0x150   :  { %v1317_v52 = vpop.f32.mrf.mxu1 }
 0x151   :  { %v1318_v1 = vadd.f32 %v1317_v52, %v1305_v0 }
 0x158   :  { %v1319_v54 = vpop.f32.mrf.mxu1 }
 0x176   :  { %v1330_v61 = vpop.f32.mrf.mxu2 }
 0x177   :  { %v1331_v2 = vadd.f32 %v1330_v61, %v1318_v1 }
 0x17e   :  { %v1332_v62 = vpop.f32.mrf.mxu2 }
 0x196   :  { %v1343_v3 = vpop.f32.mrf.mxu3 }
 0x197   :  { %v1344_v4 = vadd.f32 %v1343_v3, %v1331_v2 }
 0x199   :  { %v1347_v5 = vmax.f32 %v1344_v4, 0.0 }
 0x19b   :  { %v1348_v6 = vpack.c.bf16 %v1347_v5, %v1347_v5 }
 0x19d   :  { %1425 = vmatmul.bf16.vlgmr.msrb.gmra.mxu0 %v1348_v6 }
 0x19e   :  { %v1345_v7 = vpop.f32.mrf.mxu3 }
 0x21a   :  { %v1426_v10 = vpop.f32.mrf.mxu0 }
 0x21b   :  { %v1427_v11 = vadd.f32 %v2273_v8, %v1426_v10 }
 0x21d   :  { %1430 = vst [vmem:[#allocation2] sm:$0x3] %v1427_v11 }
 0x21e   :  { %1441 = dma.vmem_to_hbm [thread:$0]  %s1437_s2, 32, %s1439_s14, [#allocation3]  }
 0x222   :  { %v1428_v16 = vpop.f32.mrf.mxu0 }
 0x223   :  { %2298 = dma.done.wait [#allocation3], 32  }
 0x224   :  { %2299 = vsyncadd [#allocation3], 4294967264 }
 0x225   :  { %1446 = vsyncpa [#allocation3], 1 }

</bundles_post_ra>
